<compile_context>
chip_gen: v5e
topology: v5e:2x2
jax: 0.10.0
libtpu: 0.0.40
codegen_flags: <defaults>
</compile_context>

<pallas_src>
import functools

import jax
import jax.numpy as jnp
from jax import lax
from jax.experimental import pallas as pl
from jax.experimental.pallas import tpu as pltpu


def _round_up(x, m):
    return (x + m - 1) // m * m


def _device_kind():
    try:
        return jax.devices()[0].device_kind.lower()
    except Exception:
        return ""


def _tpu_vmem_bytes():
    """Physical VMEM per core; used to cap vmem_limit_bytes and size tiles."""
    try:
        return int(pltpu.get_tpu_info().vmem_capacity_bytes)
    except Exception:
        kind = _device_kind()
        if "v7" in kind:
            return 64 * 1024 * 1024
        return 128 * 1024 * 1024


def lstm_recurrence_kernel(xp_ref, w_hh_t_ref, w_fc_t_ref, out_ref, h_ref, c_ref,
                           *, hidden_pad, seq_len, chunk, masked, unroll, act_dtype):
    """Grid = (batch_tiles [parallel], time_chunks [arbitrary]).

    xp_ref     : (Tc, Bt, 4*Hp)  bf16/f32 -- precomputed x @ W_ih^T + bias, gate order (i,f,o,g),
                                             per-gate padded along the hidden dim
    w_hh_t_ref : (Hp, 4*Hp)               -- pre-transposed recurrent weights (bf16 or f32)
    w_fc_t_ref : (Hp, Op) f32             -- pre-transposed FC weights, O padded to 128 lanes
    out_ref    : (Bt, Op) f32
    h_ref/c_ref: (Bt, Hp) f32 VMEM scratch, persistent across the time-chunk axis.
    """
    c_idx = pl.program_id(1)  # time-chunk index (sequential)
    hp = hidden_pad

    @pl.when(c_idx == 0)
    def _init():
        h_ref[...] = jnp.zeros_like(h_ref)
        c_ref[...] = jnp.zeros_like(c_ref)

    w_hh_t = w_hh_t_ref[...]  # hoisted load; constant across the chunk

    def step(s, carry):
        # Input projection was hoisted out of the kernel; only the recurrent matmul remains.
        gates = xp_ref[s].astype(jnp.float32) + jnp.dot(
            h_ref[...].astype(w_hh_t.dtype), w_hh_t,
            preferred_element_type=jnp.float32)                      # (Bt, 4*Hp) f32

        # Gate order (i, f, o, g): one contiguous sigmoid over 3 gates, tanh on the last slice.
        ga = gates.astype(act_dtype)                                 # bf16 EUP on v6e/v7x
        sig = jax.nn.sigmoid(ga[:, 0:3 * hp]).astype(jnp.float32)
        i_g = sig[:, 0 * hp:1 * hp]
        f_g = sig[:, 1 * hp:2 * hp]
        o_g = sig[:, 2 * hp:3 * hp]
        g_g = jnp.tanh(ga[:, 3 * hp:4 * hp]).astype(jnp.float32)

        c_new = f_g * c_ref[...] + i_g * g_g
        h_new = o_g * jnp.tanh(c_new.astype(act_dtype)).astype(jnp.float32)

        if masked:  # only traced when T was padded up to a multiple of the chunk size
            valid = (c_idx * chunk + s) < seq_len
            c_new = jnp.where(valid, c_new, c_ref[...])
            h_new = jnp.where(valid, h_new, h_ref[...])

        c_ref[...] = c_new
        h_ref[...] = h_new
        return carry

    # Partial unroll: keeps LLO scheduling visibility without blowing vreg live ranges
    # when the batch tile is large.
    lax.fori_loop(0, chunk, step, None, unroll=unroll)

    @pl.when(c_idx == pl.num_programs(1) - 1)
    def _finalize():
        # fc(hidden[-1]); W_fc pre-transposed, padded H rows / padded O cols are zero.
        # b_fc is added in the glue after the kernel.
        out_ref[...] = jnp.dot(h_ref[...], w_fc_t_ref[...],
                               preferred_element_type=jnp.float32).astype(out_ref.dtype)


def lstm_classifier_forward(token_ids, embeddings, w_ih, w_hh, b_ih, b_hh, w_fc, b_fc,
                            *, time_chunk=32, batch_tile=None,
                            recurrent_weight_dtype=jnp.bfloat16,
                            x_proj_dtype=jnp.bfloat16):
    """token_ids: (B, T) int32. Returns logits (B, output_size) float32.

    NOTE: recurrent_weight_dtype / x_proj_dtype = jnp.float32 gives a bit-closer match to the
    f32 reference for very long sequences (bf16 recurrent rounding accumulates over T).
    """
    B, T = token_ids.shape
    H = w_hh.shape[1]
    O = w_fc.shape[0]

    Hp = _round_up(H, 128)                 # lane-align each gate
    Op = _round_up(O, 128)                 # lane-dense (unmasked) output store

    kind = _device_kind()
    is_v5e = ("v5 lite" in kind) or ("v5e" in kind) or ("v5litepod" in kind)
    is_v7x = "v7" in kind
    vmem_cap = _tpu_vmem_bytes()
    budget = int(vmem_cap * 0.8)           # leave headroom below physical VMEM
    # v5e has no bf16 VPU/EUP: keep gate activations in f32 there.
    act_dtype = jnp.float32 if is_v5e else jnp.bfloat16

    # ---- Batch tile: big enough to fill MXU rows; >=2 tiles on v7x (2 TCs) when batch allows.
    Bp8 = _round_up(B, 8)
    if batch_tile is None:
        if is_v7x and Bp8 >= 128:
            batch_tile = min(256, _round_up((Bp8 + 1) // 2, 8))
        else:
            batch_tile = min(Bp8, 256)
    batch_tile = _round_up(batch_tile, 8)
    Bp = _round_up(B, batch_tile)

    # ---- Time chunk: shrink until the footprint fits the per-generation VMEM budget.
    w_bytes = jnp.dtype(recurrent_weight_dtype).itemsize
    xp_bytes = jnp.dtype(x_proj_dtype).itemsize

    def _need(tc):
        return (2 * tc * batch_tile * 4 * Hp * xp_bytes      # double-buffered x_proj chunk
                + 1 * Hp * 4 * Hp * w_bytes                  # W_hh^T (single-buffered)
                + 1 * Hp * Op * 4                            # W_fc^T (single-buffered)
                + 2 * batch_tile * Op * 4                    # output tile
                + 2 * batch_tile * Hp * 4                    # h, c scratch
                + 4 * batch_tile * 4 * Hp * 4                # in-flight gate/activation temps
                + 2 * 1024 * 1024)                           # slack

    Tc = max(1, min(time_chunk, T))
    while Tc > 1 and _need(Tc) > budget:
        Tc = max(1, Tc // 2)
    Tp = _round_up(T, Tc)
    masked = (Tp != T)
    vmem_limit = int(min(max(_need(Tc) + (4 << 20), 32 << 20), budget))

    # ---- Glue (plain JAX / XLA): gather + hoisted input projection + weight prep ----
    # PyTorch nn.LSTM row order is (i, f, g, o); permute to (i, f, o, g) so the three
    # sigmoid gates are one contiguous slice in-kernel.
    def _reorder(w):
        wi, wf, wg, wo = jnp.split(w, 4, axis=0)
        return jnp.concatenate([wi, wf, wo, wg], axis=0)

    w_ih_r = _reorder(w_ih.astype(jnp.float32))                               # (4H, E)
    w_hh_r = _reorder(w_hh.astype(jnp.float32))                               # (4H, H)
    bias_r = _reorder((b_ih + b_hh).astype(jnp.float32))                      # (4H,)

    embedded = jnp.take(embeddings, token_ids, axis=0).astype(jnp.float32)    # (B, T, E)

    # One big (B*T, E) x (E, 4H) matmul instead of T tiny MXU calls inside the recurrence.
    x_proj = jnp.einsum("bte,ge->tbg", embedded, w_ih_r,
                        preferred_element_type=jnp.float32) + bias_r          # (T, B, 4H)

    # Per-gate padding H -> Hp (zero pre-activation => padded h/c state stays exactly 0).
    x_proj = x_proj.reshape(T, B, 4, H)
    x_proj = jnp.pad(x_proj, ((0, Tp - T), (0, Bp - B), (0, 0), (0, Hp - H)))
    x_proj = x_proj.reshape(Tp, Bp, 4 * Hp).astype(x_proj_dtype)              # bf16 stream

    # Pre-transposed recurrent weight: (4H, H) -> (H, 4H) -> per-gate padded (Hp, 4*Hp).
    w_hh_t = jnp.pad(w_hh_r.T.reshape(H, 4, H), ((0, Hp - H), (0, 0), (0, Hp - H)))
    w_hh_t = w_hh_t.reshape(Hp, 4 * Hp).astype(recurrent_weight_dtype)

    # Pre-transposed FC weight, padded along H and O.
    w_fc_t = jnp.pad(w_fc.T.astype(jnp.float32), ((0, Hp - H), (0, Op - O)))  # (Hp, Op)

    # TODO(synk): interleave two independent batch sub-tiles per step to hide MXU/EUP latency
    # for small H; not implemented here.

    def _call(use_single_buffer_weights):
        if use_single_buffer_weights:
            w_spec = pl.BlockSpec((Hp, 4 * Hp), lambda b, c: (0, 0),
                                  pipeline_mode=pl.Buffered(1))
            f_spec = pl.BlockSpec((Hp, Op), lambda b, c: (0, 0),
                                  pipeline_mode=pl.Buffered(1))
        else:
            w_spec = pl.BlockSpec((Hp, 4 * Hp), lambda b, c: (0, 0))
            f_spec = pl.BlockSpec((Hp, Op), lambda b, c: (0, 0))

        grid_spec = pltpu.PrefetchScalarGridSpec(
            num_scalar_prefetch=0,
            grid=(Bp // batch_tile, Tp // Tc),        # (batch tiles, time chunks)
            in_specs=[
                pl.BlockSpec((Tc, batch_tile, 4 * Hp), lambda b, c: (c, b, 0)),  # x_proj chunk
                w_spec,                                                          # W_hh^T
                f_spec,                                                          # W_fc^T
            ],
            out_specs=pl.BlockSpec((batch_tile, Op), lambda b, c: (b, 0)),
            scratch_shapes=[
                pltpu.VMEM((batch_tile, Hp), jnp.float32),  # h
                pltpu.VMEM((batch_tile, Hp), jnp.float32),  # c
            ],
        )
        return pl.pallas_call(
            functools.partial(lstm_recurrence_kernel,
                              hidden_pad=Hp, seq_len=T, chunk=Tc, masked=masked,
                              unroll=min(Tc, 8), act_dtype=act_dtype),
            out_shape=jax.ShapeDtypeStruct((Bp, Op), jnp.float32),
            grid_spec=grid_spec,
            compiler_params=pltpu.CompilerParams(
                dimension_semantics=("parallel", "arbitrary"),  # batch parallel, time sequential
                vmem_limit_bytes=vmem_limit,
            ),
        )(x_proj, w_hh_t, w_fc_t)

    try:
        out_padded = _call(True)
    except Exception:
        # Older JAX without BlockSpec(pipeline_mode=...): fall back to default double-buffering.
        out_padded = _call(False)

    return out_padded[:B, :O] + b_fc.astype(jnp.float32)


def lstm_classifier_reference(token_ids, embeddings, w_ih, w_hh, b_ih, b_hh, w_fc, b_fc):
    """Pure-JAX f32 reference matching PyTorch nn.LSTM + nn.Linear semantics."""
    emb = jnp.take(embeddings, token_ids, axis=0)          # (B, T, E)
    B = emb.shape[0]
    H = w_hh.shape[1]

    def step(carry, x_t):
        h, c = carry
        gates = x_t @ w_ih.T + h @ w_hh.T + b_ih + b_hh
        i, f, g, o = jnp.split(gates, 4, axis=-1)
        c = jax.nn.sigmoid(f) * c + jax.nn.sigmoid(i) * jnp.tanh(g)
        h = jax.nn.sigmoid(o) * jnp.tanh(c)
        return (h, c), None

    init = (jnp.zeros((B, H), jnp.float32), jnp.zeros((B, H), jnp.float32))
    (h_last, _), _ = lax.scan(step, init, jnp.transpose(emb, (1, 0, 2)))
    return h_last @ w_fc.T + b_fc


if __name__ == "__main__":
    # Small deterministic setup consistent with the module's __init__.
    vocab_size = 50
    embedding_dim = 16
    hidden_dim = 32
    output_size = 4
    batch = 2
    seq_len = 8

    key = jax.random.PRNGKey(0)
    k_emb, k_wih, k_whh, k_bih, k_bhh, k_wfc, k_bfc, k_x = jax.random.split(key, 8)

    embeddings = jax.random.normal(k_emb, (vocab_size, embedding_dim), jnp.float32) * 0.1
    w_ih = jax.random.normal(k_wih, (4 * hidden_dim, embedding_dim), jnp.float32) * 0.1
    w_hh = jax.random.normal(k_whh, (4 * hidden_dim, hidden_dim), jnp.float32) * 0.1
    b_ih = jax.random.normal(k_bih, (4 * hidden_dim,), jnp.float32) * 0.1
    b_hh = jax.random.normal(k_bhh, (4 * hidden_dim,), jnp.float32) * 0.1
    w_fc = jax.random.normal(k_wfc, (output_size, hidden_dim), jnp.float32) * 0.1
    b_fc = jax.random.normal(k_bfc, (output_size,), jnp.float32) * 0.1

    token_ids = jax.random.randint(k_x, (batch, seq_len), 0, vocab_size, jnp.int32)

    logits = lstm_classifier_forward(
        token_ids, embeddings, w_ih, w_hh, b_ih, b_hh, w_fc, b_fc
    )
    jax.block_until_ready(logits)
    assert logits.shape == (batch, output_size)

    # Self-check against a pure-JAX f32 reference (loose tol: recurrent weights / x_proj /
    # gate activations run in bf16 on v6e/v7x).
    ref = lstm_classifier_reference(
        token_ids, embeddings, w_ih, w_hh, b_ih, b_hh, w_fc, b_fc
    )
    jax.block_until_ready(ref)
    assert jnp.allclose(logits, ref, atol=2e-2, rtol=2e-2), (logits, ref)

    print("KERNEL_OK")
</pallas_src>

<mosaic_0001>
module attributes {stable_mosaic.version = 11 : i64} {
  func.func @lstm_recurrence_kernel(%arg0: i32, %arg1: i32, %arg2: memref<8x8x512xbf16, #tpu.memory_space<vmem>>, %arg3: memref<128x512xbf16, #tpu.memory_space<vmem>>, %arg4: memref<128x128xf32, #tpu.memory_space<vmem>>, %arg5: memref<8x128xf32, #tpu.memory_space<vmem>>, %arg6: memref<8x128xf32, #tpu.memory_space<vmem>>, %arg7: memref<8x128xf32, #tpu.memory_space<vmem>>) attributes {dimension_semantics = [#tpu.dimension_semantics<parallel>, #tpu.dimension_semantics<arbitrary>], iteration_bounds = array<i64: 1, 1>, scalar_prefetch = 0 : i64, scratch_operands = 2 : i64, tpu.core_type = #tpu.core_type<tc>, window_params = [{transform_indices = @transform_0, window_bounds = array<i64: 8, 8, 512>}, {pipeline_mode = #tpu.pipeline_mode<synchronous>, transform_indices = @transform_1, window_bounds = array<i64: 128, 512>}, {pipeline_mode = #tpu.pipeline_mode<synchronous>, transform_indices = @transform_2, window_bounds = array<i64: 128, 128>}, {transform_indices = @transform_3, window_bounds = array<i64: 8, 128>}]} {
    %c0_i32 = arith.constant 0 : i32
    %0 = arith.cmpi eq, %arg1, %c0_i32 : i32
    %1 = arith.extui %0 : i1 to i32
    %c0_i32_0 = arith.constant 0 : i32
    %2 = arith.cmpi ne, %1, %c0_i32_0 : i32
    scf.if %2 {
      %cst_100 = arith.constant 0.000000e+00 : f32
      %263 = vector.broadcast %cst_100 : f32 to vector<8x128xf32>
      %c0_101 = arith.constant 0 : index
      %c0_102 = arith.constant 0 : index
      %264 = vector.load %arg6[%c0_101, %c0_102] : memref<8x128xf32, #tpu.memory_space<vmem>>, vector<8x128xf32>
      tpu.vector_store %arg6[%c0_101, %c0_102], %263 {strides = array<i32>} : memref<8x128xf32, #tpu.memory_space<vmem>>, vector<8x128xf32>,
      %cst_103 = arith.constant 0.000000e+00 : f32
      %265 = vector.broadcast %cst_103 : f32 to vector<8x128xf32>
      %c0_104 = arith.constant 0 : index
      %c0_105 = arith.constant 0 : index
      %266 = vector.load %arg7[%c0_104, %c0_105] : memref<8x128xf32, #tpu.memory_space<vmem>>, vector<8x128xf32>
      tpu.vector_store %arg7[%c0_104, %c0_105], %265 {strides = array<i32>} : memref<8x128xf32, #tpu.memory_space<vmem>>, vector<8x128xf32>,
    } else {
    }
    %c0 = arith.constant 0 : index
    %c0_1 = arith.constant 0 : index
    %3 = vector.load %arg3[%c0, %c0_1] : memref<128x512xbf16, #tpu.memory_space<vmem>>, vector<128x512xbf16>
    %c0_i32_2 = arith.constant 0 : i32
    %4 = arith.index_cast %c0_i32_2 : i32 to index
    %c0_3 = arith.constant 0 : index
    %c0_4 = arith.constant 0 : index
    %5 = vector.load %arg2[%4, %c0_3, %c0_4] : memref<8x8x512xbf16, #tpu.memory_space<vmem>>, vector<1x8x512xbf16>
    %6 = vector.shape_cast %5 : vector<1x8x512xbf16> to vector<8x512xbf16>
    %7 = arith.extf %6 : vector<8x512xbf16> to vector<8x512xf32>
    %c0_5 = arith.constant 0 : index
    %c0_6 = arith.constant 0 : index
    %8 = vector.load %arg6[%c0_5, %c0_6] : memref<8x128xf32, #tpu.memory_space<vmem>>, vector<8x128xf32>
    %9 = arith.truncf %8 : vector<8x128xf32> to vector<8x128xbf16>
    %cst = arith.constant dense<0.000000e+00> : vector<8x512xf32>
    %10 = tpu.matmul %9, %3, %cst {dimension_numbers = #tpu.dot_dimension_numbers<[1], [0], [0], [1], [0, 0, 1, 1], [], []>} : vector<8x128xbf16>, vector<128x512xbf16>, vector<8x512xf32> -> vector<8x512xf32>
    %11 = arith.addf %7, %10 : vector<8x512xf32>
    %12 = arith.truncf %11 : vector<8x512xf32> to vector<8x512xbf16>
    %13 = vector.extract_strided_slice %12 {offsets = [0, 0], sizes = [8, 384], strides = [1, 1]} : vector<8x512xbf16> to vector<8x384xbf16>
    %14 = arith.negf %13 : vector<8x384xbf16>
    %15 = math.exp %14 : vector<8x384xbf16>
    %cst_7 = arith.constant 1.000000e+00 : bf16
    %16 = vector.broadcast %cst_7 : bf16 to vector<8x384xbf16>
    %17 = arith.addf %16, %15 : vector<8x384xbf16>
    %18 = arith.divf %16, %17 : vector<8x384xbf16>
    %19 = arith.extf %18 : vector<8x384xbf16> to vector<8x384xf32>
    %20 = vector.extract_strided_slice %19 {offsets = [0, 0], sizes = [8, 128], strides = [1, 1]} : vector<8x384xf32> to vector<8x128xf32>
    %21 = vector.extract_strided_slice %19 {offsets = [0, 128], sizes = [8, 128], strides = [1, 1]} : vector<8x384xf32> to vector<8x128xf32>
    %22 = vector.extract_strided_slice %19 {offsets = [0, 256], sizes = [8, 128], strides = [1, 1]} : vector<8x384xf32> to vector<8x128xf32>
    %23 = vector.extract_strided_slice %12 {offsets = [0, 384], sizes = [8, 128], strides = [1, 1]} : vector<8x512xbf16> to vector<8x128xbf16>
    %24 = math.tanh %23 : vector<8x128xbf16>
    %25 = arith.extf %24 : vector<8x128xbf16> to vector<8x128xf32>
    %c0_8 = arith.constant 0 : index
    %c0_9 = arith.constant 0 : index
    %26 = vector.load %arg7[%c0_8, %c0_9] : memref<8x128xf32, #tpu.memory_space<vmem>>, vector<8x128xf32>
    %27 = arith.mulf %21, %26 : vector<8x128xf32>
    %28 = arith.mulf %20, %25 : vector<8x128xf32>
    %29 = arith.addf %27, %28 : vector<8x128xf32>
    %30 = arith.truncf %29 : vector<8x128xf32> to vector<8x128xbf16>
    %31 = math.tanh %30 : vector<8x128xbf16>
    %32 = arith.extf %31 : vector<8x128xbf16> to vector<8x128xf32>
    %33 = arith.mulf %22, %32 : vector<8x128xf32>
    %c0_10 = arith.constant 0 : index
    %c0_11 = arith.constant 0 : index
    %34 = vector.load %arg7[%c0_10, %c0_11] : memref<8x128xf32, #tpu.memory_space<vmem>>, vector<8x128xf32>
    tpu.vector_store %arg7[%c0_10, %c0_11], %29 {strides = array<i32>} : memref<8x128xf32, #tpu.memory_space<vmem>>, vector<8x128xf32>,
    %c0_12 = arith.constant 0 : index
    %c0_13 = arith.constant 0 : index
    %35 = vector.load %arg6[%c0_12, %c0_13] : memref<8x128xf32, #tpu.memory_space<vmem>>, vector<8x128xf32>
    tpu.vector_store %arg6[%c0_12, %c0_13], %33 {strides = array<i32>} : memref<8x128xf32, #tpu.memory_space<vmem>>, vector<8x128xf32>,
    %c1_i32 = arith.constant 1 : i32
    %36 = arith.index_cast %c1_i32 : i32 to index
    %c0_14 = arith.constant 0 : index
    %c0_15 = arith.constant 0 : index
    %37 = vector.load %arg2[%36, %c0_14, %c0_15] : memref<8x8x512xbf16, #tpu.memory_space<vmem>>, vector<1x8x512xbf16>
    %38 = vector.shape_cast %37 : vector<1x8x512xbf16> to vector<8x512xbf16>
    %39 = arith.extf %38 : vector<8x512xbf16> to vector<8x512xf32>
    %c0_16 = arith.constant 0 : index
    %c0_17 = arith.constant 0 : index
    %40 = vector.load %arg6[%c0_16, %c0_17] : memref<8x128xf32, #tpu.memory_space<vmem>>, vector<8x128xf32>
    %41 = arith.truncf %40 : vector<8x128xf32> to vector<8x128xbf16>
    %cst_18 = arith.constant dense<0.000000e+00> : vector<8x512xf32>
    %42 = tpu.matmul %41, %3, %cst_18 {dimension_numbers = #tpu.dot_dimension_numbers<[1], [0], [0], [1], [0, 0, 1, 1], [], []>} : vector<8x128xbf16>, vector<128x512xbf16>, vector<8x512xf32> -> vector<8x512xf32>
    %43 = arith.addf %39, %42 : vector<8x512xf32>
    %44 = arith.truncf %43 : vector<8x512xf32> to vector<8x512xbf16>
    %45 = vector.extract_strided_slice %44 {offsets = [0, 0], sizes = [8, 384], strides = [1, 1]} : vector<8x512xbf16> to vector<8x384xbf16>
    %46 = arith.negf %45 : vector<8x384xbf16>
    %47 = math.exp %46 : vector<8x384xbf16>
    %cst_19 = arith.constant 1.000000e+00 : bf16
    %48 = vector.broadcast %cst_19 : bf16 to vector<8x384xbf16>
    %49 = arith.addf %48, %47 : vector<8x384xbf16>
    %50 = arith.divf %48, %49 : vector<8x384xbf16>
    %51 = arith.extf %50 : vector<8x384xbf16> to vector<8x384xf32>
    %52 = vector.extract_strided_slice %51 {offsets = [0, 0], sizes = [8, 128], strides = [1, 1]} : vector<8x384xf32> to vector<8x128xf32>
    %53 = vector.extract_strided_slice %51 {offsets = [0, 128], sizes = [8, 128], strides = [1, 1]} : vector<8x384xf32> to vector<8x128xf32>
    %54 = vector.extract_strided_slice %51 {offsets = [0, 256], sizes = [8, 128], strides = [1, 1]} : vector<8x384xf32> to vector<8x128xf32>
    %55 = vector.extract_strided_slice %44 {offsets = [0, 384], sizes = [8, 128], strides = [1, 1]} : vector<8x512xbf16> to vector<8x128xbf16>
    %56 = math.tanh %55 : vector<8x128xbf16>
    %57 = arith.extf %56 : vector<8x128xbf16> to vector<8x128xf32>
    %c0_20 = arith.constant 0 : index
    %c0_21 = arith.constant 0 : index
    %58 = vector.load %arg7[%c0_20, %c0_21] : memref<8x128xf32, #tpu.memory_space<vmem>>, vector<8x128xf32>
    %59 = arith.mulf %53, %58 : vector<8x128xf32>
    %60 = arith.mulf %52, %57 : vector<8x128xf32>
    %61 = arith.addf %59, %60 : vector<8x128xf32>
    %62 = arith.truncf %61 : vector<8x128xf32> to vector<8x128xbf16>
    %63 = math.tanh %62 : vector<8x128xbf16>
    %64 = arith.extf %63 : vector<8x128xbf16> to vector<8x128xf32>
    %65 = arith.mulf %54, %64 : vector<8x128xf32>
    %c0_22 = arith.constant 0 : index
    %c0_23 = arith.constant 0 : index
    %66 = vector.load %arg7[%c0_22, %c0_23] : memref<8x128xf32, #tpu.memory_space<vmem>>, vector<8x128xf32>
    tpu.vector_store %arg7[%c0_22, %c0_23], %61 {strides = array<i32>} : memref<8x128xf32, #tpu.memory_space<vmem>>, vector<8x128xf32>,
    %c0_24 = arith.constant 0 : index
    %c0_25 = arith.constant 0 : index
    %67 = vector.load %arg6[%c0_24, %c0_25] : memref<8x128xf32, #tpu.memory_space<vmem>>, vector<8x128xf32>
    tpu.vector_store %arg6[%c0_24, %c0_25], %65 {strides = array<i32>} : memref<8x128xf32, #tpu.memory_space<vmem>>, vector<8x128xf32>,
    %c2_i32 = arith.constant 2 : i32
    %68 = arith.index_cast %c2_i32 : i32 to index
    %c0_26 = arith.constant 0 : index
    %c0_27 = arith.constant 0 : index
    %69 = vector.load %arg2[%68, %c0_26, %c0_27] : memref<8x8x512xbf16, #tpu.memory_space<vmem>>, vector<1x8x512xbf16>
    %70 = vector.shape_cast %69 : vector<1x8x512xbf16> to vector<8x512xbf16>
    %71 = arith.extf %70 : vector<8x512xbf16> to vector<8x512xf32>
    %c0_28 = arith.constant 0 : index
    %c0_29 = arith.constant 0 : index
    %72 = vector.load %arg6[%c0_28, %c0_29] : memref<8x128xf32, #tpu.memory_space<vmem>>, vector<8x128xf32>
    %73 = arith.truncf %72 : vector<8x128xf32> to vector<8x128xbf16>
    %cst_30 = arith.constant dense<0.000000e+00> : vector<8x512xf32>
    %74 = tpu.matmul %73, %3, %cst_30 {dimension_numbers = #tpu.dot_dimension_numbers<[1], [0], [0], [1], [0, 0, 1, 1], [], []>} : vector<8x128xbf16>, vector<128x512xbf16>, vector<8x512xf32> -> vector<8x512xf32>
    %75 = arith.addf %71, %74 : vector<8x512xf32>
    %76 = arith.truncf %75 : vector<8x512xf32> to vector<8x512xbf16>
    %77 = vector.extract_strided_slice %76 {offsets = [0, 0], sizes = [8, 384], strides = [1, 1]} : vector<8x512xbf16> to vector<8x384xbf16>
    %78 = arith.negf %77 : vector<8x384xbf16>
    %79 = math.exp %78 : vector<8x384xbf16>
    %cst_31 = arith.constant 1.000000e+00 : bf16
    %80 = vector.broadcast %cst_31 : bf16 to vector<8x384xbf16>
    %81 = arith.addf %80, %79 : vector<8x384xbf16>
    %82 = arith.divf %80, %81 : vector<8x384xbf16>
    %83 = arith.extf %82 : vector<8x384xbf16> to vector<8x384xf32>
    %84 = vector.extract_strided_slice %83 {offsets = [0, 0], sizes = [8, 128], strides = [1, 1]} : vector<8x384xf32> to vector<8x128xf32>
    %85 = vector.extract_strided_slice %83 {offsets = [0, 128], sizes = [8, 128], strides = [1, 1]} : vector<8x384xf32> to vector<8x128xf32>
    %86 = vector.extract_strided_slice %83 {offsets = [0, 256], sizes = [8, 128], strides = [1, 1]} : vector<8x384xf32> to vector<8x128xf32>
    %87 = vector.extract_strided_slice %76 {offsets = [0, 384], sizes = [8, 128], strides = [1, 1]} : vector<8x512xbf16> to vector<8x128xbf16>
    %88 = math.tanh %87 : vector<8x128xbf16>
    %89 = arith.extf %88 : vector<8x128xbf16> to vector<8x128xf32>
    %c0_32 = arith.constant 0 : index
    %c0_33 = arith.constant 0 : index
    %90 = vector.load %arg7[%c0_32, %c0_33] : memref<8x128xf32, #tpu.memory_space<vmem>>, vector<8x128xf32>
    %91 = arith.mulf %85, %90 : vector<8x128xf32>
    %92 = arith.mulf %84, %89 : vector<8x128xf32>
    %93 = arith.addf %91, %92 : vector<8x128xf32>
    %94 = arith.truncf %93 : vector<8x128xf32> to vector<8x128xbf16>
    %95 = math.tanh %94 : vector<8x128xbf16>
    %96 = arith.extf %95 : vector<8x128xbf16> to vector<8x128xf32>
    %97 = arith.mulf %86, %96 : vector<8x128xf32>
    %c0_34 = arith.constant 0 : index
    %c0_35 = arith.constant 0 : index
    %98 = vector.load %arg7[%c0_34, %c0_35] : memref<8x128xf32, #tpu.memory_space<vmem>>, vector<8x128xf32>
    tpu.vector_store %arg7[%c0_34, %c0_35], %93 {strides = array<i32>} : memref<8x128xf32, #tpu.memory_space<vmem>>, vector<8x128xf32>,
    %c0_36 = arith.constant 0 : index
    %c0_37 = arith.constant 0 : index
    %99 = vector.load %arg6[%c0_36, %c0_37] : memref<8x128xf32, #tpu.memory_space<vmem>>, vector<8x128xf32>
    tpu.vector_store %arg6[%c0_36, %c0_37], %97 {strides = array<i32>} : memref<8x128xf32, #tpu.memory_space<vmem>>, vector<8x128xf32>,
    %c3_i32 = arith.constant 3 : i32
    %100 = arith.index_cast %c3_i32 : i32 to index
    %c0_38 = arith.constant 0 : index
    %c0_39 = arith.constant 0 : index
    %101 = vector.load %arg2[%100, %c0_38, %c0_39] : memref<8x8x512xbf16, #tpu.memory_space<vmem>>, vector<1x8x512xbf16>
    %102 = vector.shape_cast %101 : vector<1x8x512xbf16> to vector<8x512xbf16>
    %103 = arith.extf %102 : vector<8x512xbf16> to vector<8x512xf32>
    %c0_40 = arith.constant 0 : index
    %c0_41 = arith.constant 0 : index
    %104 = vector.load %arg6[%c0_40, %c0_41] : memref<8x128xf32, #tpu.memory_space<vmem>>, vector<8x128xf32>
    %105 = arith.truncf %104 : vector<8x128xf32> to vector<8x128xbf16>
    %cst_42 = arith.constant dense<0.000000e+00> : vector<8x512xf32>
    %106 = tpu.matmul %105, %3, %cst_42 {dimension_numbers = #tpu.dot_dimension_numbers<[1], [0], [0], [1], [0, 0, 1, 1], [], []>} : vector<8x128xbf16>, vector<128x512xbf16>, vector<8x512xf32> -> vector<8x512xf32>
    %107 = arith.addf %103, %106 : vector<8x512xf32>
    %108 = arith.truncf %107 : vector<8x512xf32> to vector<8x512xbf16>
    %109 = vector.extract_strided_slice %108 {offsets = [0, 0], sizes = [8, 384], strides = [1, 1]} : vector<8x512xbf16> to vector<8x384xbf16>
    %110 = arith.negf %109 : vector<8x384xbf16>
    %111 = math.exp %110 : vector<8x384xbf16>
    %cst_43 = arith.constant 1.000000e+00 : bf16
    %112 = vector.broadcast %cst_43 : bf16 to vector<8x384xbf16>
    %113 = arith.addf %112, %111 : vector<8x384xbf16>
    %114 = arith.divf %112, %113 : vector<8x384xbf16>
    %115 = arith.extf %114 : vector<8x384xbf16> to vector<8x384xf32>
    %116 = vector.extract_strided_slice %115 {offsets = [0, 0], sizes = [8, 128], strides = [1, 1]} : vector<8x384xf32> to vector<8x128xf32>
    %117 = vector.extract_strided_slice %115 {offsets = [0, 128], sizes = [8, 128], strides = [1, 1]} : vector<8x384xf32> to vector<8x128xf32>
    %118 = vector.extract_strided_slice %115 {offsets = [0, 256], sizes = [8, 128], strides = [1, 1]} : vector<8x384xf32> to vector<8x128xf32>
    %119 = vector.extract_strided_slice %108 {offsets = [0, 384], sizes = [8, 128], strides = [1, 1]} : vector<8x512xbf16> to vector<8x128xbf16>
    %120 = math.tanh %119 : vector<8x128xbf16>
    %121 = arith.extf %120 : vector<8x128xbf16> to vector<8x128xf32>
    %c0_44 = arith.constant 0 : index
    %c0_45 = arith.constant 0 : index
    %122 = vector.load %arg7[%c0_44, %c0_45] : memref<8x128xf32, #tpu.memory_space<vmem>>, vector<8x128xf32>
    %123 = arith.mulf %117, %122 : vector<8x128xf32>
    %124 = arith.mulf %116, %121 : vector<8x128xf32>
    %125 = arith.addf %123, %124 : vector<8x128xf32>
    %126 = arith.truncf %125 : vector<8x128xf32> to vector<8x128xbf16>
    %127 = math.tanh %126 : vector<8x128xbf16>
    %128 = arith.extf %127 : vector<8x128xbf16> to vector<8x128xf32>
    %129 = arith.mulf %118, %128 : vector<8x128xf32>
    %c0_46 = arith.constant 0 : index
    %c0_47 = arith.constant 0 : index
    %130 = vector.load %arg7[%c0_46, %c0_47] : memref<8x128xf32, #tpu.memory_space<vmem>>, vector<8x128xf32>
    tpu.vector_store %arg7[%c0_46, %c0_47], %125 {strides = array<i32>} : memref<8x128xf32, #tpu.memory_space<vmem>>, vector<8x128xf32>,
    %c0_48 = arith.constant 0 : index
    %c0_49 = arith.constant 0 : index
    %131 = vector.load %arg6[%c0_48, %c0_49] : memref<8x128xf32, #tpu.memory_space<vmem>>, vector<8x128xf32>
    tpu.vector_store %arg6[%c0_48, %c0_49], %129 {strides = array<i32>} : memref<8x128xf32, #tpu.memory_space<vmem>>, vector<8x128xf32>,
    %c4_i32 = arith.constant 4 : i32
    %132 = arith.index_cast %c4_i32 : i32 to index
    %c0_50 = arith.constant 0 : index
    %c0_51 = arith.constant 0 : index
    %133 = vector.load %arg2[%132, %c0_50, %c0_51] : memref<8x8x512xbf16, #tpu.memory_space<vmem>>, vector<1x8x512xbf16>
    %134 = vector.shape_cast %133 : vector<1x8x512xbf16> to vector<8x512xbf16>
    %135 = arith.extf %134 : vector<8x512xbf16> to vector<8x512xf32>
    %c0_52 = arith.constant 0 : index
    %c0_53 = arith.constant 0 : index
    %136 = vector.load %arg6[%c0_52, %c0_53] : memref<8x128xf32, #tpu.memory_space<vmem>>, vector<8x128xf32>
    %137 = arith.truncf %136 : vector<8x128xf32> to vector<8x128xbf16>
    %cst_54 = arith.constant dense<0.000000e+00> : vector<8x512xf32>
    %138 = tpu.matmul %137, %3, %cst_54 {dimension_numbers = #tpu.dot_dimension_numbers<[1], [0], [0], [1], [0, 0, 1, 1], [], []>} : vector<8x128xbf16>, vector<128x512xbf16>, vector<8x512xf32> -> vector<8x512xf32>
    %139 = arith.addf %135, %138 : vector<8x512xf32>
    %140 = arith.truncf %139 : vector<8x512xf32> to vector<8x512xbf16>
    %141 = vector.extract_strided_slice %140 {offsets = [0, 0], sizes = [8, 384], strides = [1, 1]} : vector<8x512xbf16> to vector<8x384xbf16>
    %142 = arith.negf %141 : vector<8x384xbf16>
    %143 = math.exp %142 : vector<8x384xbf16>
    %cst_55 = arith.constant 1.000000e+00 : bf16
    %144 = vector.broadcast %cst_55 : bf16 to vector<8x384xbf16>
    %145 = arith.addf %144, %143 : vector<8x384xbf16>
    %146 = arith.divf %144, %145 : vector<8x384xbf16>
    %147 = arith.extf %146 : vector<8x384xbf16> to vector<8x384xf32>
    %148 = vector.extract_strided_slice %147 {offsets = [0, 0], sizes = [8, 128], strides = [1, 1]} : vector<8x384xf32> to vector<8x128xf32>
    %149 = vector.extract_strided_slice %147 {offsets = [0, 128], sizes = [8, 128], strides = [1, 1]} : vector<8x384xf32> to vector<8x128xf32>
    %150 = vector.extract_strided_slice %147 {offsets = [0, 256], sizes = [8, 128], strides = [1, 1]} : vector<8x384xf32> to vector<8x128xf32>
    %151 = vector.extract_strided_slice %140 {offsets = [0, 384], sizes = [8, 128], strides = [1, 1]} : vector<8x512xbf16> to vector<8x128xbf16>
    %152 = math.tanh %151 : vector<8x128xbf16>
    %153 = arith.extf %152 : vector<8x128xbf16> to vector<8x128xf32>
    %c0_56 = arith.constant 0 : index
    %c0_57 = arith.constant 0 : index
    %154 = vector.load %arg7[%c0_56, %c0_57] : memref<8x128xf32, #tpu.memory_space<vmem>>, vector<8x128xf32>
    %155 = arith.mulf %149, %154 : vector<8x128xf32>
    %156 = arith.mulf %148, %153 : vector<8x128xf32>
    %157 = arith.addf %155, %156 : vector<8x128xf32>
    %158 = arith.truncf %157 : vector<8x128xf32> to vector<8x128xbf16>
    %159 = math.tanh %158 : vector<8x128xbf16>
    %160 = arith.extf %159 : vector<8x128xbf16> to vector<8x128xf32>
    %161 = arith.mulf %150, %160 : vector<8x128xf32>
    %c0_58 = arith.constant 0 : index
    %c0_59 = arith.constant 0 : index
    %162 = vector.load %arg7[%c0_58, %c0_59] : memref<8x128xf32, #tpu.memory_space<vmem>>, vector<8x128xf32>
    tpu.vector_store %arg7[%c0_58, %c0_59], %157 {strides = array<i32>} : memref<8x128xf32, #tpu.memory_space<vmem>>, vector<8x128xf32>,
    %c0_60 = arith.constant 0 : index
    %c0_61 = arith.constant 0 : index
    %163 = vector.load %arg6[%c0_60, %c0_61] : memref<8x128xf32, #tpu.memory_space<vmem>>, vector<8x128xf32>
    tpu.vector_store %arg6[%c0_60, %c0_61], %161 {strides = array<i32>} : memref<8x128xf32, #tpu.memory_space<vmem>>, vector<8x128xf32>,
    %c5_i32 = arith.constant 5 : i32
    %164 = arith.index_cast %c5_i32 : i32 to index
    %c0_62 = arith.constant 0 : index
    %c0_63 = arith.constant 0 : index
    %165 = vector.load %arg2[%164, %c0_62, %c0_63] : memref<8x8x512xbf16, #tpu.memory_space<vmem>>, vector<1x8x512xbf16>
    %166 = vector.shape_cast %165 : vector<1x8x512xbf16> to vector<8x512xbf16>
    %167 = arith.extf %166 : vector<8x512xbf16> to vector<8x512xf32>
    %c0_64 = arith.constant 0 : index
    %c0_65 = arith.constant 0 : index
    %168 = vector.load %arg6[%c0_64, %c0_65] : memref<8x128xf32, #tpu.memory_space<vmem>>, vector<8x128xf32>
    %169 = arith.truncf %168 : vector<8x128xf32> to vector<8x128xbf16>
    %cst_66 = arith.constant dense<0.000000e+00> : vector<8x512xf32>
    %170 = tpu.matmul %169, %3, %cst_66 {dimension_numbers = #tpu.dot_dimension_numbers<[1], [0], [0], [1], [0, 0, 1, 1], [], []>} : vector<8x128xbf16>, vector<128x512xbf16>, vector<8x512xf32> -> vector<8x512xf32>
    %171 = arith.addf %167, %170 : vector<8x512xf32>
    %172 = arith.truncf %171 : vector<8x512xf32> to vector<8x512xbf16>
    %173 = vector.extract_strided_slice %172 {offsets = [0, 0], sizes = [8, 384], strides = [1, 1]} : vector<8x512xbf16> to vector<8x384xbf16>
    %174 = arith.negf %173 : vector<8x384xbf16>
    %175 = math.exp %174 : vector<8x384xbf16>
    %cst_67 = arith.constant 1.000000e+00 : bf16
    %176 = vector.broadcast %cst_67 : bf16 to vector<8x384xbf16>
    %177 = arith.addf %176, %175 : vector<8x384xbf16>
    %178 = arith.divf %176, %177 : vector<8x384xbf16>
    %179 = arith.extf %178 : vector<8x384xbf16> to vector<8x384xf32>
    %180 = vector.extract_strided_slice %179 {offsets = [0, 0], sizes = [8, 128], strides = [1, 1]} : vector<8x384xf32> to vector<8x128xf32>
    %181 = vector.extract_strided_slice %179 {offsets = [0, 128], sizes = [8, 128], strides = [1, 1]} : vector<8x384xf32> to vector<8x128xf32>
    %182 = vector.extract_strided_slice %179 {offsets = [0, 256], sizes = [8, 128], strides = [1, 1]} : vector<8x384xf32> to vector<8x128xf32>
    %183 = vector.extract_strided_slice %172 {offsets = [0, 384], sizes = [8, 128], strides = [1, 1]} : vector<8x512xbf16> to vector<8x128xbf16>
    %184 = math.tanh %183 : vector<8x128xbf16>
    %185 = arith.extf %184 : vector<8x128xbf16> to vector<8x128xf32>
    %c0_68 = arith.constant 0 : index
    %c0_69 = arith.constant 0 : index
    %186 = vector.load %arg7[%c0_68, %c0_69] : memref<8x128xf32, #tpu.memory_space<vmem>>, vector<8x128xf32>
    %187 = arith.mulf %181, %186 : vector<8x128xf32>
    %188 = arith.mulf %180, %185 : vector<8x128xf32>
    %189 = arith.addf %187, %188 : vector<8x128xf32>
    %190 = arith.truncf %189 : vector<8x128xf32> to vector<8x128xbf16>
    %191 = math.tanh %190 : vector<8x128xbf16>
    %192 = arith.extf %191 : vector<8x128xbf16> to vector<8x128xf32>
    %193 = arith.mulf %182, %192 : vector<8x128xf32>
    %c0_70 = arith.constant 0 : index
    %c0_71 = arith.constant 0 : index
    %194 = vector.load %arg7[%c0_70, %c0_71] : memref<8x128xf32, #tpu.memory_space<vmem>>, vector<8x128xf32>
    tpu.vector_store %arg7[%c0_70, %c0_71], %189 {strides = array<i32>} : memref<8x128xf32, #tpu.memory_space<vmem>>, vector<8x128xf32>,
    %c0_72 = arith.constant 0 : index
    %c0_73 = arith.constant 0 : index
    %195 = vector.load %arg6[%c0_72, %c0_73] : memref<8x128xf32, #tpu.memory_space<vmem>>, vector<8x128xf32>
    tpu.vector_store %arg6[%c0_72, %c0_73], %193 {strides = array<i32>} : memref<8x128xf32, #tpu.memory_space<vmem>>, vector<8x128xf32>,
    %c6_i32 = arith.constant 6 : i32
    %196 = arith.index_cast %c6_i32 : i32 to index
    %c0_74 = arith.constant 0 : index
    %c0_75 = arith.constant 0 : index
    %197 = vector.load %arg2[%196, %c0_74, %c0_75] : memref<8x8x512xbf16, #tpu.memory_space<vmem>>, vector<1x8x512xbf16>
    %198 = vector.shape_cast %197 : vector<1x8x512xbf16> to vector<8x512xbf16>
    %199 = arith.extf %198 : vector<8x512xbf16> to vector<8x512xf32>
    %c0_76 = arith.constant 0 : index
    %c0_77 = arith.constant 0 : index
    %200 = vector.load %arg6[%c0_76, %c0_77] : memref<8x128xf32, #tpu.memory_space<vmem>>, vector<8x128xf32>
    %201 = arith.truncf %200 : vector<8x128xf32> to vector<8x128xbf16>
    %cst_78 = arith.constant dense<0.000000e+00> : vector<8x512xf32>
    %202 = tpu.matmul %201, %3, %cst_78 {dimension_numbers = #tpu.dot_dimension_numbers<[1], [0], [0], [1], [0, 0, 1, 1], [], []>} : vector<8x128xbf16>, vector<128x512xbf16>, vector<8x512xf32> -> vector<8x512xf32>
    %203 = arith.addf %199, %202 : vector<8x512xf32>
    %204 = arith.truncf %203 : vector<8x512xf32> to vector<8x512xbf16>
    %205 = vector.extract_strided_slice %204 {offsets = [0, 0], sizes = [8, 384], strides = [1, 1]} : vector<8x512xbf16> to vector<8x384xbf16>
    %206 = arith.negf %205 : vector<8x384xbf16>
    %207 = math.exp %206 : vector<8x384xbf16>
    %cst_79 = arith.constant 1.000000e+00 : bf16
    %208 = vector.broadcast %cst_79 : bf16 to vector<8x384xbf16>
    %209 = arith.addf %208, %207 : vector<8x384xbf16>
    %210 = arith.divf %208, %209 : vector<8x384xbf16>
    %211 = arith.extf %210 : vector<8x384xbf16> to vector<8x384xf32>
    %212 = vector.extract_strided_slice %211 {offsets = [0, 0], sizes = [8, 128], strides = [1, 1]} : vector<8x384xf32> to vector<8x128xf32>
    %213 = vector.extract_strided_slice %211 {offsets = [0, 128], sizes = [8, 128], strides = [1, 1]} : vector<8x384xf32> to vector<8x128xf32>
    %214 = vector.extract_strided_slice %211 {offsets = [0, 256], sizes = [8, 128], strides = [1, 1]} : vector<8x384xf32> to vector<8x128xf32>
    %215 = vector.extract_strided_slice %204 {offsets = [0, 384], sizes = [8, 128], strides = [1, 1]} : vector<8x512xbf16> to vector<8x128xbf16>
    %216 = math.tanh %215 : vector<8x128xbf16>
    %217 = arith.extf %216 : vector<8x128xbf16> to vector<8x128xf32>
    %c0_80 = arith.constant 0 : index
    %c0_81 = arith.constant 0 : index
    %218 = vector.load %arg7[%c0_80, %c0_81] : memref<8x128xf32, #tpu.memory_space<vmem>>, vector<8x128xf32>
    %219 = arith.mulf %213, %218 : vector<8x128xf32>
    %220 = arith.mulf %212, %217 : vector<8x128xf32>
    %221 = arith.addf %219, %220 : vector<8x128xf32>
    %222 = arith.truncf %221 : vector<8x128xf32> to vector<8x128xbf16>
    %223 = math.tanh %222 : vector<8x128xbf16>
    %224 = arith.extf %223 : vector<8x128xbf16> to vector<8x128xf32>
    %225 = arith.mulf %214, %224 : vector<8x128xf32>
    %c0_82 = arith.constant 0 : index
    %c0_83 = arith.constant 0 : index
    %226 = vector.load %arg7[%c0_82, %c0_83] : memref<8x128xf32, #tpu.memory_space<vmem>>, vector<8x128xf32>
    tpu.vector_store %arg7[%c0_82, %c0_83], %221 {strides = array<i32>} : memref<8x128xf32, #tpu.memory_space<vmem>>, vector<8x128xf32>,
    %c0_84 = arith.constant 0 : index
    %c0_85 = arith.constant 0 : index
    %227 = vector.load %arg6[%c0_84, %c0_85] : memref<8x128xf32, #tpu.memory_space<vmem>>, vector<8x128xf32>
    tpu.vector_store %arg6[%c0_84, %c0_85], %225 {strides = array<i32>} : memref<8x128xf32, #tpu.memory_space<vmem>>, vector<8x128xf32>,
    %c7_i32 = arith.constant 7 : i32
    %228 = arith.index_cast %c7_i32 : i32 to index
    %c0_86 = arith.constant 0 : index
    %c0_87 = arith.constant 0 : index
    %229 = vector.load %arg2[%228, %c0_86, %c0_87] : memref<8x8x512xbf16, #tpu.memory_space<vmem>>, vector<1x8x512xbf16>
    %230 = vector.shape_cast %229 : vector<1x8x512xbf16> to vector<8x512xbf16>
    %231 = arith.extf %230 : vector<8x512xbf16> to vector<8x512xf32>
    %c0_88 = arith.constant 0 : index
    %c0_89 = arith.constant 0 : index
    %232 = vector.load %arg6[%c0_88, %c0_89] : memref<8x128xf32, #tpu.memory_space<vmem>>, vector<8x128xf32>
    %233 = arith.truncf %232 : vector<8x128xf32> to vector<8x128xbf16>
    %cst_90 = arith.constant dense<0.000000e+00> : vector<8x512xf32>
    %234 = tpu.matmul %233, %3, %cst_90 {dimension_numbers = #tpu.dot_dimension_numbers<[1], [0], [0], [1], [0, 0, 1, 1], [], []>} : vector<8x128xbf16>, vector<128x512xbf16>, vector<8x512xf32> -> vector<8x512xf32>
    %235 = arith.addf %231, %234 : vector<8x512xf32>
    %236 = arith.truncf %235 : vector<8x512xf32> to vector<8x512xbf16>
    %237 = vector.extract_strided_slice %236 {offsets = [0, 0], sizes = [8, 384], strides = [1, 1]} : vector<8x512xbf16> to vector<8x384xbf16>
    %238 = arith.negf %237 : vector<8x384xbf16>
    %239 = math.exp %238 : vector<8x384xbf16>
    %cst_91 = arith.constant 1.000000e+00 : bf16
    %240 = vector.broadcast %cst_91 : bf16 to vector<8x384xbf16>
    %241 = arith.addf %240, %239 : vector<8x384xbf16>
    %242 = arith.divf %240, %241 : vector<8x384xbf16>
    %243 = arith.extf %242 : vector<8x384xbf16> to vector<8x384xf32>
    %244 = vector.extract_strided_slice %243 {offsets = [0, 0], sizes = [8, 128], strides = [1, 1]} : vector<8x384xf32> to vector<8x128xf32>
    %245 = vector.extract_strided_slice %243 {offsets = [0, 128], sizes = [8, 128], strides = [1, 1]} : vector<8x384xf32> to vector<8x128xf32>
    %246 = vector.extract_strided_slice %243 {offsets = [0, 256], sizes = [8, 128], strides = [1, 1]} : vector<8x384xf32> to vector<8x128xf32>
    %247 = vector.extract_strided_slice %236 {offsets = [0, 384], sizes = [8, 128], strides = [1, 1]} : vector<8x512xbf16> to vector<8x128xbf16>
    %248 = math.tanh %247 : vector<8x128xbf16>
    %249 = arith.extf %248 : vector<8x128xbf16> to vector<8x128xf32>
    %c0_92 = arith.constant 0 : index
    %c0_93 = arith.constant 0 : index
    %250 = vector.load %arg7[%c0_92, %c0_93] : memref<8x128xf32, #tpu.memory_space<vmem>>, vector<8x128xf32>
    %251 = arith.mulf %245, %250 : vector<8x128xf32>
    %252 = arith.mulf %244, %249 : vector<8x128xf32>
    %253 = arith.addf %251, %252 : vector<8x128xf32>
    %254 = arith.truncf %253 : vector<8x128xf32> to vector<8x128xbf16>
    %255 = math.tanh %254 : vector<8x128xbf16>
    %256 = arith.extf %255 : vector<8x128xbf16> to vector<8x128xf32>
    %257 = arith.mulf %246, %256 : vector<8x128xf32>
    %c0_94 = arith.constant 0 : index
    %c0_95 = arith.constant 0 : index
    %258 = vector.load %arg7[%c0_94, %c0_95] : memref<8x128xf32, #tpu.memory_space<vmem>>, vector<8x128xf32>
    tpu.vector_store %arg7[%c0_94, %c0_95], %253 {strides = array<i32>} : memref<8x128xf32, #tpu.memory_space<vmem>>, vector<8x128xf32>,
    %c0_96 = arith.constant 0 : index
    %c0_97 = arith.constant 0 : index
    %259 = vector.load %arg6[%c0_96, %c0_97] : memref<8x128xf32, #tpu.memory_space<vmem>>, vector<8x128xf32>
    tpu.vector_store %arg6[%c0_96, %c0_97], %257 {strides = array<i32>} : memref<8x128xf32, #tpu.memory_space<vmem>>, vector<8x128xf32>,
    %c8_i32 = arith.constant 8 : i32
    %c0_i32_98 = arith.constant 0 : i32
    %260 = arith.cmpi eq, %arg1, %c0_i32_98 : i32
    %261 = arith.extui %260 : i1 to i32
    %c0_i32_99 = arith.constant 0 : i32
    %262 = arith.cmpi ne, %261, %c0_i32_99 : i32
    scf.if %262 {
      %c0_100 = arith.constant 0 : index
      %c0_101 = arith.constant 0 : index
      %263 = vector.load %arg6[%c0_100, %c0_101] : memref<8x128xf32, #tpu.memory_space<vmem>>, vector<8x128xf32>
      %c0_102 = arith.constant 0 : index
      %c0_103 = arith.constant 0 : index
      %264 = vector.load %arg4[%c0_102, %c0_103] : memref<128x128xf32, #tpu.memory_space<vmem>>, vector<128x128xf32>
      %cst_104 = arith.constant dense<0.000000e+00> : vector<8x128xf32>
      %265 = tpu.matmul %263, %264, %cst_104 {dimension_numbers = #tpu.dot_dimension_numbers<[1], [0], [0], [1], [0, 0, 1, 1], [], []>} : vector<8x128xf32>, vector<128x128xf32>, vector<8x128xf32> -> vector<8x128xf32>
      %c0_105 = arith.constant 0 : index
      %c0_106 = arith.constant 0 : index
      %266 = vector.load %arg5[%c0_105, %c0_106] : memref<8x128xf32, #tpu.memory_space<vmem>>, vector<8x128xf32>
      tpu.vector_store %arg5[%c0_105, %c0_106], %265 {strides = array<i32>} : memref<8x128xf32, #tpu.memory_space<vmem>>, vector<8x128xf32>,
    } else {
    }
    return
  }
  func.func @transform_0(%arg0: i32, %arg1: i32) -> (i32, i32, i32) {
    %c0_i32 = arith.constant 0 : i32
    %c0_i32_0 = arith.constant 0 : i32
    return %arg1, %arg0, %c0_i32 : i32, i32, i32
  }
  func.func @transform_1(%arg0: i32, %arg1: i32) -> (i32, i32) {
    %c0_i32 = arith.constant 0 : i32
    %c0_i32_0 = arith.constant 0 : i32
    %c0_i32_1 = arith.constant 0 : i32
    return %c0_i32, %c0_i32_0 : i32, i32
  }
  func.func @transform_2(%arg0: i32, %arg1: i32) -> (i32, i32) {
    %c0_i32 = arith.constant 0 : i32
    %c0_i32_0 = arith.constant 0 : i32
    %c0_i32_1 = arith.constant 0 : i32
    return %c0_i32, %c0_i32_0 : i32, i32
  }
  func.func @transform_3(%arg0: i32, %arg1: i32) -> (i32, i32) {
    %c0_i32 = arith.constant 0 : i32
    %c0_i32_0 = arith.constant 0 : i32
    return %arg0, %c0_i32 : i32, i32
  }
}

module attributes {stable_mosaic.version = 11 : i64} {
  func.func @lstm_recurrence_kernel(%arg0: i32, %arg1: i32, %arg2: memref<8x8x512xbf16, #tpu.memory_space<vmem>>, %arg3: memref<128x512xbf16, #tpu.memory_space<vmem>>, %arg4: memref<128x128xf32, #tpu.memory_space<vmem>>, %arg5: memref<8x128xf32, #tpu.memory_space<vmem>>, %arg6: memref<8x128xf32, #tpu.memory_space<vmem>>, %arg7: memref<8x128xf32, #tpu.memory_space<vmem>>) attributes {dimension_semantics = [#tpu.dimension_semantics<parallel>, #tpu.dimension_semantics<arbitrary>], iteration_bounds = array<i64: 1, 1>, scalar_prefetch = 0 : i64, scratch_operands = 2 : i64, tpu.core_type = #tpu.core_type<tc>, window_params = [{transform_indices = @transform_0, window_bounds = array<i64: 8, 8, 512>}, {pipeline_mode = #tpu.pipeline_mode<synchronous>, transform_indices = @transform_1, window_bounds = array<i64: 128, 512>}, {pipeline_mode = #tpu.pipeline_mode<synchronous>, transform_indices = @transform_2, window_bounds = array<i64: 128, 128>}, {transform_indices = @transform_3, window_bounds = array<i64: 8, 128>}]} {
    %c0_i32 = arith.constant 0 : i32
    %0 = arith.cmpi eq, %arg1, %c0_i32 : i32
    %1 = arith.extui %0 : i1 to i32
    %c0_i32_0 = arith.constant 0 : i32
    %2 = arith.cmpi ne, %1, %c0_i32_0 : i32
    scf.if %2 {
      %cst_100 = arith.constant 0.000000e+00 : f32
      %263 = vector.broadcast %cst_100 : f32 to vector<8x128xf32>
      %c0_101 = arith.constant 0 : index
      %c0_102 = arith.constant 0 : index
      %264 = vector.load %arg6[%c0_101, %c0_102] : memref<8x128xf32, #tpu.memory_space<vmem>>, vector<8x128xf32>
      tpu.vector_store %arg6[%c0_101, %c0_102], %263 {strides = array<i32>} : memref<8x128xf32, #tpu.memory_space<vmem>>, vector<8x128xf32>,
      %cst_103 = arith.constant 0.000000e+00 : f32
      %265 = vector.broadcast %cst_103 : f32 to vector<8x128xf32>
      %c0_104 = arith.constant 0 : index
      %c0_105 = arith.constant 0 : index
      %266 = vector.load %arg7[%c0_104, %c0_105] : memref<8x128xf32, #tpu.memory_space<vmem>>, vector<8x128xf32>
      tpu.vector_store %arg7[%c0_104, %c0_105], %265 {strides = array<i32>} : memref<8x128xf32, #tpu.memory_space<vmem>>, vector<8x128xf32>,
    } else {
    }
    %c0 = arith.constant 0 : index
    %c0_1 = arith.constant 0 : index
    %3 = vector.load %arg3[%c0, %c0_1] : memref<128x512xbf16, #tpu.memory_space<vmem>>, vector<128x512xbf16>
    %c0_i32_2 = arith.constant 0 : i32
    %4 = arith.index_cast %c0_i32_2 : i32 to index
    %c0_3 = arith.constant 0 : index
    %c0_4 = arith.constant 0 : index
    %5 = vector.load %arg2[%4, %c0_3, %c0_4] : memref<8x8x512xbf16, #tpu.memory_space<vmem>>, vector<1x8x512xbf16>
    %6 = vector.shape_cast %5 : vector<1x8x512xbf16> to vector<8x512xbf16>
    %7 = arith.extf %6 : vector<8x512xbf16> to vector<8x512xf32>
    %c0_5 = arith.constant 0 : index
    %c0_6 = arith.constant 0 : index
    %8 = vector.load %arg6[%c0_5, %c0_6] : memref<8x128xf32, #tpu.memory_space<vmem>>, vector<8x128xf32>
    %9 = arith.truncf %8 : vector<8x128xf32> to vector<8x128xbf16>
    %cst = arith.constant dense<0.000000e+00> : vector<8x512xf32>
    %10 = tpu.matmul %9, %3, %cst {dimension_numbers = #tpu.dot_dimension_numbers<[1], [0], [0], [1], [0, 0, 1, 1], [], []>} : vector<8x128xbf16>, vector<128x512xbf16>, vector<8x512xf32> -> vector<8x512xf32>
    %11 = arith.addf %7, %10 : vector<8x512xf32>
    %12 = arith.truncf %11 : vector<8x512xf32> to vector<8x512xbf16>
    %13 = vector.extract_strided_slice %12 {offsets = [0, 0], sizes = [8, 384], strides = [1, 1]} : vector<8x512xbf16> to vector<8x384xbf16>
    %14 = arith.negf %13 : vector<8x384xbf16>
    %15 = math.exp %14 : vector<8x384xbf16>
    %cst_7 = arith.constant 1.000000e+00 : bf16
    %16 = vector.broadcast %cst_7 : bf16 to vector<8x384xbf16>
    %17 = arith.addf %16, %15 : vector<8x384xbf16>
    %18 = arith.divf %16, %17 : vector<8x384xbf16>
    %19 = arith.extf %18 : vector<8x384xbf16> to vector<8x384xf32>
    %20 = vector.extract_strided_slice %19 {offsets = [0, 0], sizes = [8, 128], strides = [1, 1]} : vector<8x384xf32> to vector<8x128xf32>
    %21 = vector.extract_strided_slice %19 {offsets = [0, 128], sizes = [8, 128], strides = [1, 1]} : vector<8x384xf32> to vector<8x128xf32>
    %22 = vector.extract_strided_slice %19 {offsets = [0, 256], sizes = [8, 128], strides = [1, 1]} : vector<8x384xf32> to vector<8x128xf32>
    %23 = vector.extract_strided_slice %12 {offsets = [0, 384], sizes = [8, 128], strides = [1, 1]} : vector<8x512xbf16> to vector<8x128xbf16>
    %24 = math.tanh %23 : vector<8x128xbf16>
    %25 = arith.extf %24 : vector<8x128xbf16> to vector<8x128xf32>
    %c0_8 = arith.constant 0 : index
    %c0_9 = arith.constant 0 : index
    %26 = vector.load %arg7[%c0_8, %c0_9] : memref<8x128xf32, #tpu.memory_space<vmem>>, vector<8x128xf32>
    %27 = arith.mulf %21, %26 : vector<8x128xf32>
    %28 = arith.mulf %20, %25 : vector<8x128xf32>
    %29 = arith.addf %27, %28 : vector<8x128xf32>
    %30 = arith.truncf %29 : vector<8x128xf32> to vector<8x128xbf16>
    %31 = math.tanh %30 : vector<8x128xbf16>
    %32 = arith.extf %31 : vector<8x128xbf16> to vector<8x128xf32>
    %33 = arith.mulf %22, %32 : vector<8x128xf32>
    %c0_10 = arith.constant 0 : index
    %c0_11 = arith.constant 0 : index
    %34 = vector.load %arg7[%c0_10, %c0_11] : memref<8x128xf32, #tpu.memory_space<vmem>>, vector<8x128xf32>
    tpu.vector_store %arg7[%c0_10, %c0_11], %29 {strides = array<i32>} : memref<8x128xf32, #tpu.memory_space<vmem>>, vector<8x128xf32>,
    %c0_12 = arith.constant 0 : index
    %c0_13 = arith.constant 0 : index
    %35 = vector.load %arg6[%c0_12, %c0_13] : memref<8x128xf32, #tpu.memory_space<vmem>>, vector<8x128xf32>
    tpu.vector_store %arg6[%c0_12, %c0_13], %33 {strides = array<i32>} : memref<8x128xf32, #tpu.memory_space<vmem>>, vector<8x128xf32>,
    %c1_i32 = arith.constant 1 : i32
    %36 = arith.index_cast %c1_i32 : i32 to index
    %c0_14 = arith.constant 0 : index
    %c0_15 = arith.constant 0 : index
    %37 = vector.load %arg2[%36, %c0_14, %c0_15] : memref<8x8x512xbf16, #tpu.memory_space<vmem>>, vector<1x8x512xbf16>
    %38 = vector.shape_cast %37 : vector<1x8x512xbf16> to vector<8x512xbf16>
    %39 = arith.extf %38 : vector<8x512xbf16> to vector<8x512xf32>
    %c0_16 = arith.constant 0 : index
    %c0_17 = arith.constant 0 : index
    %40 = vector.load %arg6[%c0_16, %c0_17] : memref<8x128xf32, #tpu.memory_space<vmem>>, vector<8x128xf32>
    %41 = arith.truncf %40 : vector<8x128xf32> to vector<8x128xbf16>
    %cst_18 = arith.constant dense<0.000000e+00> : vector<8x512xf32>
    %42 = tpu.matmul %41, %3, %cst_18 {dimension_numbers = #tpu.dot_dimension_numbers<[1], [0], [0], [1], [0, 0, 1, 1], [], []>} : vector<8x128xbf16>, vector<128x512xbf16>, vector<8x512xf32> -> vector<8x512xf32>
    %43 = arith.addf %39, %42 : vector<8x512xf32>
    %44 = arith.truncf %43 : vector<8x512xf32> to vector<8x512xbf16>
    %45 = vector.extract_strided_slice %44 {offsets = [0, 0], sizes = [8, 384], strides = [1, 1]} : vector<8x512xbf16> to vector<8x384xbf16>
    %46 = arith.negf %45 : vector<8x384xbf16>
    %47 = math.exp %46 : vector<8x384xbf16>
    %cst_19 = arith.constant 1.000000e+00 : bf16
    %48 = vector.broadcast %cst_19 : bf16 to vector<8x384xbf16>
    %49 = arith.addf %48, %47 : vector<8x384xbf16>
    %50 = arith.divf %48, %49 : vector<8x384xbf16>
    %51 = arith.extf %50 : vector<8x384xbf16> to vector<8x384xf32>
    %52 = vector.extract_strided_slice %51 {offsets = [0, 0], sizes = [8, 128], strides = [1, 1]} : vector<8x384xf32> to vector<8x128xf32>
    %53 = vector.extract_strided_slice %51 {offsets = [0, 128], sizes = [8, 128], strides = [1, 1]} : vector<8x384xf32> to vector<8x128xf32>
    %54 = vector.extract_strided_slice %51 {offsets = [0, 256], sizes = [8, 128], strides = [1, 1]} : vector<8x384xf32> to vector<8x128xf32>
    %55 = vector.extract_strided_slice %44 {offsets = [0, 384], sizes = [8, 128], strides = [1, 1]} : vector<8x512xbf16> to vector<8x128xbf16>
    %56 = math.tanh %55 : vector<8x128xbf16>
    %57 = arith.extf %56 : vector<8x128xbf16> to vector<8x128xf32>
    %c0_20 = arith.constant 0 : index
    %c0_21 = arith.constant 0 : index
    %58 = vector.load %arg7[%c0_20, %c0_21] : memref<8x128xf32, #tpu.memory_space<vmem>>, vector<8x128xf32>
    %59 = arith.mulf %53, %58 : vector<8x128xf32>
    %60 = arith.mulf %52, %57 : vector<8x128xf32>
    %61 = arith.addf %59, %60 : vector<8x128xf32>
    %62 = arith.truncf %61 : vector<8x128xf32> to vector<8x128xbf16>
    %63 = math.tanh %62 : vector<8x128xbf16>
    %64 = arith.extf %63 : vector<8x128xbf16> to vector<8x128xf32>
    %65 = arith.mulf %54, %64 : vector<8x128xf32>
    %c0_22 = arith.constant 0 : index
    %c0_23 = arith.constant 0 : index
    %66 = vector.load %arg7[%c0_22, %c0_23] : memref<8x128xf32, #tpu.memory_space<vmem>>, vector<8x128xf32>
    tpu.vector_store %arg7[%c0_22, %c0_23], %61 {strides = array<i32>} : memref<8x128xf32, #tpu.memory_space<vmem>>, vector<8x128xf32>,
    %c0_24 = arith.constant 0 : index
    %c0_25 = arith.constant 0 : index
    %67 = vector.load %arg6[%c0_24, %c0_25] : memref<8x128xf32, #tpu.memory_space<vmem>>, vector<8x128xf32>
    tpu.vector_store %arg6[%c0_24, %c0_25], %65 {strides = array<i32>} : memref<8x128xf32, #tpu.memory_space<vmem>>, vector<8x128xf32>,
    %c2_i32 = arith.constant 2 : i32
    %68 = arith.index_cast %c2_i32 : i32 to index
    %c0_26 = arith.constant 0 : index
    %c0_27 = arith.constant 0 : index
    %69 = vector.load %arg2[%68, %c0_26, %c0_27] : memref<8x8x512xbf16, #tpu.memory_space<vmem>>, vector<1x8x512xbf16>
    %70 = vector.shape_cast %69 : vector<1x8x512xbf16> to vector<8x512xbf16>
    %71 = arith.extf %70 : vector<8x512xbf16> to vector<8x512xf32>
    %c0_28 = arith.constant 0 : index
    %c0_29 = arith.constant 0 : index
    %72 = vector.load %arg6[%c0_28, %c0_29] : memref<8x128xf32, #tpu.memory_space<vmem>>, vector<8x128xf32>
    %73 = arith.truncf %72 : vector<8x128xf32> to vector<8x128xbf16>
    %cst_30 = arith.constant dense<0.000000e+00> : vector<8x512xf32>
    %74 = tpu.matmul %73, %3, %cst_30 {dimension_numbers = #tpu.dot_dimension_numbers<[1], [0], [0], [1], [0, 0, 1, 1], [], []>} : vector<8x128xbf16>, vector<128x512xbf16>, vector<8x512xf32> -> vector<8x512xf32>
    %75 = arith.addf %71, %74 : vector<8x512xf32>
    %76 = arith.truncf %75 : vector<8x512xf32> to vector<8x512xbf16>
    %77 = vector.extract_strided_slice %76 {offsets = [0, 0], sizes = [8, 384], strides = [1, 1]} : vector<8x512xbf16> to vector<8x384xbf16>
    %78 = arith.negf %77 : vector<8x384xbf16>
    %79 = math.exp %78 : vector<8x384xbf16>
    %cst_31 = arith.constant 1.000000e+00 : bf16
    %80 = vector.broadcast %cst_31 : bf16 to vector<8x384xbf16>
    %81 = arith.addf %80, %79 : vector<8x384xbf16>
    %82 = arith.divf %80, %81 : vector<8x384xbf16>
    %83 = arith.extf %82 : vector<8x384xbf16> to vector<8x384xf32>
    %84 = vector.extract_strided_slice %83 {offsets = [0, 0], sizes = [8, 128], strides = [1, 1]} : vector<8x384xf32> to vector<8x128xf32>
    %85 = vector.extract_strided_slice %83 {offsets = [0, 128], sizes = [8, 128], strides = [1, 1]} : vector<8x384xf32> to vector<8x128xf32>
    %86 = vector.extract_strided_slice %83 {offsets = [0, 256], sizes = [8, 128], strides = [1, 1]} : vector<8x384xf32> to vector<8x128xf32>
    %87 = vector.extract_strided_slice %76 {offsets = [0, 384], sizes = [8, 128], strides = [1, 1]} : vector<8x512xbf16> to vector<8x128xbf16>
    %88 = math.tanh %87 : vector<8x128xbf16>
    %89 = arith.extf %88 : vector<8x128xbf16> to vector<8x128xf32>
    %c0_32 = arith.constant 0 : index
    %c0_33 = arith.constant 0 : index
    %90 = vector.load %arg7[%c0_32, %c0_33] : memref<8x128xf32, #tpu.memory_space<vmem>>, vector<8x128xf32>
    %91 = arith.mulf %85, %90 : vector<8x128xf32>
    %92 = arith.mulf %84, %89 : vector<8x128xf32>
    %93 = arith.addf %91, %92 : vector<8x128xf32>
    %94 = arith.truncf %93 : vector<8x128xf32> to vector<8x128xbf16>
    %95 = math.tanh %94 : vector<8x128xbf16>
    %96 = arith.extf %95 : vector<8x128xbf16> to vector<8x128xf32>
    %97 = arith.mulf %86, %96 : vector<8x128xf32>
    %c0_34 = arith.constant 0 : index
    %c0_35 = arith.constant 0 : index
    %98 = vector.load %arg7[%c0_34, %c0_35] : memref<8x128xf32, #tpu.memory_space<vmem>>, vector<8x128xf32>
    tpu.vector_store %arg7[%c0_34, %c0_35], %93 {strides = array<i32>} : memref<8x128xf32, #tpu.memory_space<vmem>>, vector<8x128xf32>,
    %c0_36 = arith.constant 0 : index
    %c0_37 = arith.constant 0 : index
    %99 = vector.load %arg6[%c0_36, %c0_37] : memref<8x128xf32, #tpu.memory_space<vmem>>, vector<8x128xf32>
    tpu.vector_store %arg6[%c0_36, %c0_37], %97 {strides = array<i32>} : memref<8x128xf32, #tpu.memory_space<vmem>>, vector<8x128xf32>,
    %c3_i32 = arith.constant 3 : i32
    %100 = arith.index_cast %c3_i32 : i32 to index
    %c0_38 = arith.constant 0 : index
    %c0_39 = arith.constant 0 : index
    %101 = vector.load %arg2[%100, %c0_38, %c0_39] : memref<8x8x512xbf16, #tpu.memory_space<vmem>>, vector<1x8x512xbf16>
    %102 = vector.shape_cast %101 : vector<1x8x512xbf16> to vector<8x512xbf16>
    %103 = arith.extf %102 : vector<8x512xbf16> to vector<8x512xf32>
    %c0_40 = arith.constant 0 : index
    %c0_41 = arith.constant 0 : index
    %104 = vector.load %arg6[%c0_40, %c0_41] : memref<8x128xf32, #tpu.memory_space<vmem>>, vector<8x128xf32>
    %105 = arith.truncf %104 : vector<8x128xf32> to vector<8x128xbf16>
    %cst_42 = arith.constant dense<0.000000e+00> : vector<8x512xf32>
    %106 = tpu.matmul %105, %3, %cst_42 {dimension_numbers = #tpu.dot_dimension_numbers<[1], [0], [0], [1], [0, 0, 1, 1], [], []>} : vector<8x128xbf16>, vector<128x512xbf16>, vector<8x512xf32> -> vector<8x512xf32>
    %107 = arith.addf %103, %106 : vector<8x512xf32>
    %108 = arith.truncf %107 : vector<8x512xf32> to vector<8x512xbf16>
    %109 = vector.extract_strided_slice %108 {offsets = [0, 0], sizes = [8, 384], strides = [1, 1]} : vector<8x512xbf16> to vector<8x384xbf16>
    %110 = arith.negf %109 : vector<8x384xbf16>
    %111 = math.exp %110 : vector<8x384xbf16>
    %cst_43 = arith.constant 1.000000e+00 : bf16
    %112 = vector.broadcast %cst_43 : bf16 to vector<8x384xbf16>
    %113 = arith.addf %112, %111 : vector<8x384xbf16>
    %114 = arith.divf %112, %113 : vector<8x384xbf16>
    %115 = arith.extf %114 : vector<8x384xbf16> to vector<8x384xf32>
    %116 = vector.extract_strided_slice %115 {offsets = [0, 0], sizes = [8, 128], strides = [1, 1]} : vector<8x384xf32> to vector<8x128xf32>
    %117 = vector.extract_strided_slice %115 {offsets = [0, 128], sizes = [8, 128], strides = [1, 1]} : vector<8x384xf32> to vector<8x128xf32>
    %118 = vector.extract_strided_slice %115 {offsets = [0, 256], sizes = [8, 128], strides = [1, 1]} : vector<8x384xf32> to vector<8x128xf32>
    %119 = vector.extract_strided_slice %108 {offsets = [0, 384], sizes = [8, 128], strides = [1, 1]} : vector<8x512xbf16> to vector<8x128xbf16>
    %120 = math.tanh %119 : vector<8x128xbf16>
    %121 = arith.extf %120 : vector<8x128xbf16> to vector<8x128xf32>
    %c0_44 = arith.constant 0 : index
    %c0_45 = arith.constant 0 : index
    %122 = vector.load %arg7[%c0_44, %c0_45] : memref<8x128xf32, #tpu.memory_space<vmem>>, vector<8x128xf32>
    %123 = arith.mulf %117, %122 : vector<8x128xf32>
    %124 = arith.mulf %116, %121 : vector<8x128xf32>
    %125 = arith.addf %123, %124 : vector<8x128xf32>
    %126 = arith.truncf %125 : vector<8x128xf32> to vector<8x128xbf16>
    %127 = math.tanh %126 : vector<8x128xbf16>
    %128 = arith.extf %127 : vector<8x128xbf16> to vector<8x128xf32>
    %129 = arith.mulf %118, %128 : vector<8x128xf32>
    %c0_46 = arith.constant 0 : index
    %c0_47 = arith.constant 0 : index
    %130 = vector.load %arg7[%c0_46, %c0_47] : memref<8x128xf32, #tpu.memory_space<vmem>>, vector<8x128xf32>
    tpu.vector_store %arg7[%c0_46, %c0_47], %125 {strides = array<i32>} : memref<8x128xf32, #tpu.memory_space<vmem>>, vector<8x128xf32>,
    %c0_48 = arith.constant 0 : index
    %c0_49 = arith.constant 0 : index
    %131 = vector.load %arg6[%c0_48, %c0_49] : memref<8x128xf32, #tpu.memory_space<vmem>>, vector<8x128xf32>
    tpu.vector_store %arg6[%c0_48, %c0_49], %129 {strides = array<i32>} : memref<8x128xf32, #tpu.memory_space<vmem>>, vector<8x128xf32>,
    %c4_i32 = arith.constant 4 : i32
    %132 = arith.index_cast %c4_i32 : i32 to index
    %c0_50 = arith.constant 0 : index
    %c0_51 = arith.constant 0 : index
    %133 = vector.load %arg2[%132, %c0_50, %c0_51] : memref<8x8x512xbf16, #tpu.memory_space<vmem>>, vector<1x8x512xbf16>
    %134 = vector.shape_cast %133 : vector<1x8x512xbf16> to vector<8x512xbf16>
    %135 = arith.extf %134 : vector<8x512xbf16> to vector<8x512xf32>
    %c0_52 = arith.constant 0 : index
    %c0_53 = arith.constant 0 : index
    %136 = vector.load %arg6[%c0_52, %c0_53] : memref<8x128xf32, #tpu.memory_space<vmem>>, vector<8x128xf32>
    %137 = arith.truncf %136 : vector<8x128xf32> to vector<8x128xbf16>
    %cst_54 = arith.constant dense<0.000000e+00> : vector<8x512xf32>
    %138 = tpu.matmul %137, %3, %cst_54 {dimension_numbers = #tpu.dot_dimension_numbers<[1], [0], [0], [1], [0, 0, 1, 1], [], []>} : vector<8x128xbf16>, vector<128x512xbf16>, vector<8x512xf32> -> vector<8x512xf32>
    %139 = arith.addf %135, %138 : vector<8x512xf32>
    %140 = arith.truncf %139 : vector<8x512xf32> to vector<8x512xbf16>
    %141 = vector.extract_strided_slice %140 {offsets = [0, 0], sizes = [8, 384], strides = [1, 1]} : vector<8x512xbf16> to vector<8x384xbf16>
    %142 = arith.negf %141 : vector<8x384xbf16>
    %143 = math.exp %142 : vector<8x384xbf16>
    %cst_55 = arith.constant 1.000000e+00 : bf16
    %144 = vector.broadcast %cst_55 : bf16 to vector<8x384xbf16>
    %145 = arith.addf %144, %143 : vector<8x384xbf16>
    %146 = arith.divf %144, %145 : vector<8x384xbf16>
    %147 = arith.extf %146 : vector<8x384xbf16> to vector<8x384xf32>
    %148 = vector.extract_strided_slice %147 {offsets = [0, 0], sizes = [8, 128], strides = [1, 1]} : vector<8x384xf32> to vector<8x128xf32>
    %149 = vector.extract_strided_slice %147 {offsets = [0, 128], sizes = [8, 128], strides = [1, 1]} : vector<8x384xf32> to vector<8x128xf32>
    %150 = vector.extract_strided_slice %147 {offsets = [0, 256], sizes = [8, 128], strides = [1, 1]} : vector<8x384xf32> to vector<8x128xf32>
    %151 = vector.extract_strided_slice %140 {offsets = [0, 384], sizes = [8, 128], strides = [1, 1]} : vector<8x512xbf16> to vector<8x128xbf16>
    %152 = math.tanh %151 : vector<8x128xbf16>
    %153 = arith.extf %152 : vector<8x128xbf16> to vector<8x128xf32>
    %c0_56 = arith.constant 0 : index
    %c0_57 = arith.constant 0 : index
    %154 = vector.load %arg7[%c0_56, %c0_57] : memref<8x128xf32, #tpu.memory_space<vmem>>, vector<8x128xf32>
    %155 = arith.mulf %149, %154 : vector<8x128xf32>
    %156 = arith.mulf %148, %153 : vector<8x128xf32>
    %157 = arith.addf %155, %156 : vector<8x128xf32>
    %158 = arith.truncf %157 : vector<8x128xf32> to vector<8x128xbf16>
    %159 = math.tanh %158 : vector<8x128xbf16>
    %160 = arith.extf %159 : vector<8x128xbf16> to vector<8x128xf32>
    %161 = arith.mulf %150, %160 : vector<8x128xf32>
    %c0_58 = arith.constant 0 : index
    %c0_59 = arith.constant 0 : index
    %162 = vector.load %arg7[%c0_58, %c0_59] : memref<8x128xf32, #tpu.memory_space<vmem>>, vector<8x128xf32>
    tpu.vector_store %arg7[%c0_58, %c0_59], %157 {strides = array<i32>} : memref<8x128xf32, #tpu.memory_space<vmem>>, vector<8x128xf32>,
    %c0_60 = arith.constant 0 : index
    %c0_61 = arith.constant 0 : index
    %163 = vector.load %arg6[%c0_60, %c0_61] : memref<8x128xf32, #tpu.memory_space<vmem>>, vector<8x128xf32>
    tpu.vector_store %arg6[%c0_60, %c0_61], %161 {strides = array<i32>} : memref<8x128xf32, #tpu.memory_space<vmem>>, vector<8x128xf32>,
    %c5_i32 = arith.constant 5 : i32
    %164 = arith.index_cast %c5_i32 : i32 to index
    %c0_62 = arith.constant 0 : index
    %c0_63 = arith.constant 0 : index
    %165 = vector.load %arg2[%164, %c0_62, %c0_63] : memref<8x8x512xbf16, #tpu.memory_space<vmem>>, vector<1x8x512xbf16>
    %166 = vector.shape_cast %165 : vector<1x8x512xbf16> to vector<8x512xbf16>
    %167 = arith.extf %166 : vector<8x512xbf16> to vector<8x512xf32>
    %c0_64 = arith.constant 0 : index
    %c0_65 = arith.constant 0 : index
    %168 = vector.load %arg6[%c0_64, %c0_65] : memref<8x128xf32, #tpu.memory_space<vmem>>, vector<8x128xf32>
    %169 = arith.truncf %168 : vector<8x128xf32> to vector<8x128xbf16>
    %cst_66 = arith.constant dense<0.000000e+00> : vector<8x512xf32>
    %170 = tpu.matmul %169, %3, %cst_66 {dimension_numbers = #tpu.dot_dimension_numbers<[1], [0], [0], [1], [0, 0, 1, 1], [], []>} : vector<8x128xbf16>, vector<128x512xbf16>, vector<8x512xf32> -> vector<8x512xf32>
    %171 = arith.addf %167, %170 : vector<8x512xf32>
    %172 = arith.truncf %171 : vector<8x512xf32> to vector<8x512xbf16>
    %173 = vector.extract_strided_slice %172 {offsets = [0, 0], sizes = [8, 384], strides = [1, 1]} : vector<8x512xbf16> to vector<8x384xbf16>
    %174 = arith.negf %173 : vector<8x384xbf16>
    %175 = math.exp %174 : vector<8x384xbf16>
    %cst_67 = arith.constant 1.000000e+00 : bf16
    %176 = vector.broadcast %cst_67 : bf16 to vector<8x384xbf16>
    %177 = arith.addf %176, %175 : vector<8x384xbf16>
    %178 = arith.divf %176, %177 : vector<8x384xbf16>
    %179 = arith.extf %178 : vector<8x384xbf16> to vector<8x384xf32>
    %180 = vector.extract_strided_slice %179 {offsets = [0, 0], sizes = [8, 128], strides = [1, 1]} : vector<8x384xf32> to vector<8x128xf32>
    %181 = vector.extract_strided_slice %179 {offsets = [0, 128], sizes = [8, 128], strides = [1, 1]} : vector<8x384xf32> to vector<8x128xf32>
    %182 = vector.extract_strided_slice %179 {offsets = [0, 256], sizes = [8, 128], strides = [1, 1]} : vector<8x384xf32> to vector<8x128xf32>
    %183 = vector.extract_strided_slice %172 {offsets = [0, 384], sizes = [8, 128], strides = [1, 1]} : vector<8x512xbf16> to vector<8x128xbf16>
    %184 = math.tanh %183 : vector<8x128xbf16>
    %185 = arith.extf %184 : vector<8x128xbf16> to vector<8x128xf32>
    %c0_68 = arith.constant 0 : index
    %c0_69 = arith.constant 0 : index
    %186 = vector.load %arg7[%c0_68, %c0_69] : memref<8x128xf32, #tpu.memory_space<vmem>>, vector<8x128xf32>
    %187 = arith.mulf %181, %186 : vector<8x128xf32>
    %188 = arith.mulf %180, %185 : vector<8x128xf32>
    %189 = arith.addf %187, %188 : vector<8x128xf32>
    %190 = arith.truncf %189 : vector<8x128xf32> to vector<8x128xbf16>
    %191 = math.tanh %190 : vector<8x128xbf16>
    %192 = arith.extf %191 : vector<8x128xbf16> to vector<8x128xf32>
    %193 = arith.mulf %182, %192 : vector<8x128xf32>
    %c0_70 = arith.constant 0 : index
    %c0_71 = arith.constant 0 : index
    %194 = vector.load %arg7[%c0_70, %c0_71] : memref<8x128xf32, #tpu.memory_space<vmem>>, vector<8x128xf32>
    tpu.vector_store %arg7[%c0_70, %c0_71], %189 {strides = array<i32>} : memref<8x128xf32, #tpu.memory_space<vmem>>, vector<8x128xf32>,
    %c0_72 = arith.constant 0 : index
    %c0_73 = arith.constant 0 : index
    %195 = vector.load %arg6[%c0_72, %c0_73] : memref<8x128xf32, #tpu.memory_space<vmem>>, vector<8x128xf32>
    tpu.vector_store %arg6[%c0_72, %c0_73], %193 {strides = array<i32>} : memref<8x128xf32, #tpu.memory_space<vmem>>, vector<8x128xf32>,
    %c6_i32 = arith.constant 6 : i32
    %196 = arith.index_cast %c6_i32 : i32 to index
    %c0_74 = arith.constant 0 : index
    %c0_75 = arith.constant 0 : index
    %197 = vector.load %arg2[%196, %c0_74, %c0_75] : memref<8x8x512xbf16, #tpu.memory_space<vmem>>, vector<1x8x512xbf16>
    %198 = vector.shape_cast %197 : vector<1x8x512xbf16> to vector<8x512xbf16>
    %199 = arith.extf %198 : vector<8x512xbf16> to vector<8x512xf32>
    %c0_76 = arith.constant 0 : index
    %c0_77 = arith.constant 0 : index
    %200 = vector.load %arg6[%c0_76, %c0_77] : memref<8x128xf32, #tpu.memory_space<vmem>>, vector<8x128xf32>
    %201 = arith.truncf %200 : vector<8x128xf32> to vector<8x128xbf16>
    %cst_78 = arith.constant dense<0.000000e+00> : vector<8x512xf32>
    %202 = tpu.matmul %201, %3, %cst_78 {dimension_numbers = #tpu.dot_dimension_numbers<[1], [0], [0], [1], [0, 0, 1, 1], [], []>} : vector<8x128xbf16>, vector<128x512xbf16>, vector<8x512xf32> -> vector<8x512xf32>
    %203 = arith.addf %199, %202 : vector<8x512xf32>
    %204 = arith.truncf %203 : vector<8x512xf32> to vector<8x512xbf16>
    %205 = vector.extract_strided_slice %204 {offsets = [0, 0], sizes = [8, 384], strides = [1, 1]} : vector<8x512xbf16> to vector<8x384xbf16>
    %206 = arith.negf %205 : vector<8x384xbf16>
    %207 = math.exp %206 : vector<8x384xbf16>
    %cst_79 = arith.constant 1.000000e+00 : bf16
    %208 = vector.broadcast %cst_79 : bf16 to vector<8x384xbf16>
    %209 = arith.addf %208, %207 : vector<8x384xbf16>
    %210 = arith.divf %208, %209 : vector<8x384xbf16>
    %211 = arith.extf %210 : vector<8x384xbf16> to vector<8x384xf32>
    %212 = vector.extract_strided_slice %211 {offsets = [0, 0], sizes = [8, 128], strides = [1, 1]} : vector<8x384xf32> to vector<8x128xf32>
    %213 = vector.extract_strided_slice %211 {offsets = [0, 128], sizes = [8, 128], strides = [1, 1]} : vector<8x384xf32> to vector<8x128xf32>
    %214 = vector.extract_strided_slice %211 {offsets = [0, 256], sizes = [8, 128], strides = [1, 1]} : vector<8x384xf32> to vector<8x128xf32>
    %215 = vector.extract_strided_slice %204 {offsets = [0, 384], sizes = [8, 128], strides = [1, 1]} : vector<8x512xbf16> to vector<8x128xbf16>
    %216 = math.tanh %215 : vector<8x128xbf16>
    %217 = arith.extf %216 : vector<8x128xbf16> to vector<8x128xf32>
    %c0_80 = arith.constant 0 : index
    %c0_81 = arith.constant 0 : index
    %218 = vector.load %arg7[%c0_80, %c0_81] : memref<8x128xf32, #tpu.memory_space<vmem>>, vector<8x128xf32>
    %219 = arith.mulf %213, %218 : vector<8x128xf32>
    %220 = arith.mulf %212, %217 : vector<8x128xf32>
    %221 = arith.addf %219, %220 : vector<8x128xf32>
    %222 = arith.truncf %221 : vector<8x128xf32> to vector<8x128xbf16>
    %223 = math.tanh %222 : vector<8x128xbf16>
    %224 = arith.extf %223 : vector<8x128xbf16> to vector<8x128xf32>
    %225 = arith.mulf %214, %224 : vector<8x128xf32>
    %c0_82 = arith.constant 0 : index
    %c0_83 = arith.constant 0 : index
    %226 = vector.load %arg7[%c0_82, %c0_83] : memref<8x128xf32, #tpu.memory_space<vmem>>, vector<8x128xf32>
    tpu.vector_store %arg7[%c0_82, %c0_83], %221 {strides = array<i32>} : memref<8x128xf32, #tpu.memory_space<vmem>>, vector<8x128xf32>,
    %c0_84 = arith.constant 0 : index
    %c0_85 = arith.constant 0 : index
    %227 = vector.load %arg6[%c0_84, %c0_85] : memref<8x128xf32, #tpu.memory_space<vmem>>, vector<8x128xf32>
    tpu.vector_store %arg6[%c0_84, %c0_85], %225 {strides = array<i32>} : memref<8x128xf32, #tpu.memory_space<vmem>>, vector<8x128xf32>,
    %c7_i32 = arith.constant 7 : i32
    %228 = arith.index_cast %c7_i32 : i32 to index
    %c0_86 = arith.constant 0 : index
    %c0_87 = arith.constant 0 : index
    %229 = vector.load %arg2[%228, %c0_86, %c0_87] : memref<8x8x512xbf16, #tpu.memory_space<vmem>>, vector<1x8x512xbf16>
    %230 = vector.shape_cast %229 : vector<1x8x512xbf16> to vector<8x512xbf16>
    %231 = arith.extf %230 : vector<8x512xbf16> to vector<8x512xf32>
    %c0_88 = arith.constant 0 : index
    %c0_89 = arith.constant 0 : index
    %232 = vector.load %arg6[%c0_88, %c0_89] : memref<8x128xf32, #tpu.memory_space<vmem>>, vector<8x128xf32>
    %233 = arith.truncf %232 : vector<8x128xf32> to vector<8x128xbf16>
    %cst_90 = arith.constant dense<0.000000e+00> : vector<8x512xf32>
    %234 = tpu.matmul %233, %3, %cst_90 {dimension_numbers = #tpu.dot_dimension_numbers<[1], [0], [0], [1], [0, 0, 1, 1], [], []>} : vector<8x128xbf16>, vector<128x512xbf16>, vector<8x512xf32> -> vector<8x512xf32>
    %235 = arith.addf %231, %234 : vector<8x512xf32>
    %236 = arith.truncf %235 : vector<8x512xf32> to vector<8x512xbf16>
    %237 = vector.extract_strided_slice %236 {offsets = [0, 0], sizes = [8, 384], strides = [1, 1]} : vector<8x512xbf16> to vector<8x384xbf16>
    %238 = arith.negf %237 : vector<8x384xbf16>
    %239 = math.exp %238 : vector<8x384xbf16>
    %cst_91 = arith.constant 1.000000e+00 : bf16
    %240 = vector.broadcast %cst_91 : bf16 to vector<8x384xbf16>
    %241 = arith.addf %240, %239 : vector<8x384xbf16>
    %242 = arith.divf %240, %241 : vector<8x384xbf16>
    %243 = arith.extf %242 : vector<8x384xbf16> to vector<8x384xf32>
    %244 = vector.extract_strided_slice %243 {offsets = [0, 0], sizes = [8, 128], strides = [1, 1]} : vector<8x384xf32> to vector<8x128xf32>
    %245 = vector.extract_strided_slice %243 {offsets = [0, 128], sizes = [8, 128], strides = [1, 1]} : vector<8x384xf32> to vector<8x128xf32>
    %246 = vector.extract_strided_slice %243 {offsets = [0, 256], sizes = [8, 128], strides = [1, 1]} : vector<8x384xf32> to vector<8x128xf32>
    %247 = vector.extract_strided_slice %236 {offsets = [0, 384], sizes = [8, 128], strides = [1, 1]} : vector<8x512xbf16> to vector<8x128xbf16>
    %248 = math.tanh %247 : vector<8x128xbf16>
    %249 = arith.extf %248 : vector<8x128xbf16> to vector<8x128xf32>
    %c0_92 = arith.constant 0 : index
    %c0_93 = arith.constant 0 : index
    %250 = vector.load %arg7[%c0_92, %c0_93] : memref<8x128xf32, #tpu.memory_space<vmem>>, vector<8x128xf32>
    %251 = arith.mulf %245, %250 : vector<8x128xf32>
    %252 = arith.mulf %244, %249 : vector<8x128xf32>
    %253 = arith.addf %251, %252 : vector<8x128xf32>
    %254 = arith.truncf %253 : vector<8x128xf32> to vector<8x128xbf16>
    %255 = math.tanh %254 : vector<8x128xbf16>
    %256 = arith.extf %255 : vector<8x128xbf16> to vector<8x128xf32>
    %257 = arith.mulf %246, %256 : vector<8x128xf32>
    %c0_94 = arith.constant 0 : index
    %c0_95 = arith.constant 0 : index
    %258 = vector.load %arg7[%c0_94, %c0_95] : memref<8x128xf32, #tpu.memory_space<vmem>>, vector<8x128xf32>
    tpu.vector_store %arg7[%c0_94, %c0_95], %253 {strides = array<i32>} : memref<8x128xf32, #tpu.memory_space<vmem>>, vector<8x128xf32>,
    %c0_96 = arith.constant 0 : index
    %c0_97 = arith.constant 0 : index
    %259 = vector.load %arg6[%c0_96, %c0_97] : memref<8x128xf32, #tpu.memory_space<vmem>>, vector<8x128xf32>
    tpu.vector_store %arg6[%c0_96, %c0_97], %257 {strides = array<i32>} : memref<8x128xf32, #tpu.memory_space<vmem>>, vector<8x128xf32>,
    %c8_i32 = arith.constant 8 : i32
    %c0_i32_98 = arith.constant 0 : i32
    %260 = arith.cmpi eq, %arg1, %c0_i32_98 : i32
    %261 = arith.extui %260 : i1 to i32
    %c0_i32_99 = arith.constant 0 : i32
    %262 = arith.cmpi ne, %261, %c0_i32_99 : i32
    scf.if %262 {
      %c0_100 = arith.constant 0 : index
      %c0_101 = arith.constant 0 : index
      %263 = vector.load %arg6[%c0_100, %c0_101] : memref<8x128xf32, #tpu.memory_space<vmem>>, vector<8x128xf32>
      %c0_102 = arith.constant 0 : index
      %c0_103 = arith.constant 0 : index
      %264 = vector.load %arg4[%c0_102, %c0_103] : memref<128x128xf32, #tpu.memory_space<vmem>>, vector<128x128xf32>
      %cst_104 = arith.constant dense<0.000000e+00> : vector<8x128xf32>
      %265 = tpu.matmul %263, %264, %cst_104 {dimension_numbers = #tpu.dot_dimension_numbers<[1], [0], [0], [1], [0, 0, 1, 1], [], []>} : vector<8x128xf32>, vector<128x128xf32>, vector<8x128xf32> -> vector<8x128xf32>
      %c0_105 = arith.constant 0 : index
      %c0_106 = arith.constant 0 : index
      %266 = vector.load %arg5[%c0_105, %c0_106] : memref<8x128xf32, #tpu.memory_space<vmem>>, vector<8x128xf32>
      tpu.vector_store %arg5[%c0_105, %c0_106], %265 {strides = array<i32>} : memref<8x128xf32, #tpu.memory_space<vmem>>, vector<8x128xf32>,
    } else {
    }
    return
  }
  func.func @transform_0(%arg0: i32, %arg1: i32) -> (i32, i32, i32) {
    %c0_i32 = arith.constant 0 : i32
    %c0_i32_0 = arith.constant 0 : i32
    return %arg1, %arg0, %c0_i32 : i32, i32, i32
  }
  func.func @transform_1(%arg0: i32, %arg1: i32) -> (i32, i32) {
    %c0_i32 = arith.constant 0 : i32
    %c0_i32_0 = arith.constant 0 : i32
    %c0_i32_1 = arith.constant 0 : i32
    return %c0_i32, %c0_i32_0 : i32, i32
  }
  func.func @transform_2(%arg0: i32, %arg1: i32) -> (i32, i32) {
    %c0_i32 = arith.constant 0 : i32
    %c0_i32_0 = arith.constant 0 : i32
    %c0_i32_1 = arith.constant 0 : i32
    return %c0_i32, %c0_i32_0 : i32, i32
  }
  func.func @transform_3(%arg0: i32, %arg1: i32) -> (i32, i32) {
    %c0_i32 = arith.constant 0 : i32
    %c0_i32_0 = arith.constant 0 : i32
    return %arg0, %c0_i32 : i32, i32
  }
}

</mosaic_0001>

<bundles_post_ra>
// kernel: tpu_custom_call.1
= control target key start
LH: loop header
LB: loop body
LE: loop exit
PB: predicated region body
PF: predicated region fallthrough
CT: control target
= control target key end

     0   :  { %8 = vsyncpa [#allocation5], 0  ;;  %s2162_s0 = inlined_call_operand.hbm [shape: bf16[8,8,512], index: 0, kind: input, shape index: {}]   ;;  %s2163_s1 = inlined_call_operand.hbm [shape: bf16[128,512], index: 1, kind: input, shape index: {}]   ;;  %s2164_s2 = inlined_call_operand.hbm [shape: f32[128,128], index: 2, kind: input, shape index: {}]   ;;  %s2165_s3 = inlined_call_operand.hbm [shape: f32[8,128], index: 3, kind: output, shape index: {}]  }
   0x1   :  { %9 = vsyncpa [#allocation8], 0 }
   0x2   :  { %10 = vsyncpa [#allocation6], 0  ;;  %s28_s14 = sshll.u32 %s2163_s1, 4  ;;  %s1729_s15 = smov [#allocation7]   ;;  %s29_s14 = int_to_ptr.hbm [resolvable:$true] %s28_s14 }
   0x3   :  { %s30_s16 = sshll.u32 %s1729_s15, 4  ;;  %s15_s19 = sshll.u32 %s2162_s0, 4  ;;  %s31_s16 = int_to_ptr.vmem [resolvable:$true] %s30_s16  ;;  %s16_s19 = int_to_ptr.hbm [resolvable:$true] %s15_s19 }
   0x4   :  { %s1730_s20 = smov 256   ;;  %s1731_s21 = smov 16  }
   0x5   :  { %36 = dma.hbm_to_vmem [thread:$0]  %s29_s14, 4096, %s31_s16, [#allocation8], %s1730_s20, %s1730_s20, %s1731_s21  }
   0x6   :  { %s1732_s22 = smov [#allocation4]   ;;  %s41_s26 = sshll.u32 %s2164_s2, 4  ;;  %s42_s26 = int_to_ptr.hbm [resolvable:$true] %s41_s26 }
   0x7   :  { %s17_s23 = sshll.u32 %s1732_s22, 4  ;;  %s1733_s1 = smov [#allocation9]   ;;  %s18_s23 = int_to_ptr.vmem [resolvable:$true] %s17_s23 }
   0x8   :  { %23 = dma.hbm_to_vmem [thread:$0]  %s16_s19, 2048, %s18_s23, [#allocation5], %s1730_s20, %s1730_s20, %s1731_s21  }
   0x9   :  { %s43_s27 = sshll.u32 %s1733_s1, 4  ;;  %s1734_s28 = smov 128   ;;  %s44_s27 = int_to_ptr.vmem [resolvable:$true] %s43_s27 }
   0xa   :  { %s1735_s29 = smov 8  }
   0xb   :  { %49 = dma.hbm_to_vmem [thread:$0]  %s42_s26, 2048, %s44_s27, [#allocation8], %s1734_s28, %s1734_s28, %s1735_s29  }
   0xc   :  { %1723 = dma.done.wait [#allocation5], 2048  }
   0xd   :  { %1724 = vsyncadd [#allocation5], 4294965248 }
   0xe   :  { %1725 = dma.done.wait [#allocation8], 6144  }
   0xf   :  { %1726 = vsyncadd [#allocation8], 4294961152  ;;  %v1427_v0 = vld [vmem:[#allocation7 + $0xe0] sm:$0xf]  ;;  %v1471_v1 = vld [vmem:[#allocation7 + $0xec] sm:$0xf0] }
  0x10   :  { %v1469_v2 = vld [vmem:[#allocation7 + $0xe4] sm:$0xf]  ;;  %v1768_v3 = vor.u32 %v1471_v1, %v1427_v0  ;;  %v1429_v4 = vld [vmem:[#allocation7 + $0xf0] sm:$0xf0]  ;;  %v1411_v5 = vld [vmem:[#allocation7 + $0xc0] sm:$0xf] }
  0x11   :  { %v1467_v6 = vld [vmem:[#allocation7 + $0xcc] sm:$0xf0]  ;;  %v1770_v7 = vor.u32 %v1469_v2, %v1429_v4  ;;  %v1465_v8 = vld [vmem:[#allocation7 + $0xc4] sm:$0xf]  ;;  %v1413_v9 = vld [vmem:[#allocation7 + $0xd0] sm:$0xf0] }
  0x12   :  { %v1435_v10 = vld [vmem:[#allocation7 + $0xe8] sm:$0xf]  ;;  %269 = vmatpush.bf16.msra.mxu0 %v1768_v3  ;;  %v1773_v11 = vor.u32 %v1467_v6, %v1411_v5  ;;  %v1472_v12 = vld [vmem:[#allocation7 + $0xf4] sm:$0xf0]  ;;  %v1470_v13 = vld [vmem:[#allocation7 + $0xec] sm:$0xf]  ;;  %v1776_v15 = vor.u32 %v1465_v8, %v1413_v9 }
  0x13   :  { %v1437_v14 = vld [vmem:[#allocation7 + $0xf8] sm:$0xf0]  ;;  %282 = vmatpush.bf16.msra.mxu1 %v1770_v7  ;;  %v1778_v16 = vor.u32 %v1472_v12, %v1435_v10  ;;  %v1395_v18 = vld [vmem:[#allocation7 + $0xa0] sm:$0xf]  ;;  %v1463_v19 = vld [vmem:[#allocation7 + $0xac] sm:$0xf0] }
  0x14   :  { %v1780_v17 = vor.u32 %v1470_v13, %v1437_v14  ;;  %v1461_v20 = vld [vmem:[#allocation7 + $0xa4] sm:$0xf]  ;;  %v1397_v21 = vld [vmem:[#allocation7 + $0xb0] sm:$0xf0]  ;;  %v1419_v22 = vld [vmem:[#allocation7 + $0xc8] sm:$0xf]  ;;  %v1787_v27 = vor.u32 %v1463_v19, %v1395_v18 }
  0x15   :  { %v1468_v23 = vld [vmem:[#allocation7 + $0xd4] sm:$0xf0]  ;;  %295 = vmatpush.bf16.msra.mxu2 %v1778_v16  ;;  %v1466_v25 = vld [vmem:[#allocation7 + $0xcc] sm:$0xf]  ;;  %v1421_v26 = vld [vmem:[#allocation7 + $0xd8] sm:$0xf0]  ;;  %v1792_v31 = vor.u32 %v1461_v20, %v1397_v21 }
  0x16   :  { %308 = vmatpush.bf16.msra.mxu3 %v1780_v17  ;;  %v1784_v24 = vor.u32 %v1468_v23, %v1419_v22  ;;  %270 = vmatpush.bf16.msra.mxu0 %v1773_v11  ;;  %v1789_v28 = vor.u32 %v1466_v25, %v1421_v26  ;;  %v1379_v29 = vld [vmem:[#allocation7 + $0x80] sm:$0xf]  ;;  %v1459_v30 = vld [vmem:[#allocation7 + $0x8c] sm:$0xf0]  ;;  %v1403_v32 = vld [vmem:[#allocation7 + $0xa8] sm:$0xf] }
  0x17   :  { %283 = vmatpush.bf16.msra.mxu1 %v1776_v15  ;;  %v1464_v33 = vld [vmem:[#allocation7 + $0xb4] sm:$0xf0]  ;;  %v1462_v34 = vld [vmem:[#allocation7 + $0xac] sm:$0xf]  ;;  %v1457_v35 = vld [vmem:[#allocation7 + $0x84] sm:$0xf]  ;;  %v1801_v41 = vor.u32 %v1459_v30, %v1379_v29 }
  0x18   :  { %v1381_v36 = vld [vmem:[#allocation7 + $0x90] sm:$0xf0]  ;;  %v1405_v37 = vld [vmem:[#allocation7 + $0xb8] sm:$0xf0]  ;;  %v1796_v38 = vor.u32 %v1464_v33, %v1403_v32  ;;  %v1387_v40 = vld [vmem:[#allocation7 + $0x88] sm:$0xf] }
  0x19   :  { %296 = vmatpush.bf16.msra.mxu2 %v1784_v24  ;;  %v1798_v39 = vor.u32 %v1462_v34, %v1405_v37  ;;  %v1460_v42 = vld [vmem:[#allocation7 + $0x94] sm:$0xf0]  ;;  %v1458_v43 = vld [vmem:[#allocation7 + $0x8c] sm:$0xf]  ;;  %v1389_v44 = vld [vmem:[#allocation7 + $0x98] sm:$0xf0]  ;;  %v1804_v45 = vor.u32 %v1457_v35, %v1381_v36 }
  0x1a   :  { %309 = vmatpush.bf16.msra.mxu3 %v1789_v28  ;;  %271 = vmatpush.bf16.msra.mxu0 %v1787_v27  ;;  %v1363_v46 = vld [vmem:[#allocation7 + $0x60] sm:$0xf]  ;;  %v1455_v47 = vld [vmem:[#allocation7 + $0x6c] sm:$0xf0]  ;;  %v1453_v48 = vld [vmem:[#allocation7 + $0x64] sm:$0xf]  ;;  %v1808_v50 = vor.u32 %v1460_v42, %v1387_v40  ;;  %v1810_v51 = vor.u32 %v1458_v43, %v1389_v44 }
  0x1b   :  { %284 = vmatpush.bf16.msra.mxu1 %v1792_v31  ;;  %v1365_v49 = vld [vmem:[#allocation7 + $0x70] sm:$0xf0]  ;;  %v1371_v52 = vld [vmem:[#allocation7 + $0x68] sm:$0xf]  ;;  %v1813_v53 = vor.u32 %v1455_v47, %v1363_v46  ;;  %v1456_v54 = vld [vmem:[#allocation7 + $0x74] sm:$0xf0] }
  0x1c   :  { %v1454_v55 = vld [vmem:[#allocation7 + $0x6c] sm:$0xf]  ;;  %v1373_v56 = vld [vmem:[#allocation7 + $0x78] sm:$0xf0]  ;;  %v1816_v57 = vor.u32 %v1453_v48, %v1365_v49  ;;  %v1347_v58 = vld [vmem:[#allocation7 + $0x40] sm:$0xf]  ;;  %v1820_v62 = vor.u32 %v1456_v54, %v1371_v52 }
  0x1d   :  { %297 = vmatpush.bf16.msra.mxu2 %v1796_v38  ;;  %v1451_v59 = vld [vmem:[#allocation7 + $0x4c] sm:$0xf0]  ;;  %v1449_v60 = vld [vmem:[#allocation7 + $0x44] sm:$0xf]  ;;  %v1349_v61 = vld [vmem:[#allocation7 + $0x50] sm:$0xf0]  ;;  %v1822_v63 = vor.u32 %v1454_v55, %v1373_v56 }
  0x1e   :  { %310 = vmatpush.bf16.msra.mxu3 %v1798_v39  ;;  %272 = vmatpush.bf16.msra.mxu0 %v1801_v41  ;;  %v1355_v0 = vld [vmem:[#allocation7 + $0x48] sm:$0xf]  ;;  %v1825_v1 = vor.u32 %v1451_v59, %v1347_v58  ;;  %v1452_v2 = vld [vmem:[#allocation7 + $0x54] sm:$0xf0]  ;;  %v1450_v4 = vld [vmem:[#allocation7 + $0x4c] sm:$0xf]  ;;  %v1828_v6 = vor.u32 %v1449_v60, %v1349_v61 }
  0x1f   :  { %285 = vmatpush.bf16.msra.mxu1 %v1804_v45  ;;  %v1357_v5 = vld [vmem:[#allocation7 + $0x58] sm:$0xf0]  ;;  %v1331_v8 = vld [vmem:[#allocation7 + $0x20] sm:$0xf]  ;;  %v1447_v9 = vld [vmem:[#allocation7 + $0x2c] sm:$0xf0]  ;;  %v1832_v13 = vor.u32 %v1452_v2, %v1355_v0 }
  0x20   :  { %v1445_v10 = vld [vmem:[#allocation7 + $0x24] sm:$0xf]  ;;  %v1333_v12 = vld [vmem:[#allocation7 + $0x30] sm:$0xf0]  ;;  %v1834_v14 = vor.u32 %v1450_v4, %v1357_v5  ;;  %v1339_v18 = vld [vmem:[#allocation7 + $0x28] sm:$0xf]  ;;  %v1837_v19 = vor.u32 %v1447_v9, %v1331_v8 }
  0x21   :  { %298 = vmatpush.bf16.msra.mxu2 %v1808_v50  ;;  %v1448_v20 = vld [vmem:[#allocation7 + $0x34] sm:$0xf0]  ;;  %v1446_v21 = vld [vmem:[#allocation7 + $0x2c] sm:$0xf]  ;;  %v1341_v22 = vld [vmem:[#allocation7 + $0x38] sm:$0xf0]  ;;  %v1840_v23 = vor.u32 %v1445_v10, %v1333_v12 }
  0x22   :  { %311 = vmatpush.bf16.msra.mxu3 %v1810_v51  ;;  %273 = vmatpush.bf16.msra.mxu0 %v1813_v53  ;;  %v1315_v25 = vld [vmem:[#allocation7] sm:$0xf]  ;;  %v1443_v26 = vld [vmem:[#allocation7 + $0xc] sm:$0xf0]  ;;  %v1441_v29 = vld [vmem:[#allocation7 + $0x4] sm:$0xf]  ;;  %v1844_v32 = vor.u32 %v1448_v20, %v1339_v18  ;;  %v1846_v33 = vor.u32 %v1446_v21, %v1341_v22 }
  0x23   :  { %286 = vmatpush.bf16.msra.mxu1 %v1816_v57  ;;  %v1317_v30 = vld [vmem:[#allocation7 + $0x10] sm:$0xf0]  ;;  %v1849_v34 = vor.u32 %v1443_v26, %v1315_v25  ;;  %v1323_v35 = vld [vmem:[#allocation7 + $0x8] sm:$0xf]  ;;  %v1444_v36 = vld [vmem:[#allocation7 + $0x14] sm:$0xf0] }
  0x24   :  { %v1852_v37 = vor.u32 %v1441_v29, %v1317_v30  ;;  %v1442_v40 = vld [vmem:[#allocation7 + $0xc] sm:$0xf]  ;;  %v1325_v42 = vld [vmem:[#allocation7 + $0x18] sm:$0xf0]  ;;  %v1856_v43 = vor.u32 %v1444_v36, %v1323_v35  ;;  %v1736_v46 = vmov 0.0|0.0   ;;  %v101_v47 = vld [vmem:[#allocation4] sm:$0xff] }
  0x25   :  { %299 = vmatpush.bf16.msra.mxu2 %v1820_v62  ;;  %v1859_v44 = vor.u32 %v1442_v40, %v1325_v42  ;;  %v103_v48 = vunpack.c.l.bf16 %v101_v47  ;;  %v104_v49 = vunpack.c.h.bf16 %v101_v47  ;;  %v102_v58 = vld [vmem:[#allocation4 + $0x8] sm:$0xff]  ;;  %s1738_s0 = smov [#allocation10]   ;;  %s1302_s5 = sshll.u32 %s2165_s3, 4  ;;  %s1303_s5 = int_to_ptr.hbm [resolvable:$true] %s1302_s5 }
  0x26   :  { %312 = vmatpush.bf16.msra.mxu3 %v1822_v63  ;;  %274 = vmatpush.bf16.msra.mxu0 %v1825_v1  ;;  %v105_v61 = vunpack.c.l.bf16 %v102_v58  ;;  %v106_v0 = vunpack.c.h.bf16 %v102_v58  ;;  %s1300_s2 = sshll.u32 %s1738_s0, 4  ;;  %s1301_s2 = int_to_ptr.vmem [resolvable:$true] %s1300_s2 }
  0x27   :  { %287 = vmatpush.bf16.msra.mxu1 %v1828_v6 }
  0x29   :  { %300 = vmatpush.bf16.msra.mxu2 %v1832_v13 }
  0x2a   :  { %313 = vmatpush.bf16.msra.mxu3 %v1834_v14  ;;  %275 = vmatpush.bf16.msra.mxu0 %v1837_v19 }
  0x2b   :  { %288 = vmatpush.bf16.msra.mxu1 %v1840_v23 }
  0x2d   :  { %301 = vmatpush.bf16.msra.mxu2 %v1844_v32 }
  0x2e   :  { %314 = vmatpush.bf16.msra.mxu3 %v1846_v33  ;;  %276 = vmatpush.bf16.msra.mxu0 %v1849_v34 }
  0x2f   :  { %289 = vmatpush.bf16.msra.mxu1 %v1852_v37 }
  0x31   :  { %277 = vmatmul.bf16.vlgmr.msra.gmra.mxu0 %v1736_v46  ;;  %302 = vmatpush.bf16.msra.mxu2 %v1856_v43 }
  0x32   :  { %395 = vmatpush.bf16.msrb.mxu0 %v1768_v3  ;;  %290 = vmatmul.bf16.vlgmr.msra.gmra.mxu1 %v1736_v46 }
  0x33   :  { %408 = vmatpush.bf16.msrb.mxu1 %v1770_v7  ;;  %315 = vmatpush.bf16.msra.mxu3 %v1859_v44 }
  0x34   :  { %303 = vmatmul.bf16.vlgmr.msra.gmra.mxu2 %v1736_v46 }
  0x35   :  { %421 = vmatpush.bf16.msrb.mxu2 %v1778_v16 }
  0x36   :  { %396 = vmatpush.bf16.msrb.mxu0 %v1773_v11  ;;  %316 = vmatmul.bf16.vlgmr.msra.gmra.mxu3 %v1736_v46 }
  0x37   :  { %434 = vmatpush.bf16.msrb.mxu3 %v1780_v17  ;;  %409 = vmatpush.bf16.msrb.mxu1 %v1776_v15 }
  0x39   :  { %422 = vmatpush.bf16.msrb.mxu2 %v1784_v24 }
  0x3a   :  { %397 = vmatpush.bf16.msrb.mxu0 %v1787_v27 }
  0x3b   :  { %435 = vmatpush.bf16.msrb.mxu3 %v1789_v28  ;;  %410 = vmatpush.bf16.msrb.mxu1 %v1792_v31 }
  0x3d   :  { %423 = vmatpush.bf16.msrb.mxu2 %v1796_v38 }
  0x3e   :  { %398 = vmatpush.bf16.msrb.mxu0 %v1801_v41 }
  0x3f   :  { %436 = vmatpush.bf16.msrb.mxu3 %v1798_v39  ;;  %411 = vmatpush.bf16.msrb.mxu1 %v1804_v45 }
  0x41   :  { %424 = vmatpush.bf16.msrb.mxu2 %v1808_v50 }
  0x42   :  { %399 = vmatpush.bf16.msrb.mxu0 %v1813_v53 }
  0x43   :  { %437 = vmatpush.bf16.msrb.mxu3 %v1810_v51  ;;  %412 = vmatpush.bf16.msrb.mxu1 %v1816_v57 }
  0x45   :  { %425 = vmatpush.bf16.msrb.mxu2 %v1820_v62 }
  0x46   :  { %400 = vmatpush.bf16.msrb.mxu0 %v1825_v1 }
  0x47   :  { %438 = vmatpush.bf16.msrb.mxu3 %v1822_v63  ;;  %413 = vmatpush.bf16.msrb.mxu1 %v1828_v6 }
  0x49   :  { %426 = vmatpush.bf16.msrb.mxu2 %v1832_v13 }
  0x4a   :  { %401 = vmatpush.bf16.msrb.mxu0 %v1837_v19 }
  0x4b   :  { %439 = vmatpush.bf16.msrb.mxu3 %v1834_v14  ;;  %414 = vmatpush.bf16.msrb.mxu1 %v1840_v23 }
  0x4d   :  { %427 = vmatpush.bf16.msrb.mxu2 %v1844_v32 }
  0x4e   :  { %402 = vmatpush.bf16.msrb.mxu0 %v1849_v34 }
  0x4f   :  { %440 = vmatpush.bf16.msrb.mxu3 %v1846_v33  ;;  %415 = vmatpush.bf16.msrb.mxu1 %v1852_v37 }
  0x51   :  { %428 = vmatpush.bf16.msrb.mxu2 %v1856_v43 }
  0x52   :  { %519 = vmatpush.bf16.msra.mxu0 %v1768_v3 }
  0x53   :  { %532 = vmatpush.bf16.msra.mxu1 %v1770_v7  ;;  %441 = vmatpush.bf16.msrb.mxu3 %v1859_v44 }
  0x55   :  { %545 = vmatpush.bf16.msra.mxu2 %v1778_v16 }
  0x56   :  { %520 = vmatpush.bf16.msra.mxu0 %v1773_v11 }
  0x57   :  { %558 = vmatpush.bf16.msra.mxu3 %v1780_v17  ;;  %533 = vmatpush.bf16.msra.mxu1 %v1776_v15 }
  0x59   :  { %546 = vmatpush.bf16.msra.mxu2 %v1784_v24 }
  0x5a   :  { %521 = vmatpush.bf16.msra.mxu0 %v1787_v27 }
  0x5b   :  { %559 = vmatpush.bf16.msra.mxu3 %v1789_v28  ;;  %534 = vmatpush.bf16.msra.mxu1 %v1792_v31 }
  0x5d   :  { %547 = vmatpush.bf16.msra.mxu2 %v1796_v38 }
  0x5e   :  { %522 = vmatpush.bf16.msra.mxu0 %v1801_v41 }
  0x5f   :  { %560 = vmatpush.bf16.msra.mxu3 %v1798_v39  ;;  %535 = vmatpush.bf16.msra.mxu1 %v1804_v45 }
  0x61   :  { %548 = vmatpush.bf16.msra.mxu2 %v1808_v50 }
  0x62   :  { %523 = vmatpush.bf16.msra.mxu0 %v1813_v53 }
  0x63   :  { %561 = vmatpush.bf16.msra.mxu3 %v1810_v51  ;;  %536 = vmatpush.bf16.msra.mxu1 %v1816_v57 }
  0x65   :  { %549 = vmatpush.bf16.msra.mxu2 %v1820_v62 }
  0x66   :  { %524 = vmatpush.bf16.msra.mxu0 %v1825_v1 }
  0x67   :  { %562 = vmatpush.bf16.msra.mxu3 %v1822_v63  ;;  %537 = vmatpush.bf16.msra.mxu1 %v1828_v6 }
  0x69   :  { %550 = vmatpush.bf16.msra.mxu2 %v1832_v13 }
  0x6a   :  { %525 = vmatpush.bf16.msra.mxu0 %v1837_v19 }
  0x6b   :  { %563 = vmatpush.bf16.msra.mxu3 %v1834_v14  ;;  %538 = vmatpush.bf16.msra.mxu1 %v1840_v23 }
  0x6d   :  { %551 = vmatpush.bf16.msra.mxu2 %v1844_v32 }
  0x6e   :  { %526 = vmatpush.bf16.msra.mxu0 %v1849_v34 }
  0x6f   :  { %564 = vmatpush.bf16.msra.mxu3 %v1846_v33  ;;  %539 = vmatpush.bf16.msra.mxu1 %v1852_v37 }
  0x71   :  { %552 = vmatpush.bf16.msra.mxu2 %v1856_v43 }
  0x73   :  { %565 = vmatpush.bf16.msra.mxu3 %v1859_v44 }
  0xae   :  { %v278_v52 = vpop.f32.mrf.mxu0 }
  0xaf   :  { %v321_v54 = vadd.f32 %v278_v52, %v103_v48  ;;  %v291_v55 = vpop.f32.mrf.mxu1 }
  0xb0   :  { %v322_v56 = vadd.f32 %v291_v55, %v104_v49 }
  0xb2   :  { %v325_v59 = vpack.c.bf16 %v322_v56, %v321_v54 }
  0xb4   :  { %v327_v60 = vxor.u32 2147516416, %v325_v59 }
  0xb6   :  { %v329_v2 = vunpack.c.l.bf16 %v327_v60  ;;  %v330_v4 = vunpack.c.h.bf16 %v327_v60  ;;  %v280_v5 = vpop.f32.mrf.mxu0 }
  0xb7   :  { %v293_v8 = vpop.f32.mrf.mxu1  ;;  %v304_v9 = vpop.f32.mrf.mxu2 }
  0xb8   :  { %v332_v10 = vmul.f32 1.442695, %v329_v2  ;;  %v334_v12 = vmul.f32 1.442695, %v330_v4  ;;  %v323_v18 = vadd.f32 %v304_v9, %v105_v61  ;;  %v1737_v2 = vmov 1065369472  }
  0xb9   :  { %v317_v20 = vpop.f32.mrf.mxu3  ;;  %v1928_v4 = vunpack.c.h.bf16 %v1737_v2  ;;  %v1930_v8 = vunpack.c.l.bf16 %v1737_v2  ;;  %v387_v2 = vld [vmem:[#allocation4 + $0x10] sm:$0xff] }
  0xba   :  { %v324_v21 = vadd.f32 %v317_v20, %v106_v0  ;;  %1483 = vpow2.f32 %v332_v10 }
  0xbb   :  { %1485 = vpow2.f32 %v334_v12 }
  0xbc   :  { %v326_v22 = vpack.c.bf16 %v324_v21, %v323_v18 }
  0xbe   :  { %v328_v25 = vxor.u32 2147516416, %v326_v22  ;;  %v368_v46 = vrot.slane %v326_v22, 4 }
  0xbf   :  { %v306_v29 = vpop.f32.mrf.mxu2 }
  0xc0   :  { %v331_v26 = vunpack.c.l.bf16 %v328_v25  ;;  %v1484_v30 = vpop.eup %1483  ;;  %v370_v54 = vunpack.c.l.bf16 %v368_v46 }
  0xc1   :  { %v319_v35 = vpop.f32.mrf.mxu3  ;;  %v1486_v36 = vpop.eup %1485 }
  0xc2   :  { %v336_v40 = vmul.f32 1.442695, %v331_v26  ;;  %v338_v42 = vpack.c.bf16 %v1486_v36, %v1484_v30 }
  0xc4   :  { %1487 = vpow2.f32 %v336_v40  ;;  %v340_v47 = vunpack.c.l.bf16 %v338_v42  ;;  %v341_v48 = vunpack.c.h.bf16 %v338_v42 }
  0xc5   :  { %1489 = vtanh.f32 %v370_v54 }
  0xc6   :  { %v343_v49 = vadd.f32 1.0, %v340_v47  ;;  %v344_v52 = vadd.f32 1.0, %v341_v48 }
  0xc8   :  { %v346_v55 = vpack.c.bf16 %v344_v52, %v343_v49 }
  0xca   :  { %v1488_v56 = vpop.eup %1487  ;;  %v350_v58 = vunpack.c.h.bf16 %v346_v55  ;;  %v351_v59 = vunpack.c.l.bf16 %v346_v55 }
  0xcb   :  { %v339_v60 = vpack.c.bf16 %v1488_v56, %v1488_v56  ;;  %v1490_v9 = vpop.eup %1489 }
  0xcc   :  { %1491 = vrcp.f32 %v350_v58  ;;  %v372_v25 = vpack.c.bf16 %v1490_v9, %v1490_v9  ;;  %v390_v9 = vunpack.c.h.bf16 %v387_v2 }
  0xcd   :  { %v342_v61 = vunpack.c.l.bf16 %v339_v60  ;;  %1493 = vrcp.f32 %v351_v59 }
  0xce   :  { %v373_v35 = vunpack.c.l.bf16 %v372_v25 }
  0xcf   :  { %v345_v0 = vadd.f32 1.0, %v342_v61 }
  0xd1   :  { %v347_v5 = vpack.c.bf16 %v345_v0, %v345_v0 }
  0xd2   :  { %v1492_v10 = vpop.eup %1491 }
  0xd3   :  { %v1494_v12 = vpop.eup %1493  ;;  %v353_v18 = vmul.f32 %v1492_v10, %v1928_v4  ;;  %v357_v20 = vunpack.c.h.bf16 %v347_v5  ;;  %v358_v22 = vunpack.c.l.bf16 %v347_v5  ;;  %v389_v5 = vunpack.c.l.bf16 %v387_v2 }
  0xd4   :  { %v355_v21 = vmul.f32 %v1494_v12, %v1930_v8 }
  0xd5   :  { %1495 = vrcp.f32 %v357_v20 }
  0xd6   :  { %v356_v26 = vpack.c.bf16 %v353_v18, %v355_v21  ;;  %1497 = vrcp.f32 %v358_v22  ;;  %v388_v21 = vld [vmem:[#allocation4 + $0x18] sm:$0xff] }
  0xd7   :  { %v391_v25 = vunpack.c.l.bf16 %v388_v21 }
  0xd8   :  { %v364_v29 = vunpack.c.l.bf16 %v356_v26  ;;  %v365_v30 = vunpack.c.h.bf16 %v356_v26  ;;  %v392_v26 = vunpack.c.h.bf16 %v388_v21 }
  0xda   :  { %v375_v36 = vmul.f32 0.0, %v365_v30  ;;  %v376_v40 = vmul.f32 %v373_v35, %v364_v29 }
  0xdb   :  { %v1496_v46 = vpop.eup %1495 }
  0xdc   :  { %v1934_v42 = vadd.f32 %v376_v40, %v375_v36  ;;  %v1498_v47 = vpop.eup %1497  ;;  %v360_v52 = vmul.f32 %v1496_v46, %v1928_v4 }
  0xdd   :  { %v362_v54 = vmul.f32 %v1498_v47, %v1930_v8 }
  0xde   :  { %v378_v48 = vpack.c.bf16 %v1934_v42, %v1934_v42 }
  0xdf   :  { %v363_v55 = vpack.c.bf16 %v360_v52, %v362_v54 }
  0xe0   :  { %v379_v49 = vunpack.c.l.bf16 %v378_v48 }
  0xe1   :  { %v366_v58 = vunpack.c.l.bf16 %v363_v55 }
  0xe2   :  { %1499 = vtanh.f32 %v379_v49 }
  0xe8   :  { %v1500_v56 = vpop.eup %1499 }
  0xe9   :  { %v381_v59 = vpack.c.bf16 %v1500_v56, %v1500_v56 }
  0xeb   :  { %v382_v60 = vunpack.c.l.bf16 %v381_v59 }
  0xed   :  { %v383_v61 = vmul.f32 %v382_v60, %v366_v58 }
  0xef   :  { %v394_v0 = vpack.c.bf16 %v383_v61, %v383_v61 }
  0xf1   :  { %403 = vmatmul.bf16.vlgmr.msrb.gmra.mxu0 %v394_v0  ;;  %416 = vmatmul.bf16.vlgmr.msrb.gmra.mxu1 %v394_v0 }
  0xf2   :  { %429 = vmatmul.bf16.vlgmr.msrb.gmra.mxu2 %v394_v0  ;;  %442 = vmatmul.bf16.vlgmr.msrb.gmra.mxu3 %v394_v0 }
  0xf3   :  { %643 = vmatpush.bf16.msrb.mxu0 %v1768_v3  ;;  %656 = vmatpush.bf16.msrb.mxu1 %v1770_v7 }
  0xf4   :  { %669 = vmatpush.bf16.msrb.mxu2 %v1778_v16  ;;  %682 = vmatpush.bf16.msrb.mxu3 %v1780_v17 }
  0xf7   :  { %644 = vmatpush.bf16.msrb.mxu0 %v1773_v11  ;;  %657 = vmatpush.bf16.msrb.mxu1 %v1776_v15 }
  0xf8   :  { %670 = vmatpush.bf16.msrb.mxu2 %v1784_v24  ;;  %683 = vmatpush.bf16.msrb.mxu3 %v1789_v28 }
  0xfb   :  { %645 = vmatpush.bf16.msrb.mxu0 %v1787_v27  ;;  %658 = vmatpush.bf16.msrb.mxu1 %v1792_v31 }
  0xfc   :  { %671 = vmatpush.bf16.msrb.mxu2 %v1796_v38  ;;  %684 = vmatpush.bf16.msrb.mxu3 %v1798_v39 }
  0xff   :  { %646 = vmatpush.bf16.msrb.mxu0 %v1801_v41  ;;  %659 = vmatpush.bf16.msrb.mxu1 %v1804_v45 }
 0x100   :  { %672 = vmatpush.bf16.msrb.mxu2 %v1808_v50  ;;  %685 = vmatpush.bf16.msrb.mxu3 %v1810_v51 }
 0x103   :  { %647 = vmatpush.bf16.msrb.mxu0 %v1813_v53  ;;  %660 = vmatpush.bf16.msrb.mxu1 %v1816_v57 }
 0x104   :  { %673 = vmatpush.bf16.msrb.mxu2 %v1820_v62  ;;  %686 = vmatpush.bf16.msrb.mxu3 %v1822_v63 }
 0x107   :  { %648 = vmatpush.bf16.msrb.mxu0 %v1825_v1  ;;  %661 = vmatpush.bf16.msrb.mxu1 %v1828_v6 }
 0x108   :  { %674 = vmatpush.bf16.msrb.mxu2 %v1832_v13  ;;  %687 = vmatpush.bf16.msrb.mxu3 %v1834_v14 }
 0x10b   :  { %649 = vmatpush.bf16.msrb.mxu0 %v1837_v19  ;;  %662 = vmatpush.bf16.msrb.mxu1 %v1840_v23 }
 0x10c   :  { %675 = vmatpush.bf16.msrb.mxu2 %v1844_v32  ;;  %688 = vmatpush.bf16.msrb.mxu3 %v1846_v33 }
 0x10f   :  { %650 = vmatpush.bf16.msrb.mxu0 %v1849_v34  ;;  %663 = vmatpush.bf16.msrb.mxu1 %v1852_v37 }
 0x110   :  { %676 = vmatpush.bf16.msrb.mxu2 %v1856_v43  ;;  %689 = vmatpush.bf16.msrb.mxu3 %v1859_v44 }
 0x16e   :  { %v404_v10 = vpop.f32.mrf.mxu0  ;;  %v417_v12 = vpop.f32.mrf.mxu1 }
 0x16f   :  { %v447_v18 = vadd.f32 %v404_v10, %v389_v5  ;;  %v448_v20 = vadd.f32 %v417_v12, %v390_v9 }
 0x171   :  { %v451_v22 = vpack.c.bf16 %v448_v20, %v447_v18 }
 0x173   :  { %v453_v29 = vxor.u32 2147516416, %v451_v22 }
 0x175   :  { %v455_v30 = vunpack.c.l.bf16 %v453_v29  ;;  %v456_v35 = vunpack.c.h.bf16 %v453_v29  ;;  %v430_v36 = vpop.f32.mrf.mxu2  ;;  %v443_v40 = vpop.f32.mrf.mxu3 }
 0x176   :  { %v449_v46 = vadd.f32 %v430_v36, %v391_v25  ;;  %v450_v47 = vadd.f32 %v443_v40, %v392_v26  ;;  %v406_v48 = vpop.f32.mrf.mxu0  ;;  %v419_v49 = vpop.f32.mrf.mxu1 }
 0x177   :  { %v458_v52 = vmul.f32 1.442695, %v455_v30  ;;  %v460_v54 = vmul.f32 1.442695, %v456_v35 }
 0x178   :  { %v452_v55 = vpack.c.bf16 %v450_v47, %v449_v46 }
 0x179   :  { %1501 = vpow2.f32 %v458_v52 }
 0x17a   :  { %1503 = vpow2.f32 %v460_v54  ;;  %v454_v56 = vxor.u32 2147516416, %v452_v55  ;;  %v492_v9 = vrot.slane %v452_v55, 4 }
 0x17c   :  { %v457_v58 = vunpack.c.l.bf16 %v454_v56  ;;  %v494_v22 = vunpack.c.l.bf16 %v492_v9 }
 0x17d   :  { %v432_v59 = vpop.f32.mrf.mxu2  ;;  %v445_v60 = vpop.f32.mrf.mxu3 }
 0x17e   :  { %v462_v61 = vmul.f32 1.442695, %v457_v58 }
 0x17f   :  { %v1502_v0 = vpop.eup %1501 }
 0x180   :  { %v1504_v2 = vpop.eup %1503  ;;  %1505 = vpow2.f32 %v462_v61 }
 0x181   :  { %v464_v5 = vpack.c.bf16 %v1504_v2, %v1502_v0  ;;  %1507 = vtanh.f32 %v494_v22 }
 0x183   :  { %v466_v10 = vunpack.c.l.bf16 %v464_v5  ;;  %v467_v12 = vunpack.c.h.bf16 %v464_v5 }
 0x185   :  { %v469_v18 = vadd.f32 1.0, %v466_v10  ;;  %v470_v20 = vadd.f32 1.0, %v467_v12 }
 0x186   :  { %v1506_v21 = vpop.eup %1505 }
 0x187   :  { %v472_v25 = vpack.c.bf16 %v470_v20, %v469_v18  ;;  %v465_v26 = vpack.c.bf16 %v1506_v21, %v1506_v21  ;;  %v1508_v40 = vpop.eup %1507 }
 0x188   :  { %v496_v54 = vpack.c.bf16 %v1508_v40, %v1508_v40 }
 0x189   :  { %v474_v29 = vunpack.c.h.bf16 %v472_v25  ;;  %v475_v30 = vunpack.c.l.bf16 %v472_v25  ;;  %v468_v35 = vunpack.c.l.bf16 %v465_v26 }
 0x18a   :  { %v497_v61 = vunpack.c.l.bf16 %v496_v54  ;;  %v512_v54 = vld [vmem:[#allocation4 + $0x28] sm:$0xff] }
 0x18b   :  { %1509 = vrcp.f32 %v474_v29  ;;  %v471_v36 = vadd.f32 1.0, %v468_v35 }
 0x18c   :  { %1511 = vrcp.f32 %v475_v30 }
 0x18d   :  { %v473_v46 = vpack.c.bf16 %v471_v36, %v471_v36  ;;  %v511_v36 = vld [vmem:[#allocation4 + $0x20] sm:$0xff] }
 0x18e   :  { %v513_v40 = vunpack.c.l.bf16 %v511_v36 }
 0x18f   :  { %v481_v55 = vunpack.c.h.bf16 %v473_v46  ;;  %v482_v58 = vunpack.c.l.bf16 %v473_v46  ;;  %v514_v46 = vunpack.c.h.bf16 %v511_v36 }
 0x191   :  { %v1510_v47 = vpop.eup %1509  ;;  %1513 = vrcp.f32 %v481_v55 }
 0x192   :  { %v1512_v48 = vpop.eup %1511  ;;  %v477_v49 = vmul.f32 %v1510_v47, %v1928_v4  ;;  %1515 = vrcp.f32 %v482_v58  ;;  %v516_v58 = vunpack.c.h.bf16 %v512_v54 }
 0x193   :  { %v479_v52 = vmul.f32 %v1512_v48, %v1930_v8 }
 0x195   :  { %v480_v56 = vpack.c.bf16 %v477_v49, %v479_v52 }
 0x197   :  { %v488_v59 = vunpack.c.l.bf16 %v480_v56  ;;  %v489_v60 = vunpack.c.h.bf16 %v480_v56  ;;  %v1514_v10 = vpop.eup %1513  ;;  %v515_v56 = vunpack.c.l.bf16 %v512_v54 }
 0x198   :  { %v1516_v12 = vpop.eup %1515  ;;  %v484_v20 = vmul.f32 %v1514_v10, %v1928_v4 }
 0x199   :  { %v499_v0 = vmul.f32 %v489_v60, %v1934_v42  ;;  %v500_v2 = vmul.f32 %v497_v61, %v488_v59  ;;  %v486_v21 = vmul.f32 %v1516_v12, %v1930_v8 }
 0x19b   :  { %v1975_v5 = vadd.f32 %v500_v2, %v499_v0  ;;  %v487_v22 = vpack.c.bf16 %v484_v20, %v486_v21 }
 0x19d   :  { %v502_v9 = vpack.c.bf16 %v1975_v5, %v1975_v5  ;;  %v490_v29 = vunpack.c.l.bf16 %v487_v22 }
 0x19f   :  { %v503_v18 = vunpack.c.l.bf16 %v502_v9 }
 0x1a1   :  { %1517 = vtanh.f32 %v503_v18 }
 0x1a7   :  { %v1518_v25 = vpop.eup %1517 }
 0x1a8   :  { %v505_v26 = vpack.c.bf16 %v1518_v25, %v1518_v25 }
 0x1aa   :  { %v506_v30 = vunpack.c.l.bf16 %v505_v26 }
 0x1ac   :  { %v507_v42 = vmul.f32 %v506_v30, %v490_v29 }
 0x1ae   :  { %v518_v35 = vpack.c.bf16 %v507_v42, %v507_v42 }
 0x1b0   :  { %527 = vmatmul.bf16.vlgmr.msra.gmra.mxu0 %v518_v35  ;;  %540 = vmatmul.bf16.vlgmr.msra.gmra.mxu1 %v518_v35 }
 0x1b1   :  { %553 = vmatmul.bf16.vlgmr.msra.gmra.mxu2 %v518_v35  ;;  %566 = vmatmul.bf16.vlgmr.msra.gmra.mxu3 %v518_v35 }
 0x1b2   :  { %767 = vmatpush.bf16.msra.mxu0 %v1768_v3  ;;  %780 = vmatpush.bf16.msra.mxu1 %v1770_v7 }
 0x1b3   :  { %793 = vmatpush.bf16.msra.mxu2 %v1778_v16  ;;  %806 = vmatpush.bf16.msra.mxu3 %v1780_v17 }
 0x1b6   :  { %768 = vmatpush.bf16.msra.mxu0 %v1773_v11  ;;  %781 = vmatpush.bf16.msra.mxu1 %v1776_v15 }
 0x1b7   :  { %794 = vmatpush.bf16.msra.mxu2 %v1784_v24  ;;  %807 = vmatpush.bf16.msra.mxu3 %v1789_v28 }
 0x1ba   :  { %769 = vmatpush.bf16.msra.mxu0 %v1787_v27  ;;  %782 = vmatpush.bf16.msra.mxu1 %v1792_v31 }
 0x1bb   :  { %795 = vmatpush.bf16.msra.mxu2 %v1796_v38  ;;  %808 = vmatpush.bf16.msra.mxu3 %v1798_v39 }
 0x1be   :  { %770 = vmatpush.bf16.msra.mxu0 %v1801_v41  ;;  %783 = vmatpush.bf16.msra.mxu1 %v1804_v45 }
 0x1bf   :  { %796 = vmatpush.bf16.msra.mxu2 %v1808_v50  ;;  %809 = vmatpush.bf16.msra.mxu3 %v1810_v51 }
 0x1c2   :  { %771 = vmatpush.bf16.msra.mxu0 %v1813_v53  ;;  %784 = vmatpush.bf16.msra.mxu1 %v1816_v57 }
 0x1c3   :  { %797 = vmatpush.bf16.msra.mxu2 %v1820_v62  ;;  %810 = vmatpush.bf16.msra.mxu3 %v1822_v63 }
 0x1c6   :  { %772 = vmatpush.bf16.msra.mxu0 %v1825_v1  ;;  %785 = vmatpush.bf16.msra.mxu1 %v1828_v6 }
 0x1c7   :  { %798 = vmatpush.bf16.msra.mxu2 %v1832_v13  ;;  %811 = vmatpush.bf16.msra.mxu3 %v1834_v14 }
 0x1ca   :  { %773 = vmatpush.bf16.msra.mxu0 %v1837_v19  ;;  %786 = vmatpush.bf16.msra.mxu1 %v1840_v23 }
 0x1cb   :  { %799 = vmatpush.bf16.msra.mxu2 %v1844_v32  ;;  %812 = vmatpush.bf16.msra.mxu3 %v1846_v33 }
 0x1ce   :  { %774 = vmatpush.bf16.msra.mxu0 %v1849_v34  ;;  %787 = vmatpush.bf16.msra.mxu1 %v1852_v37 }
 0x1cf   :  { %800 = vmatpush.bf16.msra.mxu2 %v1856_v43  ;;  %813 = vmatpush.bf16.msra.mxu3 %v1859_v44 }
 0x22d   :  { %v528_v47 = vpop.f32.mrf.mxu0  ;;  %v541_v48 = vpop.f32.mrf.mxu1 }
 0x22e   :  { %v571_v49 = vadd.f32 %v528_v47, %v513_v40  ;;  %v572_v52 = vadd.f32 %v541_v48, %v514_v46 }
 0x230   :  { %v575_v55 = vpack.c.bf16 %v572_v52, %v571_v49 }
 0x232   :  { %v577_v59 = vxor.u32 2147516416, %v575_v55 }
 0x234   :  { %v579_v60 = vunpack.c.l.bf16 %v577_v59  ;;  %v580_v61 = vunpack.c.h.bf16 %v577_v59  ;;  %v554_v0 = vpop.f32.mrf.mxu2  ;;  %v567_v2 = vpop.f32.mrf.mxu3 }
 0x235   :  { %v573_v9 = vadd.f32 %v554_v0, %v515_v56  ;;  %v574_v10 = vadd.f32 %v567_v2, %v516_v58  ;;  %v530_v12 = vpop.f32.mrf.mxu0  ;;  %v543_v18 = vpop.f32.mrf.mxu1 }
 0x236   :  { %v582_v20 = vmul.f32 1.442695, %v579_v60  ;;  %v584_v21 = vmul.f32 1.442695, %v580_v61 }
 0x237   :  { %v576_v22 = vpack.c.bf16 %v574_v10, %v573_v9 }
 0x238   :  { %1519 = vpow2.f32 %v582_v20 }
 0x239   :  { %1521 = vpow2.f32 %v584_v21  ;;  %v578_v25 = vxor.u32 2147516416, %v576_v22  ;;  %v616_v46 = vrot.slane %v576_v22, 4 }
 0x23b   :  { %v581_v26 = vunpack.c.l.bf16 %v578_v25  ;;  %v618_v55 = vunpack.c.l.bf16 %v616_v46 }
 0x23c   :  { %v556_v29 = vpop.f32.mrf.mxu2  ;;  %v569_v30 = vpop.f32.mrf.mxu3 }
 0x23d   :  { %v586_v42 = vmul.f32 1.442695, %v581_v26 }
 0x23e   :  { %v1520_v35 = vpop.eup %1519 }
 0x23f   :  { %v1522_v36 = vpop.eup %1521  ;;  %1523 = vpow2.f32 %v586_v42 }
 0x240   :  { %v588_v40 = vpack.c.bf16 %v1522_v36, %v1520_v35  ;;  %1525 = vtanh.f32 %v618_v55 }
 0x242   :  { %v590_v47 = vunpack.c.l.bf16 %v588_v40  ;;  %v591_v48 = vunpack.c.h.bf16 %v588_v40 }
 0x244   :  { %v593_v49 = vadd.f32 1.0, %v590_v47  ;;  %v594_v52 = vadd.f32 1.0, %v591_v48 }
 0x245   :  { %v1524_v54 = vpop.eup %1523 }
 0x246   :  { %v596_v56 = vpack.c.bf16 %v594_v52, %v593_v49  ;;  %v589_v58 = vpack.c.bf16 %v1524_v54, %v1524_v54  ;;  %v1526_v2 = vpop.eup %1525 }
 0x247   :  { %v620_v21 = vpack.c.bf16 %v1526_v2, %v1526_v2 }
 0x248   :  { %v598_v59 = vunpack.c.h.bf16 %v596_v56  ;;  %v599_v60 = vunpack.c.l.bf16 %v596_v56  ;;  %v592_v61 = vunpack.c.l.bf16 %v589_v58 }
 0x249   :  { %v621_v42 = vunpack.c.l.bf16 %v620_v21  ;;  %v636_v21 = vld [vmem:[#allocation4 + $0x38] sm:$0xff] }
 0x24a   :  { %1527 = vrcp.f32 %v598_v59  ;;  %v595_v0 = vadd.f32 1.0, %v592_v61 }
 0x24b   :  { %1529 = vrcp.f32 %v599_v60 }
 0x24c   :  { %v597_v9 = vpack.c.bf16 %v595_v0, %v595_v0  ;;  %v635_v0 = vld [vmem:[#allocation4 + $0x30] sm:$0xff] }
 0x24d   :  { %v637_v2 = vunpack.c.l.bf16 %v635_v0 }
 0x24e   :  { %v605_v22 = vunpack.c.h.bf16 %v597_v9  ;;  %v606_v26 = vunpack.c.l.bf16 %v597_v9  ;;  %v638_v9 = vunpack.c.h.bf16 %v635_v0 }
 0x250   :  { %v1528_v10 = vpop.eup %1527  ;;  %1531 = vrcp.f32 %v605_v22 }
 0x251   :  { %v1530_v12 = vpop.eup %1529  ;;  %v601_v18 = vmul.f32 %v1528_v10, %v1928_v4  ;;  %1533 = vrcp.f32 %v606_v26  ;;  %v640_v26 = vunpack.c.h.bf16 %v636_v21 }
 0x252   :  { %v603_v20 = vmul.f32 %v1530_v12, %v1930_v8 }
 0x254   :  { %v604_v25 = vpack.c.bf16 %v601_v18, %v603_v20 }
 0x256   :  { %v612_v29 = vunpack.c.l.bf16 %v604_v25  ;;  %v613_v30 = vunpack.c.h.bf16 %v604_v25  ;;  %v1532_v47 = vpop.eup %1531  ;;  %v639_v25 = vunpack.c.l.bf16 %v636_v21 }
 0x257   :  { %v1534_v48 = vpop.eup %1533  ;;  %v608_v52 = vmul.f32 %v1532_v47, %v1928_v4 }
 0x258   :  { %v623_v35 = vmul.f32 %v613_v30, %v1975_v5  ;;  %v624_v36 = vmul.f32 %v621_v42, %v612_v29  ;;  %v610_v54 = vmul.f32 %v1534_v48, %v1930_v8 }
 0x25a   :  { %v2016_v40 = vadd.f32 %v624_v36, %v623_v35  ;;  %v611_v55 = vpack.c.bf16 %v608_v52, %v610_v54 }
 0x25c   :  { %v626_v46 = vpack.c.bf16 %v2016_v40, %v2016_v40  ;;  %v614_v59 = vunpack.c.l.bf16 %v611_v55 }
 0x25e   :  { %v627_v49 = vunpack.c.l.bf16 %v626_v46 }
 0x260   :  { %1535 = vtanh.f32 %v627_v49 }
 0x266   :  { %v1536_v56 = vpop.eup %1535 }
 0x267   :  { %v629_v58 = vpack.c.bf16 %v1536_v56, %v1536_v56 }
 0x269   :  { %v630_v60 = vunpack.c.l.bf16 %v629_v58 }
 0x26b   :  { %v631_v5 = vmul.f32 %v630_v60, %v614_v59 }
 0x26d   :  { %v642_v61 = vpack.c.bf16 %v631_v5, %v631_v5 }
 0x26f   :  { %651 = vmatmul.bf16.vlgmr.msrb.gmra.mxu0 %v642_v61  ;;  %664 = vmatmul.bf16.vlgmr.msrb.gmra.mxu1 %v642_v61 }
 0x270   :  { %677 = vmatmul.bf16.vlgmr.msrb.gmra.mxu2 %v642_v61  ;;  %690 = vmatmul.bf16.vlgmr.msrb.gmra.mxu3 %v642_v61 }
 0x271   :  { %891 = vmatpush.bf16.msrb.mxu0 %v1768_v3  ;;  %904 = vmatpush.bf16.msrb.mxu1 %v1770_v7 }
 0x272   :  { %917 = vmatpush.bf16.msrb.mxu2 %v1778_v16  ;;  %930 = vmatpush.bf16.msrb.mxu3 %v1780_v17 }
 0x275   :  { %892 = vmatpush.bf16.msrb.mxu0 %v1773_v11  ;;  %905 = vmatpush.bf16.msrb.mxu1 %v1776_v15 }
 0x276   :  { %918 = vmatpush.bf16.msrb.mxu2 %v1784_v24  ;;  %931 = vmatpush.bf16.msrb.mxu3 %v1789_v28 }
 0x279   :  { %893 = vmatpush.bf16.msrb.mxu0 %v1787_v27  ;;  %906 = vmatpush.bf16.msrb.mxu1 %v1792_v31 }
 0x27a   :  { %919 = vmatpush.bf16.msrb.mxu2 %v1796_v38  ;;  %932 = vmatpush.bf16.msrb.mxu3 %v1798_v39 }
 0x27d   :  { %894 = vmatpush.bf16.msrb.mxu0 %v1801_v41  ;;  %907 = vmatpush.bf16.msrb.mxu1 %v1804_v45 }
 0x27e   :  { %920 = vmatpush.bf16.msrb.mxu2 %v1808_v50  ;;  %933 = vmatpush.bf16.msrb.mxu3 %v1810_v51 }
 0x281   :  { %895 = vmatpush.bf16.msrb.mxu0 %v1813_v53  ;;  %908 = vmatpush.bf16.msrb.mxu1 %v1816_v57 }
 0x282   :  { %921 = vmatpush.bf16.msrb.mxu2 %v1820_v62  ;;  %934 = vmatpush.bf16.msrb.mxu3 %v1822_v63 }
 0x285   :  { %896 = vmatpush.bf16.msrb.mxu0 %v1825_v1  ;;  %909 = vmatpush.bf16.msrb.mxu1 %v1828_v6 }
 0x286   :  { %922 = vmatpush.bf16.msrb.mxu2 %v1832_v13  ;;  %935 = vmatpush.bf16.msrb.mxu3 %v1834_v14 }
 0x289   :  { %897 = vmatpush.bf16.msrb.mxu0 %v1837_v19  ;;  %910 = vmatpush.bf16.msrb.mxu1 %v1840_v23 }
 0x28a   :  { %923 = vmatpush.bf16.msrb.mxu2 %v1844_v32  ;;  %936 = vmatpush.bf16.msrb.mxu3 %v1846_v33 }
 0x28d   :  { %898 = vmatpush.bf16.msrb.mxu0 %v1849_v34  ;;  %911 = vmatpush.bf16.msrb.mxu1 %v1852_v37 }
 0x28e   :  { %924 = vmatpush.bf16.msrb.mxu2 %v1856_v43  ;;  %937 = vmatpush.bf16.msrb.mxu3 %v1859_v44 }
 0x2ec   :  { %v652_v10 = vpop.f32.mrf.mxu0  ;;  %v665_v12 = vpop.f32.mrf.mxu1 }
 0x2ed   :  { %v695_v18 = vadd.f32 %v652_v10, %v637_v2  ;;  %v696_v20 = vadd.f32 %v665_v12, %v638_v9 }
 0x2ef   :  { %v699_v22 = vpack.c.bf16 %v696_v20, %v695_v18 }
 0x2f1   :  { %v701_v29 = vxor.u32 2147516416, %v699_v22 }
 0x2f3   :  { %v703_v30 = vunpack.c.l.bf16 %v701_v29  ;;  %v704_v42 = vunpack.c.h.bf16 %v701_v29  ;;  %v678_v35 = vpop.f32.mrf.mxu2  ;;  %v691_v36 = vpop.f32.mrf.mxu3 }
 0x2f4   :  { %v697_v46 = vadd.f32 %v678_v35, %v639_v25  ;;  %v698_v47 = vadd.f32 %v691_v36, %v640_v26  ;;  %v654_v48 = vpop.f32.mrf.mxu0  ;;  %v667_v49 = vpop.f32.mrf.mxu1 }
 0x2f5   :  { %v706_v52 = vmul.f32 1.442695, %v703_v30  ;;  %v708_v54 = vmul.f32 1.442695, %v704_v42 }
 0x2f6   :  { %v700_v55 = vpack.c.bf16 %v698_v47, %v697_v46 }
 0x2f7   :  { %1537 = vpow2.f32 %v706_v52 }
 0x2f8   :  { %1539 = vpow2.f32 %v708_v54  ;;  %v702_v56 = vxor.u32 2147516416, %v700_v55  ;;  %v740_v9 = vrot.slane %v700_v55, 4 }
 0x2fa   :  { %v705_v58 = vunpack.c.l.bf16 %v702_v56  ;;  %v742_v22 = vunpack.c.l.bf16 %v740_v9 }
 0x2fb   :  { %v680_v59 = vpop.f32.mrf.mxu2  ;;  %v693_v60 = vpop.f32.mrf.mxu3 }
 0x2fc   :  { %v710_v5 = vmul.f32 1.442695, %v705_v58 }
 0x2fd   :  { %v1538_v61 = vpop.eup %1537 }
 0x2fe   :  { %v1540_v0 = vpop.eup %1539  ;;  %1541 = vpow2.f32 %v710_v5 }
 0x2ff   :  { %v712_v2 = vpack.c.bf16 %v1540_v0, %v1538_v61  ;;  %1543 = vtanh.f32 %v742_v22 }
 0x301   :  { %v714_v10 = vunpack.c.l.bf16 %v712_v2  ;;  %v715_v12 = vunpack.c.h.bf16 %v712_v2 }
 0x303   :  { %v717_v18 = vadd.f32 1.0, %v714_v10  ;;  %v718_v20 = vadd.f32 1.0, %v715_v12 }
 0x304   :  { %v1542_v21 = vpop.eup %1541 }
 0x305   :  { %v720_v25 = vpack.c.bf16 %v718_v20, %v717_v18  ;;  %v713_v26 = vpack.c.bf16 %v1542_v21, %v1542_v21  ;;  %v1544_v36 = vpop.eup %1543 }
 0x306   :  { %v744_v54 = vpack.c.bf16 %v1544_v36, %v1544_v36 }
 0x307   :  { %v722_v29 = vunpack.c.h.bf16 %v720_v25  ;;  %v723_v30 = vunpack.c.l.bf16 %v720_v25  ;;  %v716_v42 = vunpack.c.l.bf16 %v713_v26 }
 0x308   :  { %v745_v5 = vunpack.c.l.bf16 %v744_v54  ;;  %v760_v54 = vld [vmem:[#allocation4 + $0x48] sm:$0xff] }
 0x309   :  { %1545 = vrcp.f32 %v722_v29  ;;  %v719_v35 = vadd.f32 1.0, %v716_v42 }
 0x30a   :  { %1547 = vrcp.f32 %v723_v30 }
 0x30b   :  { %v721_v46 = vpack.c.bf16 %v719_v35, %v719_v35  ;;  %v759_v35 = vld [vmem:[#allocation4 + $0x40] sm:$0xff] }
 0x30c   :  { %v761_v36 = vunpack.c.l.bf16 %v759_v35 }
 0x30d   :  { %v729_v55 = vunpack.c.h.bf16 %v721_v46  ;;  %v730_v58 = vunpack.c.l.bf16 %v721_v46  ;;  %v762_v46 = vunpack.c.h.bf16 %v759_v35 }
 0x30f   :  { %v1546_v47 = vpop.eup %1545  ;;  %1549 = vrcp.f32 %v729_v55 }
 0x310   :  { %v1548_v48 = vpop.eup %1547  ;;  %v725_v49 = vmul.f32 %v1546_v47, %v1928_v4  ;;  %1551 = vrcp.f32 %v730_v58  ;;  %v764_v58 = vunpack.c.h.bf16 %v760_v54 }
 0x311   :  { %v727_v52 = vmul.f32 %v1548_v48, %v1930_v8 }
 0x313   :  { %v728_v56 = vpack.c.bf16 %v725_v49, %v727_v52 }
 0x315   :  { %v736_v59 = vunpack.c.l.bf16 %v728_v56  ;;  %v737_v60 = vunpack.c.h.bf16 %v728_v56  ;;  %v1550_v10 = vpop.eup %1549  ;;  %v763_v56 = vunpack.c.l.bf16 %v760_v54 }
 0x316   :  { %v1552_v12 = vpop.eup %1551  ;;  %v732_v20 = vmul.f32 %v1550_v10, %v1928_v4 }
 0x317   :  { %v747_v61 = vmul.f32 %v737_v60, %v2016_v40  ;;  %v748_v0 = vmul.f32 %v745_v5, %v736_v59  ;;  %v734_v21 = vmul.f32 %v1552_v12, %v1930_v8 }
 0x319   :  { %v2057_v2 = vadd.f32 %v748_v0, %v747_v61  ;;  %v735_v22 = vpack.c.bf16 %v732_v20, %v734_v21 }
 0x31b   :  { %v750_v9 = vpack.c.bf16 %v2057_v2, %v2057_v2  ;;  %v738_v29 = vunpack.c.l.bf16 %v735_v22 }
 0x31d   :  { %v751_v18 = vunpack.c.l.bf16 %v750_v9 }
 0x31f   :  { %1553 = vtanh.f32 %v751_v18 }
 0x325   :  { %v1554_v25 = vpop.eup %1553 }
 0x326   :  { %v753_v26 = vpack.c.bf16 %v1554_v25, %v1554_v25 }
 0x328   :  { %v754_v30 = vunpack.c.l.bf16 %v753_v26 }
 0x32a   :  { %v755_v40 = vmul.f32 %v754_v30, %v738_v29 }
 0x32c   :  { %v766_v42 = vpack.c.bf16 %v755_v40, %v755_v40 }
 0x32e   :  { %775 = vmatmul.bf16.vlgmr.msra.gmra.mxu0 %v766_v42  ;;  %788 = vmatmul.bf16.vlgmr.msra.gmra.mxu1 %v766_v42 }
 0x32f   :  { %801 = vmatmul.bf16.vlgmr.msra.gmra.mxu2 %v766_v42  ;;  %814 = vmatmul.bf16.vlgmr.msra.gmra.mxu3 %v766_v42 }
 0x330   :  { %1015 = vmatpush.bf16.msra.mxu0 %v1768_v3  ;;  %1028 = vmatpush.bf16.msra.mxu1 %v1770_v7 }
 0x331   :  { %1041 = vmatpush.bf16.msra.mxu2 %v1778_v16  ;;  %1054 = vmatpush.bf16.msra.mxu3 %v1780_v17 }
 0x334   :  { %1016 = vmatpush.bf16.msra.mxu0 %v1773_v11  ;;  %1029 = vmatpush.bf16.msra.mxu1 %v1776_v15 }
 0x335   :  { %1042 = vmatpush.bf16.msra.mxu2 %v1784_v24  ;;  %1055 = vmatpush.bf16.msra.mxu3 %v1789_v28 }
 0x338   :  { %1017 = vmatpush.bf16.msra.mxu0 %v1787_v27  ;;  %1030 = vmatpush.bf16.msra.mxu1 %v1792_v31 }
 0x339   :  { %1043 = vmatpush.bf16.msra.mxu2 %v1796_v38  ;;  %1056 = vmatpush.bf16.msra.mxu3 %v1798_v39 }
 0x33c   :  { %1018 = vmatpush.bf16.msra.mxu0 %v1801_v41  ;;  %1031 = vmatpush.bf16.msra.mxu1 %v1804_v45 }
 0x33d   :  { %1044 = vmatpush.bf16.msra.mxu2 %v1808_v50  ;;  %1057 = vmatpush.bf16.msra.mxu3 %v1810_v51 }
 0x340   :  { %1019 = vmatpush.bf16.msra.mxu0 %v1813_v53  ;;  %1032 = vmatpush.bf16.msra.mxu1 %v1816_v57 }
 0x341   :  { %1045 = vmatpush.bf16.msra.mxu2 %v1820_v62  ;;  %1058 = vmatpush.bf16.msra.mxu3 %v1822_v63 }
 0x344   :  { %1020 = vmatpush.bf16.msra.mxu0 %v1825_v1  ;;  %1033 = vmatpush.bf16.msra.mxu1 %v1828_v6 }
 0x345   :  { %1046 = vmatpush.bf16.msra.mxu2 %v1832_v13  ;;  %1059 = vmatpush.bf16.msra.mxu3 %v1834_v14 }
 0x348   :  { %1021 = vmatpush.bf16.msra.mxu0 %v1837_v19  ;;  %1034 = vmatpush.bf16.msra.mxu1 %v1840_v23 }
 0x349   :  { %1047 = vmatpush.bf16.msra.mxu2 %v1844_v32  ;;  %1060 = vmatpush.bf16.msra.mxu3 %v1846_v33 }
 0x34c   :  { %1022 = vmatpush.bf16.msra.mxu0 %v1849_v34  ;;  %1035 = vmatpush.bf16.msra.mxu1 %v1852_v37 }
 0x34d   :  { %1048 = vmatpush.bf16.msra.mxu2 %v1856_v43  ;;  %1061 = vmatpush.bf16.msra.mxu3 %v1859_v44 }
 0x3ab   :  { %v776_v47 = vpop.f32.mrf.mxu0  ;;  %v789_v48 = vpop.f32.mrf.mxu1 }
 0x3ac   :  { %v819_v49 = vadd.f32 %v776_v47, %v761_v36  ;;  %v820_v52 = vadd.f32 %v789_v48, %v762_v46 }
 0x3ae   :  { %v823_v55 = vpack.c.bf16 %v820_v52, %v819_v49 }
 0x3b0   :  { %v825_v59 = vxor.u32 2147516416, %v823_v55 }
 0x3b2   :  { %v827_v60 = vunpack.c.l.bf16 %v825_v59  ;;  %v828_v5 = vunpack.c.h.bf16 %v825_v59  ;;  %v802_v61 = vpop.f32.mrf.mxu2  ;;  %v815_v0 = vpop.f32.mrf.mxu3 }
 0x3b3   :  { %v821_v9 = vadd.f32 %v802_v61, %v763_v56  ;;  %v822_v10 = vadd.f32 %v815_v0, %v764_v58  ;;  %v778_v12 = vpop.f32.mrf.mxu0  ;;  %v791_v18 = vpop.f32.mrf.mxu1 }
 0x3b4   :  { %v830_v20 = vmul.f32 1.442695, %v827_v60  ;;  %v832_v21 = vmul.f32 1.442695, %v828_v5 }
 0x3b5   :  { %v824_v22 = vpack.c.bf16 %v822_v10, %v821_v9 }
 0x3b6   :  { %1555 = vpow2.f32 %v830_v20 }
 0x3b7   :  { %1557 = vpow2.f32 %v832_v21  ;;  %v826_v25 = vxor.u32 2147516416, %v824_v22  ;;  %v864_v46 = vrot.slane %v824_v22, 4 }
 0x3b9   :  { %v829_v26 = vunpack.c.l.bf16 %v826_v25  ;;  %v866_v55 = vunpack.c.l.bf16 %v864_v46 }
 0x3ba   :  { %v804_v29 = vpop.f32.mrf.mxu2  ;;  %v817_v30 = vpop.f32.mrf.mxu3 }
 0x3bb   :  { %v834_v40 = vmul.f32 1.442695, %v829_v26 }
 0x3bc   :  { %v1556_v42 = vpop.eup %1555 }
 0x3bd   :  { %v1558_v35 = vpop.eup %1557  ;;  %1559 = vpow2.f32 %v834_v40 }
 0x3be   :  { %v836_v36 = vpack.c.bf16 %v1558_v35, %v1556_v42  ;;  %1561 = vtanh.f32 %v866_v55 }
 0x3c0   :  { %v838_v47 = vunpack.c.l.bf16 %v836_v36  ;;  %v839_v48 = vunpack.c.h.bf16 %v836_v36 }
 0x3c2   :  { %v841_v49 = vadd.f32 1.0, %v838_v47  ;;  %v842_v52 = vadd.f32 1.0, %v839_v48 }
 0x3c3   :  { %v1560_v54 = vpop.eup %1559 }
 0x3c4   :  { %v844_v56 = vpack.c.bf16 %v842_v52, %v841_v49  ;;  %v837_v58 = vpack.c.bf16 %v1560_v54, %v1560_v54  ;;  %v1562_v0 = vpop.eup %1561 }
 0x3c5   :  { %v868_v21 = vpack.c.bf16 %v1562_v0, %v1562_v0 }
 0x3c6   :  { %v846_v59 = vunpack.c.h.bf16 %v844_v56  ;;  %v847_v60 = vunpack.c.l.bf16 %v844_v56  ;;  %v840_v5 = vunpack.c.l.bf16 %v837_v58 }
 0x3c7   :  { %v869_v40 = vunpack.c.l.bf16 %v868_v21 }
 0x3c8   :  { %1563 = vrcp.f32 %v846_v59  ;;  %v843_v61 = vadd.f32 1.0, %v840_v5 }
 0x3c9   :  { %1565 = vrcp.f32 %v847_v60 }
 0x3ca   :  { %v845_v9 = vpack.c.bf16 %v843_v61, %v843_v61 }
 0x3cc   :  { %v853_v22 = vunpack.c.h.bf16 %v845_v9  ;;  %v854_v26 = vunpack.c.l.bf16 %v845_v9 }
 0x3ce   :  { %v1564_v10 = vpop.eup %1563  ;;  %1567 = vrcp.f32 %v853_v22 }
 0x3cf   :  { %v1566_v12 = vpop.eup %1565  ;;  %v849_v18 = vmul.f32 %v1564_v10, %v1928_v4  ;;  %1569 = vrcp.f32 %v854_v26 }
 0x3d0   :  { %v851_v20 = vmul.f32 %v1566_v12, %v1930_v8 }
 0x3d2   :  { %v852_v25 = vpack.c.bf16 %v849_v18, %v851_v20 }
 0x3d4   :  { %v860_v29 = vunpack.c.l.bf16 %v852_v25  ;;  %v861_v30 = vunpack.c.h.bf16 %v852_v25  ;;  %v1568_v47 = vpop.eup %1567 }
 0x3d5   :  { %v1570_v48 = vpop.eup %1569  ;;  %v856_v52 = vmul.f32 %v1568_v47, %v1928_v4 }
 0x3d6   :  { %v871_v42 = vmul.f32 %v861_v30, %v2057_v2  ;;  %v872_v35 = vmul.f32 %v869_v40, %v860_v29  ;;  %v858_v54 = vmul.f32 %v1570_v48, %v1930_v8 }
 0x3d8   :  { %v2098_v36 = vadd.f32 %v872_v35, %v871_v42  ;;  %v859_v55 = vpack.c.bf16 %v856_v52, %v858_v54 }
 0x3da   :  { %v874_v46 = vpack.c.bf16 %v2098_v36, %v2098_v36  ;;  %v862_v59 = vunpack.c.l.bf16 %v859_v55 }
 0x3dc   :  { %v875_v49 = vunpack.c.l.bf16 %v874_v46 }
 0x3de   :  { %1571 = vtanh.f32 %v875_v49 }
 0x3e4   :  { %v1572_v56 = vpop.eup %1571 }
 0x3e5   :  { %v877_v58 = vpack.c.bf16 %v1572_v56, %v1572_v56 }
 0x3e7   :  { %v878_v60 = vunpack.c.l.bf16 %v877_v58 }
 0x3e9   :  { %v879_v2 = vmul.f32 %v878_v60, %v862_v59 }
 0x3eb   :  { %v890_v5 = vpack.c.bf16 %v879_v2, %v879_v2 }
 0x3ed   :  { %899 = vmatmul.bf16.vlgmr.msrb.gmra.mxu0 %v890_v5  ;;  %912 = vmatmul.bf16.vlgmr.msrb.gmra.mxu1 %v890_v5 }
 0x3ee   :  { %925 = vmatmul.bf16.vlgmr.msrb.gmra.mxu2 %v890_v5  ;;  %938 = vmatmul.bf16.vlgmr.msrb.gmra.mxu3 %v890_v5 }
 0x3ef   :  { %1139 = vmatpush.bf16.msrb.mxu0 %v1768_v3  ;;  %1152 = vmatpush.bf16.msrb.mxu1 %v1770_v7  ;;  %v883_v3 = vld [vmem:[#allocation4 + $0x50] sm:$0xff] }
 0x3f0   :  { %1165 = vmatpush.bf16.msrb.mxu2 %v1778_v16  ;;  %1178 = vmatpush.bf16.msrb.mxu3 %v1780_v17  ;;  %v885_v7 = vunpack.c.l.bf16 %v883_v3 }
 0x3f3   :  { %1140 = vmatpush.bf16.msrb.mxu0 %v1773_v11  ;;  %1153 = vmatpush.bf16.msrb.mxu1 %v1776_v15  ;;  %v886_v11 = vunpack.c.h.bf16 %v883_v3 }
 0x3f4   :  { %1166 = vmatpush.bf16.msrb.mxu2 %v1784_v24  ;;  %1179 = vmatpush.bf16.msrb.mxu3 %v1789_v28 }
 0x3f7   :  { %1141 = vmatpush.bf16.msrb.mxu0 %v1787_v27  ;;  %1154 = vmatpush.bf16.msrb.mxu1 %v1792_v31  ;;  %v884_v27 = vld [vmem:[#allocation4 + $0x58] sm:$0xff] }
 0x3f8   :  { %1167 = vmatpush.bf16.msrb.mxu2 %v1796_v38  ;;  %1180 = vmatpush.bf16.msrb.mxu3 %v1798_v39  ;;  %v887_v31 = vunpack.c.l.bf16 %v884_v27  ;;  %v888_v38 = vunpack.c.h.bf16 %v884_v27 }
 0x3fb   :  { %1142 = vmatpush.bf16.msrb.mxu0 %v1801_v41  ;;  %1155 = vmatpush.bf16.msrb.mxu1 %v1804_v45 }
 0x3fc   :  { %1168 = vmatpush.bf16.msrb.mxu2 %v1808_v50  ;;  %1181 = vmatpush.bf16.msrb.mxu3 %v1810_v51 }
 0x3ff   :  { %1143 = vmatpush.bf16.msrb.mxu0 %v1813_v53  ;;  %1156 = vmatpush.bf16.msrb.mxu1 %v1816_v57 }
 0x400   :  { %1169 = vmatpush.bf16.msrb.mxu2 %v1820_v62  ;;  %1182 = vmatpush.bf16.msrb.mxu3 %v1822_v63 }
 0x403   :  { %1144 = vmatpush.bf16.msrb.mxu0 %v1825_v1  ;;  %1157 = vmatpush.bf16.msrb.mxu1 %v1828_v6 }
 0x404   :  { %1170 = vmatpush.bf16.msrb.mxu2 %v1832_v13  ;;  %1183 = vmatpush.bf16.msrb.mxu3 %v1834_v14 }
 0x407   :  { %1145 = vmatpush.bf16.msrb.mxu0 %v1837_v19  ;;  %1158 = vmatpush.bf16.msrb.mxu1 %v1840_v23 }
 0x408   :  { %1171 = vmatpush.bf16.msrb.mxu2 %v1844_v32  ;;  %1184 = vmatpush.bf16.msrb.mxu3 %v1846_v33 }
 0x40b   :  { %1146 = vmatpush.bf16.msrb.mxu0 %v1849_v34  ;;  %1159 = vmatpush.bf16.msrb.mxu1 %v1852_v37 }
 0x40c   :  { %1172 = vmatpush.bf16.msrb.mxu2 %v1856_v43  ;;  %1185 = vmatpush.bf16.msrb.mxu3 %v1859_v44 }
 0x46a   :  { %v900_v15 = vpop.f32.mrf.mxu0  ;;  %v913_v16 = vpop.f32.mrf.mxu1 }
 0x46b   :  { %v943_v17 = vadd.f32 %v900_v15, %v885_v7  ;;  %v944_v24 = vadd.f32 %v913_v16, %v886_v11 }
 0x46d   :  { %v947_v28 = vpack.c.bf16 %v944_v24, %v943_v17 }
 0x46f   :  { %v949_v39 = vxor.u32 2147516416, %v947_v28 }
 0x471   :  { %v951_v41 = vunpack.c.l.bf16 %v949_v39  ;;  %v952_v45 = vunpack.c.h.bf16 %v949_v39  ;;  %v926_v50 = vpop.f32.mrf.mxu2  ;;  %v939_v51 = vpop.f32.mrf.mxu3  ;;  %v1007_v39 = vld [vmem:[#allocation4 + $0x60] sm:$0xff] }
 0x472   :  { %v945_v53 = vadd.f32 %v926_v50, %v887_v31  ;;  %v946_v57 = vadd.f32 %v939_v51, %v888_v38  ;;  %v902_v62 = vpop.f32.mrf.mxu0  ;;  %v915_v63 = vpop.f32.mrf.mxu1 }
 0x473   :  { %v954_v1 = vmul.f32 1.442695, %v951_v41  ;;  %v956_v6 = vmul.f32 1.442695, %v952_v45  ;;  %v1009_v41 = vunpack.c.l.bf16 %v1007_v39  ;;  %v1010_v45 = vunpack.c.h.bf16 %v1007_v39  ;;  %v1008_v62 = vld [vmem:[#allocation4 + $0x68] sm:$0xff] }
 0x474   :  { %v948_v13 = vpack.c.bf16 %v946_v57, %v945_v53 }
 0x475   :  { %1573 = vpow2.f32 %v954_v1  ;;  %v1011_v1 = vunpack.c.l.bf16 %v1008_v62 }
 0x476   :  { %1575 = vpow2.f32 %v956_v6  ;;  %v950_v14 = vxor.u32 2147516416, %v948_v13  ;;  %v988_v44 = vrot.slane %v948_v13, 4  ;;  %v1012_v6 = vunpack.c.h.bf16 %v1008_v62 }
 0x478   :  { %v953_v19 = vunpack.c.l.bf16 %v950_v14  ;;  %v990_v18 = vunpack.c.l.bf16 %v988_v44 }
 0x479   :  { %v928_v23 = vpop.f32.mrf.mxu2  ;;  %v941_v32 = vpop.f32.mrf.mxu3 }
 0x47a   :  { %v958_v33 = vmul.f32 1.442695, %v953_v19 }
 0x47b   :  { %v1574_v34 = vpop.eup %1573 }
 0x47c   :  { %v1576_v37 = vpop.eup %1575  ;;  %1577 = vpow2.f32 %v958_v33 }
 0x47d   :  { %v960_v43 = vpack.c.bf16 %v1576_v37, %v1574_v34  ;;  %1579 = vtanh.f32 %v990_v18 }
 0x47f   :  { %v962_v61 = vunpack.c.l.bf16 %v960_v43  ;;  %v963_v0 = vunpack.c.h.bf16 %v960_v43 }
 0x481   :  { %v965_v9 = vadd.f32 1.0, %v962_v61  ;;  %v966_v10 = vadd.f32 1.0, %v963_v0 }
 0x482   :  { %v1578_v12 = vpop.eup %1577 }
 0x483   :  { %v968_v20 = vpack.c.bf16 %v966_v10, %v965_v9  ;;  %v961_v21 = vpack.c.bf16 %v1578_v12, %v1578_v12  ;;  %v1580_v30 = vpop.eup %1579 }
 0x484   :  { %v992_v48 = vpack.c.bf16 %v1580_v30, %v1580_v30 }
 0x485   :  { %v970_v22 = vunpack.c.h.bf16 %v968_v20  ;;  %v971_v25 = vunpack.c.l.bf16 %v968_v20  ;;  %v964_v26 = vunpack.c.l.bf16 %v961_v21 }
 0x486   :  { %v993_v58 = vunpack.c.l.bf16 %v992_v48 }
 0x487   :  { %1581 = vrcp.f32 %v970_v22  ;;  %v967_v29 = vadd.f32 1.0, %v964_v26 }
 0x488   :  { %1583 = vrcp.f32 %v971_v25 }
 0x489   :  { %v969_v40 = vpack.c.bf16 %v967_v29, %v967_v29 }
 0x48b   :  { %v977_v49 = vunpack.c.h.bf16 %v969_v40  ;;  %v978_v54 = vunpack.c.l.bf16 %v969_v40 }
 0x48d   :  { %v1582_v42 = vpop.eup %1581  ;;  %1585 = vrcp.f32 %v977_v49 }
 0x48e   :  { %v1584_v35 = vpop.eup %1583  ;;  %v973_v46 = vmul.f32 %v1582_v42, %v1928_v4  ;;  %1587 = vrcp.f32 %v978_v54 }
 0x48f   :  { %v975_v47 = vmul.f32 %v1584_v35, %v1930_v8 }
 0x491   :  { %v976_v52 = vpack.c.bf16 %v973_v46, %v975_v47 }
 0x493   :  { %v984_v55 = vunpack.c.l.bf16 %v976_v52  ;;  %v985_v56 = vunpack.c.h.bf16 %v976_v52  ;;  %v1586_v3 = vpop.eup %1585 }
 0x494   :  { %v1588_v7 = vpop.eup %1587  ;;  %v980_v15 = vmul.f32 %v1586_v3, %v1928_v4 }
 0x495   :  { %v995_v59 = vmul.f32 %v985_v56, %v2098_v36  ;;  %v996_v60 = vmul.f32 %v993_v58, %v984_v55  ;;  %v982_v16 = vmul.f32 %v1588_v7, %v1930_v8 }
 0x497   :  { %v2139_v2 = vadd.f32 %v996_v60, %v995_v59  ;;  %v983_v17 = vpack.c.bf16 %v980_v15, %v982_v16 }
 0x499   :  { %v998_v5 = vpack.c.bf16 %v2139_v2, %v2139_v2  ;;  %v986_v28 = vunpack.c.l.bf16 %v983_v17 }
 0x49b   :  { %v999_v11 = vunpack.c.l.bf16 %v998_v5 }
 0x49d   :  { %1589 = vtanh.f32 %v999_v11 }
 0x4a3   :  { %v1590_v24 = vpop.eup %1589 }
 0x4a4   :  { %v1001_v27 = vpack.c.bf16 %v1590_v24, %v1590_v24 }
 0x4a6   :  { %v1002_v31 = vunpack.c.l.bf16 %v1001_v27 }
 0x4a8   :  { %v1003_v36 = vmul.f32 %v1002_v31, %v986_v28 }
 0x4aa   :  { %v1014_v38 = vpack.c.bf16 %v1003_v36, %v1003_v36 }
 0x4ac   :  { %1023 = vmatmul.bf16.vlgmr.msra.gmra.mxu0 %v1014_v38  ;;  %1036 = vmatmul.bf16.vlgmr.msra.gmra.mxu1 %v1014_v38 }
 0x4ad   :  { %1049 = vmatmul.bf16.vlgmr.msra.gmra.mxu2 %v1014_v38  ;;  %1062 = vmatmul.bf16.vlgmr.msra.gmra.mxu3 %v1014_v38 }
 0x529   :  { %v1024_v50 = vpop.f32.mrf.mxu0  ;;  %v1037_v51 = vpop.f32.mrf.mxu1 }
 0x52a   :  { %v1067_v53 = vadd.f32 %v1024_v50, %v1009_v41  ;;  %v1068_v57 = vadd.f32 %v1037_v51, %v1010_v45 }
 0x52c   :  { %v1071_v63 = vpack.c.bf16 %v1068_v57, %v1067_v53 }
 0x52e   :  { %v1073_v13 = vxor.u32 2147516416, %v1071_v63 }
 0x530   :  { %v1075_v14 = vunpack.c.l.bf16 %v1073_v13  ;;  %v1076_v19 = vunpack.c.h.bf16 %v1073_v13  ;;  %v1050_v23 = vpop.f32.mrf.mxu2  ;;  %v1063_v32 = vpop.f32.mrf.mxu3  ;;  %v1131_v13 = vld [vmem:[#allocation4 + $0x70] sm:$0xff] }
 0x531   :  { %v1069_v33 = vadd.f32 %v1050_v23, %v1011_v1  ;;  %v1070_v34 = vadd.f32 %v1063_v32, %v1012_v6  ;;  %v1026_v37 = vpop.f32.mrf.mxu0  ;;  %v1039_v43 = vpop.f32.mrf.mxu1 }
 0x532   :  { %v1078_v44 = vmul.f32 1.442695, %v1075_v14  ;;  %v1080_v61 = vmul.f32 1.442695, %v1076_v19  ;;  %v1133_v14 = vunpack.c.l.bf16 %v1131_v13  ;;  %v1134_v19 = vunpack.c.h.bf16 %v1131_v13  ;;  %v1132_v43 = vld [vmem:[#allocation4 + $0x78] sm:$0xff] }
 0x533   :  { %v1072_v0 = vpack.c.bf16 %v1070_v34, %v1069_v33  ;;  %v1273_v33 = vld [vmem:[#allocation9 + $0x78] sm:$0xff] }
 0x534   :  { %1591 = vpow2.f32 %v1078_v44  ;;  %1274 = vmatpush.msra.mxu0 %v1273_v33  ;;  %v1272_v44 = vld [vmem:[#allocation9 + $0x70] sm:$0xff] }
 0x535   :  { %1593 = vpow2.f32 %v1080_v61  ;;  %v1074_v9 = vxor.u32 2147516416, %v1072_v0  ;;  %v1112_v26 = vrot.slane %v1072_v0, 4  ;;  %v1135_v0 = vunpack.c.l.bf16 %v1132_v43 }
 0x536   :  { %1275 = vmatpush.msra.mxu0 %v1272_v44 }
 0x537   :  { %v1077_v10 = vunpack.c.l.bf16 %v1074_v9  ;;  %v1114_v46 = vunpack.c.l.bf16 %v1112_v26  ;;  %v1136_v9 = vunpack.c.h.bf16 %v1132_v43 }
 0x538   :  { %v1052_v12 = vpop.f32.mrf.mxu2  ;;  %v1065_v18 = vpop.f32.mrf.mxu3 }
 0x539   :  { %v1082_v20 = vmul.f32 1.442695, %v1077_v10  ;;  %v1271_v10 = vld [vmem:[#allocation9 + $0x68] sm:$0xff]  ;;  %v1270_v18 = vld [vmem:[#allocation9 + $0x60] sm:$0xff] }
 0x53a   :  { %v1592_v21 = vpop.eup %1591  ;;  %1276 = vmatpush.msra.mxu0 %v1271_v10 }
 0x53b   :  { %v1594_v22 = vpop.eup %1593  ;;  %1595 = vpow2.f32 %v1082_v20 }
 0x53c   :  { %v1084_v25 = vpack.c.bf16 %v1594_v22, %v1592_v21  ;;  %1597 = vtanh.f32 %v1114_v46  ;;  %1277 = vmatpush.msra.mxu0 %v1270_v18 }
 0x53e   :  { %v1086_v29 = vunpack.c.l.bf16 %v1084_v25  ;;  %v1087_v30 = vunpack.c.h.bf16 %v1084_v25 }
 0x540   :  { %v1089_v40 = vadd.f32 1.0, %v1086_v29  ;;  %v1090_v42 = vadd.f32 1.0, %v1087_v30 }
 0x541   :  { %v1596_v35 = vpop.eup %1595 }
 0x542   :  { %v1092_v47 = vpack.c.bf16 %v1090_v42, %v1089_v40  ;;  %v1085_v48 = vpack.c.bf16 %v1596_v35, %v1596_v35  ;;  %v1598_v56 = vpop.eup %1597  ;;  %v1269_v42 = vld [vmem:[#allocation9 + $0x58] sm:$0xff] }
 0x543   :  { %v1116_v7 = vpack.c.bf16 %v1598_v56, %v1598_v56  ;;  %1278 = vmatpush.msra.mxu0 %v1269_v42 }
 0x544   :  { %v1094_v49 = vunpack.c.h.bf16 %v1092_v47  ;;  %v1095_v52 = vunpack.c.l.bf16 %v1092_v47  ;;  %v1088_v54 = vunpack.c.l.bf16 %v1085_v48  ;;  %v1268_v48 = vld [vmem:[#allocation9 + $0x50] sm:$0xff] }
 0x545   :  { %v1117_v27 = vunpack.c.l.bf16 %v1116_v7  ;;  %1279 = vmatpush.msra.mxu0 %v1268_v48 }
 0x546   :  { %1599 = vrcp.f32 %v1094_v49  ;;  %v1091_v55 = vadd.f32 1.0, %v1088_v54 }
 0x547   :  { %1601 = vrcp.f32 %v1095_v52  ;;  %v1267_v52 = vld [vmem:[#allocation9 + $0x48] sm:$0xff] }
 0x548   :  { %v1093_v58 = vpack.c.bf16 %v1091_v55, %v1091_v55  ;;  %1280 = vmatpush.msra.mxu0 %v1267_v52  ;;  %v1266_v55 = vld [vmem:[#allocation9 + $0x40] sm:$0xff] }
 0x54a   :  { %v1101_v11 = vunpack.c.h.bf16 %v1093_v58  ;;  %v1102_v16 = vunpack.c.l.bf16 %v1093_v58  ;;  %1281 = vmatpush.msra.mxu0 %v1266_v55 }
 0x54c   :  { %v1600_v59 = vpop.eup %1599  ;;  %1603 = vrcp.f32 %v1101_v11  ;;  %v1263_v11 = vld [vmem:[#allocation9 + $0x28] sm:$0xff] }
 0x54d   :  { %v1602_v60 = vpop.eup %1601  ;;  %v1097_v5 = vmul.f32 %v1600_v59, %v1928_v4  ;;  %1605 = vrcp.f32 %v1102_v16  ;;  %v1265_v59 = vld [vmem:[#allocation9 + $0x38] sm:$0xff] }
 0x54e   :  { %v1099_v3 = vmul.f32 %v1602_v60, %v1930_v8  ;;  %1282 = vmatpush.msra.mxu0 %v1265_v59 }
 0x550   :  { %v1100_v15 = vpack.c.bf16 %v1097_v5, %v1099_v3  ;;  %v1264_v5 = vld [vmem:[#allocation9 + $0x30] sm:$0xff] }
 0x551   :  { %1283 = vmatpush.msra.mxu0 %v1264_v5 }
 0x552   :  { %v1108_v17 = vunpack.c.l.bf16 %v1100_v15  ;;  %v1109_v24 = vunpack.c.h.bf16 %v1100_v15  ;;  %v1604_v39 = vpop.eup %1603 }
 0x553   :  { %v1606_v41 = vpop.eup %1605  ;;  %v1104_v50 = vmul.f32 %v1604_v39, %v1928_v4  ;;  %1284 = vmatpush.msra.mxu0 %v1263_v11 }
 0x554   :  { %v1119_v28 = vmul.f32 %v1109_v24, %v2139_v2  ;;  %v1120_v31 = vmul.f32 %v1117_v27, %v1108_v17  ;;  %v1106_v51 = vmul.f32 %v1606_v41, %v1930_v8  ;;  %v1262_v17 = vld [vmem:[#allocation9 + $0x20] sm:$0xff] }
 0x555   :  { %1285 = vmatpush.msra.mxu0 %v1262_v17 }
 0x556   :  { %v2148_v36 = vadd.f32 %v1120_v31, %v1119_v28  ;;  %v1107_v53 = vpack.c.bf16 %v1104_v50, %v1106_v51  ;;  %v1261_v28 = vld [vmem:[#allocation9 + $0x18] sm:$0xff] }
 0x557   :  { %1286 = vmatpush.msra.mxu0 %v1261_v28 }
 0x558   :  { %v1122_v38 = vpack.c.bf16 %v2148_v36, %v2148_v36  ;;  %v1110_v63 = vunpack.c.l.bf16 %v1107_v53  ;;  %v1259_v53 = vld [vmem:[#allocation9 + $0x8] sm:$0xff] }
 0x55a   :  { %v1123_v45 = vunpack.c.l.bf16 %v1122_v38 }
 0x55c   :  { %1607 = vtanh.f32 %v1123_v45  ;;  %v1260_v45 = vld [vmem:[#allocation9 + $0x10] sm:$0xff] }
 0x55d   :  { %1287 = vmatpush.msra.mxu0 %v1260_v45 }
 0x55f   :  { %1288 = vmatpush.msra.mxu0 %v1259_v53 }
 0x562   :  { %v1608_v57 = vpop.eup %1607 }
 0x563   :  { %v1125_v62 = vpack.c.bf16 %v1608_v57, %v1608_v57 }
 0x565   :  { %v1126_v1 = vunpack.c.l.bf16 %v1125_v62 }
 0x567   :  { %v1127_v2 = vmul.f32 %v1126_v1, %v1110_v63  ;;  %v1258_v1 = vld [vmem:[#allocation9] sm:$0xff] }
 0x568   :  { %1289 = vmatpush.msra.mxu0 %v1258_v1 }
 0x569   :  { %v1138_v6 = vpack.c.bf16 %v1127_v2, %v1127_v2 }
 0x56b   :  { %1147 = vmatmul.bf16.vlgmr.msrb.gmra.mxu0 %v1138_v6  ;;  %1160 = vmatmul.bf16.vlgmr.msrb.gmra.mxu1 %v1138_v6 }
 0x56c   :  { %1173 = vmatmul.bf16.vlgmr.msrb.gmra.mxu2 %v1138_v6  ;;  %1186 = vmatmul.bf16.vlgmr.msrb.gmra.mxu3 %v1138_v6 }
 0x5e8   :  { %v1148_v23 = vpop.f32.mrf.mxu0  ;;  %v1161_v32 = vpop.f32.mrf.mxu1 }
 0x5e9   :  { %v1191_v34 = vadd.f32 %v1148_v23, %v1133_v14  ;;  %v1192_v37 = vadd.f32 %v1161_v32, %v1134_v19 }
 0x5eb   :  { %v1195_v61 = vpack.c.bf16 %v1192_v37, %v1191_v34 }
 0x5ed   :  { %v1197_v12 = vxor.u32 2147516416, %v1195_v61 }
 0x5ef   :  { %v1199_v20 = vunpack.c.l.bf16 %v1197_v12  ;;  %v1200_v21 = vunpack.c.h.bf16 %v1197_v12  ;;  %v1174_v22 = vpop.f32.mrf.mxu2  ;;  %v1187_v25 = vpop.f32.mrf.mxu3 }
 0x5f0   :  { %v1193_v26 = vadd.f32 %v1174_v22, %v1135_v0  ;;  %v1194_v29 = vadd.f32 %v1187_v25, %v1136_v9  ;;  %v1150_v30 = vpop.f32.mrf.mxu0  ;;  %v1163_v40 = vpop.f32.mrf.mxu1 }
 0x5f1   :  { %v1202_v35 = vmul.f32 1.442695, %v1199_v20  ;;  %v1204_v46 = vmul.f32 1.442695, %v1200_v21 }
 0x5f2   :  { %v1196_v47 = vpack.c.bf16 %v1194_v29, %v1193_v26 }
 0x5f3   :  { %1609 = vpow2.f32 %v1202_v35 }
 0x5f4   :  { %1611 = vpow2.f32 %v1204_v46  ;;  %v1198_v49 = vxor.u32 2147516416, %v1196_v47  ;;  %v1236_v16 = vrot.slane %v1196_v47, 4 }
 0x5f6   :  { %v1201_v54 = vunpack.c.l.bf16 %v1198_v49  ;;  %v1238_v41 = vunpack.c.l.bf16 %v1236_v16 }
 0x5f7   :  { %v1176_v56 = vpop.f32.mrf.mxu2  ;;  %v1189_v58 = vpop.f32.mrf.mxu3 }
 0x5f8   :  { %v1206_v60 = vmul.f32 1.442695, %v1201_v54 }
 0x5f9   :  { %v1610_v3 = vpop.eup %1609 }
 0x5fa   :  { %v1612_v7 = vpop.eup %1611  ;;  %1613 = vpow2.f32 %v1206_v60 }
 0x5fb   :  { %v1208_v15 = vpack.c.bf16 %v1612_v7, %v1610_v3  ;;  %1615 = vtanh.f32 %v1238_v41 }
 0x5fd   :  { %v1210_v24 = vunpack.c.l.bf16 %v1208_v15  ;;  %v1211_v27 = vunpack.c.h.bf16 %v1208_v15 }
 0x5ff   :  { %v1213_v31 = vadd.f32 1.0, %v1210_v24  ;;  %v1214_v38 = vadd.f32 1.0, %v1211_v27 }
 0x600   :  { %v1614_v39 = vpop.eup %1613 }
 0x601   :  { %v1216_v50 = vpack.c.bf16 %v1214_v38, %v1213_v31  ;;  %v1209_v51 = vpack.c.bf16 %v1614_v39, %v1614_v39  ;;  %v1616_v6 = vpop.eup %1615 }
 0x602   :  { %v1240_v33 = vpack.c.bf16 %v1616_v6, %v1616_v6 }
 0x603   :  { %v1218_v57 = vunpack.c.h.bf16 %v1216_v50  ;;  %v1219_v62 = vunpack.c.l.bf16 %v1216_v50  ;;  %v1212_v63 = vunpack.c.l.bf16 %v1209_v51 }
 0x604   :  { %v1241_v0 = vunpack.c.l.bf16 %v1240_v33 }
 0x605   :  { %1617 = vrcp.f32 %v1218_v57  ;;  %v1215_v2 = vadd.f32 1.0, %v1212_v63 }
 0x606   :  { %1619 = vrcp.f32 %v1219_v62 }
 0x607   :  { %v1217_v13 = vpack.c.bf16 %v1215_v2, %v1215_v2 }
 0x609   :  { %v1225_v34 = vunpack.c.h.bf16 %v1217_v13  ;;  %v1226_v43 = vunpack.c.l.bf16 %v1217_v13 }
 0x60b   :  { %v1618_v14 = vpop.eup %1617  ;;  %1621 = vrcp.f32 %v1225_v34 }
 0x60c   :  { %v1620_v19 = vpop.eup %1619  ;;  %v1221_v23 = vmul.f32 %v1618_v14, %v1928_v4  ;;  %1623 = vrcp.f32 %v1226_v43 }
 0x60d   :  { %v1223_v32 = vmul.f32 %v1620_v19, %v1930_v8 }
 0x60f   :  { %v1224_v37 = vpack.c.bf16 %v1221_v23, %v1223_v32 }
 0x611   :  { %v1232_v44 = vunpack.c.l.bf16 %v1224_v37  ;;  %v1233_v61 = vunpack.c.h.bf16 %v1224_v37  ;;  %v1622_v20 = vpop.eup %1621 }
 0x612   :  { %v1624_v21 = vpop.eup %1623  ;;  %v1228_v25 = vmul.f32 %v1622_v20, %v1928_v4 }
 0x613   :  { %v1243_v9 = vmul.f32 %v1233_v61, %v2148_v36  ;;  %v1244_v10 = vmul.f32 %v1241_v0, %v1232_v44  ;;  %v1230_v26 = vmul.f32 %v1624_v21, %v1930_v8 }
 0x615   :  { %v1245_v12 = vadd.f32 %v1244_v10, %v1243_v9  ;;  %v1231_v29 = vpack.c.bf16 %v1228_v25, %v1230_v26 }
 0x617   :  { %v1246_v18 = vpack.c.bf16 %v1245_v12, %v1245_v12  ;;  %v1234_v42 = vunpack.c.l.bf16 %v1231_v29 }
 0x619   :  { %v1247_v22 = vunpack.c.l.bf16 %v1246_v18 }
 0x61b   :  { %1625 = vtanh.f32 %v1247_v22 }
 0x621   :  { %v1626_v30 = vpop.eup %1625 }
 0x622   :  { %v1249_v40 = vpack.c.bf16 %v1626_v30, %v1626_v30 }
 0x624   :  { %v1250_v35 = vunpack.c.l.bf16 %v1249_v40 }
 0x626   :  { %v1251_v46 = vmul.f32 %v1250_v35, %v1234_v42 }
 0x628   :  { %1290 = vmatmul.f32.vlgmr.msra.gmra.mxu0 %v1251_v46 }
 0x6a5   :  { %v1291_v36 = vpop.f32.mrf.mxu0 }
 0x6a6   :  { %1294 = vst [vmem:[#allocation10] sm:$0xff] %v1291_v36 }
 0x6a7   :  { %1305 = dma.vmem_to_hbm [thread:$0]  %s1301_s2, 128, %s1303_s5, [#allocation6]  }
 0x6a8   :  { %1727 = dma.done.wait [#allocation6], 128  }
 0x6a9   :  { %1728 = vsyncadd [#allocation6], 4294967168 }
 0x6aa   :  { %1310 = vsyncpa [#allocation5], 1 }
 0x6ab   :  { %1311 = vsyncpa [#allocation8], 1 }
 0x6ac   :  { %1312 = vsyncpa [#allocation6], 1 }

// kernel: tpu_custom_call.1
= control target key start
LH: loop header
LB: loop body
LE: loop exit
PB: predicated region body
PF: predicated region fallthrough
CT: control target
= control target key end

     0   :  { %8 = vsyncpa [#allocation5], 0  ;;  %s2162_s0 = inlined_call_operand.hbm [shape: bf16[8,8,512], index: 0, kind: input, shape index: {}]   ;;  %s2163_s1 = inlined_call_operand.hbm [shape: bf16[128,512], index: 1, kind: input, shape index: {}]   ;;  %s2164_s2 = inlined_call_operand.hbm [shape: f32[128,128], index: 2, kind: input, shape index: {}]   ;;  %s2165_s3 = inlined_call_operand.hbm [shape: f32[8,128], index: 3, kind: output, shape index: {}]  }
   0x1   :  { %9 = vsyncpa [#allocation8], 0 }
   0x2   :  { %10 = vsyncpa [#allocation6], 0  ;;  %s28_s14 = sshll.u32 %s2163_s1, 4  ;;  %s1729_s15 = smov [#allocation7]   ;;  %s29_s14 = int_to_ptr.hbm [resolvable:$true] %s28_s14 }
   0x3   :  { %s30_s16 = sshll.u32 %s1729_s15, 4  ;;  %s15_s19 = sshll.u32 %s2162_s0, 4  ;;  %s31_s16 = int_to_ptr.vmem [resolvable:$true] %s30_s16  ;;  %s16_s19 = int_to_ptr.hbm [resolvable:$true] %s15_s19 }
   0x4   :  { %s1730_s20 = smov 256   ;;  %s1731_s21 = smov 16  }
   0x5   :  { %36 = dma.hbm_to_vmem [thread:$0]  %s29_s14, 4096, %s31_s16, [#allocation8], %s1730_s20, %s1730_s20, %s1731_s21  }
   0x6   :  { %s1732_s22 = smov [#allocation4]   ;;  %s41_s26 = sshll.u32 %s2164_s2, 4  ;;  %s42_s26 = int_to_ptr.hbm [resolvable:$true] %s41_s26 }
   0x7   :  { %s17_s23 = sshll.u32 %s1732_s22, 4  ;;  %s1733_s1 = smov [#allocation9]   ;;  %s18_s23 = int_to_ptr.vmem [resolvable:$true] %s17_s23 }
   0x8   :  { %23 = dma.hbm_to_vmem [thread:$0]  %s16_s19, 2048, %s18_s23, [#allocation5], %s1730_s20, %s1730_s20, %s1731_s21  }
   0x9   :  { %s43_s27 = sshll.u32 %s1733_s1, 4  ;;  %s1734_s28 = smov 128   ;;  %s44_s27 = int_to_ptr.vmem [resolvable:$true] %s43_s27 }
   0xa   :  { %s1735_s29 = smov 8  }
   0xb   :  { %49 = dma.hbm_to_vmem [thread:$0]  %s42_s26, 2048, %s44_s27, [#allocation8], %s1734_s28, %s1734_s28, %s1735_s29  }
   0xc   :  { %1723 = dma.done.wait [#allocation5], 2048  }
   0xd   :  { %1724 = vsyncadd [#allocation5], 4294965248 }
   0xe   :  { %1725 = dma.done.wait [#allocation8], 6144  }
   0xf   :  { %1726 = vsyncadd [#allocation8], 4294961152  ;;  %v1427_v0 = vld [vmem:[#allocation7 + $0xe0] sm:$0xf]  ;;  %v1471_v1 = vld [vmem:[#allocation7 + $0xec] sm:$0xf0] }
  0x10   :  { %v1469_v2 = vld [vmem:[#allocation7 + $0xe4] sm:$0xf]  ;;  %v1768_v3 = vor.u32 %v1471_v1, %v1427_v0  ;;  %v1429_v4 = vld [vmem:[#allocation7 + $0xf0] sm:$0xf0]  ;;  %v1411_v5 = vld [vmem:[#allocation7 + $0xc0] sm:$0xf] }
  0x11   :  { %v1467_v6 = vld [vmem:[#allocation7 + $0xcc] sm:$0xf0]  ;;  %v1770_v7 = vor.u32 %v1469_v2, %v1429_v4  ;;  %v1465_v8 = vld [vmem:[#allocation7 + $0xc4] sm:$0xf]  ;;  %v1413_v9 = vld [vmem:[#allocation7 + $0xd0] sm:$0xf0] }
  0x12   :  { %v1435_v10 = vld [vmem:[#allocation7 + $0xe8] sm:$0xf]  ;;  %269 = vmatpush.bf16.msra.mxu0 %v1768_v3  ;;  %v1773_v11 = vor.u32 %v1467_v6, %v1411_v5  ;;  %v1472_v12 = vld [vmem:[#allocation7 + $0xf4] sm:$0xf0]  ;;  %v1470_v13 = vld [vmem:[#allocation7 + $0xec] sm:$0xf]  ;;  %v1776_v15 = vor.u32 %v1465_v8, %v1413_v9 }
  0x13   :  { %v1437_v14 = vld [vmem:[#allocation7 + $0xf8] sm:$0xf0]  ;;  %282 = vmatpush.bf16.msra.mxu1 %v1770_v7  ;;  %v1778_v16 = vor.u32 %v1472_v12, %v1435_v10  ;;  %v1395_v18 = vld [vmem:[#allocation7 + $0xa0] sm:$0xf]  ;;  %v1463_v19 = vld [vmem:[#allocation7 + $0xac] sm:$0xf0] }
  0x14   :  { %v1780_v17 = vor.u32 %v1470_v13, %v1437_v14  ;;  %v1461_v20 = vld [vmem:[#allocation7 + $0xa4] sm:$0xf]  ;;  %v1397_v21 = vld [vmem:[#allocation7 + $0xb0] sm:$0xf0]  ;;  %v1419_v22 = vld [vmem:[#allocation7 + $0xc8] sm:$0xf]  ;;  %v1787_v27 = vor.u32 %v1463_v19, %v1395_v18 }
  0x15   :  { %v1468_v23 = vld [vmem:[#allocation7 + $0xd4] sm:$0xf0]  ;;  %295 = vmatpush.bf16.msra.mxu2 %v1778_v16  ;;  %v1466_v25 = vld [vmem:[#allocation7 + $0xcc] sm:$0xf]  ;;  %v1421_v26 = vld [vmem:[#allocation7 + $0xd8] sm:$0xf0]  ;;  %v1792_v31 = vor.u32 %v1461_v20, %v1397_v21 }
  0x16   :  { %308 = vmatpush.bf16.msra.mxu3 %v1780_v17  ;;  %v1784_v24 = vor.u32 %v1468_v23, %v1419_v22  ;;  %270 = vmatpush.bf16.msra.mxu0 %v1773_v11  ;;  %v1789_v28 = vor.u32 %v1466_v25, %v1421_v26  ;;  %v1379_v29 = vld [vmem:[#allocation7 + $0x80] sm:$0xf]  ;;  %v1459_v30 = vld [vmem:[#allocation7 + $0x8c] sm:$0xf0]  ;;  %v1403_v32 = vld [vmem:[#allocation7 + $0xa8] sm:$0xf] }
  0x17   :  { %283 = vmatpush.bf16.msra.mxu1 %v1776_v15  ;;  %v1464_v33 = vld [vmem:[#allocation7 + $0xb4] sm:$0xf0]  ;;  %v1462_v34 = vld [vmem:[#allocation7 + $0xac] sm:$0xf]  ;;  %v1457_v35 = vld [vmem:[#allocation7 + $0x84] sm:$0xf]  ;;  %v1801_v41 = vor.u32 %v1459_v30, %v1379_v29 }
  0x18   :  { %v1381_v36 = vld [vmem:[#allocation7 + $0x90] sm:$0xf0]  ;;  %v1405_v37 = vld [vmem:[#allocation7 + $0xb8] sm:$0xf0]  ;;  %v1796_v38 = vor.u32 %v1464_v33, %v1403_v32  ;;  %v1387_v40 = vld [vmem:[#allocation7 + $0x88] sm:$0xf] }
  0x19   :  { %296 = vmatpush.bf16.msra.mxu2 %v1784_v24  ;;  %v1798_v39 = vor.u32 %v1462_v34, %v1405_v37  ;;  %v1460_v42 = vld [vmem:[#allocation7 + $0x94] sm:$0xf0]  ;;  %v1458_v43 = vld [vmem:[#allocation7 + $0x8c] sm:$0xf]  ;;  %v1389_v44 = vld [vmem:[#allocation7 + $0x98] sm:$0xf0]  ;;  %v1804_v45 = vor.u32 %v1457_v35, %v1381_v36 }
  0x1a   :  { %309 = vmatpush.bf16.msra.mxu3 %v1789_v28  ;;  %271 = vmatpush.bf16.msra.mxu0 %v1787_v27  ;;  %v1363_v46 = vld [vmem:[#allocation7 + $0x60] sm:$0xf]  ;;  %v1455_v47 = vld [vmem:[#allocation7 + $0x6c] sm:$0xf0]  ;;  %v1453_v48 = vld [vmem:[#allocation7 + $0x64] sm:$0xf]  ;;  %v1808_v50 = vor.u32 %v1460_v42, %v1387_v40  ;;  %v1810_v51 = vor.u32 %v1458_v43, %v1389_v44 }
  0x1b   :  { %284 = vmatpush.bf16.msra.mxu1 %v1792_v31  ;;  %v1365_v49 = vld [vmem:[#allocation7 + $0x70] sm:$0xf0]  ;;  %v1371_v52 = vld [vmem:[#allocation7 + $0x68] sm:$0xf]  ;;  %v1813_v53 = vor.u32 %v1455_v47, %v1363_v46  ;;  %v1456_v54 = vld [vmem:[#allocation7 + $0x74] sm:$0xf0] }
  0x1c   :  { %v1454_v55 = vld [vmem:[#allocation7 + $0x6c] sm:$0xf]  ;;  %v1373_v56 = vld [vmem:[#allocation7 + $0x78] sm:$0xf0]  ;;  %v1816_v57 = vor.u32 %v1453_v48, %v1365_v49  ;;  %v1347_v58 = vld [vmem:[#allocation7 + $0x40] sm:$0xf]  ;;  %v1820_v62 = vor.u32 %v1456_v54, %v1371_v52 }
  0x1d   :  { %297 = vmatpush.bf16.msra.mxu2 %v1796_v38  ;;  %v1451_v59 = vld [vmem:[#allocation7 + $0x4c] sm:$0xf0]  ;;  %v1449_v60 = vld [vmem:[#allocation7 + $0x44] sm:$0xf]  ;;  %v1349_v61 = vld [vmem:[#allocation7 + $0x50] sm:$0xf0]  ;;  %v1822_v63 = vor.u32 %v1454_v55, %v1373_v56 }
  0x1e   :  { %310 = vmatpush.bf16.msra.mxu3 %v1798_v39  ;;  %272 = vmatpush.bf16.msra.mxu0 %v1801_v41  ;;  %v1355_v0 = vld [vmem:[#allocation7 + $0x48] sm:$0xf]  ;;  %v1825_v1 = vor.u32 %v1451_v59, %v1347_v58  ;;  %v1452_v2 = vld [vmem:[#allocation7 + $0x54] sm:$0xf0]  ;;  %v1450_v4 = vld [vmem:[#allocation7 + $0x4c] sm:$0xf]  ;;  %v1828_v6 = vor.u32 %v1449_v60, %v1349_v61 }
  0x1f   :  { %285 = vmatpush.bf16.msra.mxu1 %v1804_v45  ;;  %v1357_v5 = vld [vmem:[#allocation7 + $0x58] sm:$0xf0]  ;;  %v1331_v8 = vld [vmem:[#allocation7 + $0x20] sm:$0xf]  ;;  %v1447_v9 = vld [vmem:[#allocation7 + $0x2c] sm:$0xf0]  ;;  %v1832_v13 = vor.u32 %v1452_v2, %v1355_v0 }
  0x20   :  { %v1445_v10 = vld [vmem:[#allocation7 + $0x24] sm:$0xf]  ;;  %v1333_v12 = vld [vmem:[#allocation7 + $0x30] sm:$0xf0]  ;;  %v1834_v14 = vor.u32 %v1450_v4, %v1357_v5  ;;  %v1339_v18 = vld [vmem:[#allocation7 + $0x28] sm:$0xf]  ;;  %v1837_v19 = vor.u32 %v1447_v9, %v1331_v8 }
  0x21   :  { %298 = vmatpush.bf16.msra.mxu2 %v1808_v50  ;;  %v1448_v20 = vld [vmem:[#allocation7 + $0x34] sm:$0xf0]  ;;  %v1446_v21 = vld [vmem:[#allocation7 + $0x2c] sm:$0xf]  ;;  %v1341_v22 = vld [vmem:[#allocation7 + $0x38] sm:$0xf0]  ;;  %v1840_v23 = vor.u32 %v1445_v10, %v1333_v12 }
  0x22   :  { %311 = vmatpush.bf16.msra.mxu3 %v1810_v51  ;;  %273 = vmatpush.bf16.msra.mxu0 %v1813_v53  ;;  %v1315_v25 = vld [vmem:[#allocation7] sm:$0xf]  ;;  %v1443_v26 = vld [vmem:[#allocation7 + $0xc] sm:$0xf0]  ;;  %v1441_v29 = vld [vmem:[#allocation7 + $0x4] sm:$0xf]  ;;  %v1844_v32 = vor.u32 %v1448_v20, %v1339_v18  ;;  %v1846_v33 = vor.u32 %v1446_v21, %v1341_v22 }
  0x23   :  { %286 = vmatpush.bf16.msra.mxu1 %v1816_v57  ;;  %v1317_v30 = vld [vmem:[#allocation7 + $0x10] sm:$0xf0]  ;;  %v1849_v34 = vor.u32 %v1443_v26, %v1315_v25  ;;  %v1323_v35 = vld [vmem:[#allocation7 + $0x8] sm:$0xf]  ;;  %v1444_v36 = vld [vmem:[#allocation7 + $0x14] sm:$0xf0] }
  0x24   :  { %v1852_v37 = vor.u32 %v1441_v29, %v1317_v30  ;;  %v1442_v40 = vld [vmem:[#allocation7 + $0xc] sm:$0xf]  ;;  %v1325_v42 = vld [vmem:[#allocation7 + $0x18] sm:$0xf0]  ;;  %v1856_v43 = vor.u32 %v1444_v36, %v1323_v35  ;;  %v1736_v46 = vmov 0.0|0.0   ;;  %v101_v47 = vld [vmem:[#allocation4] sm:$0xff] }
  0x25   :  { %299 = vmatpush.bf16.msra.mxu2 %v1820_v62  ;;  %v1859_v44 = vor.u32 %v1442_v40, %v1325_v42  ;;  %v103_v48 = vunpack.c.l.bf16 %v101_v47  ;;  %v104_v49 = vunpack.c.h.bf16 %v101_v47  ;;  %v102_v58 = vld [vmem:[#allocation4 + $0x8] sm:$0xff]  ;;  %s1738_s0 = smov [#allocation10]   ;;  %s1302_s5 = sshll.u32 %s2165_s3, 4  ;;  %s1303_s5 = int_to_ptr.hbm [resolvable:$true] %s1302_s5 }
  0x26   :  { %312 = vmatpush.bf16.msra.mxu3 %v1822_v63  ;;  %274 = vmatpush.bf16.msra.mxu0 %v1825_v1  ;;  %v105_v61 = vunpack.c.l.bf16 %v102_v58  ;;  %v106_v0 = vunpack.c.h.bf16 %v102_v58  ;;  %s1300_s2 = sshll.u32 %s1738_s0, 4  ;;  %s1301_s2 = int_to_ptr.vmem [resolvable:$true] %s1300_s2 }
  0x27   :  { %287 = vmatpush.bf16.msra.mxu1 %v1828_v6 }
  0x29   :  { %300 = vmatpush.bf16.msra.mxu2 %v1832_v13 }
  0x2a   :  { %313 = vmatpush.bf16.msra.mxu3 %v1834_v14  ;;  %275 = vmatpush.bf16.msra.mxu0 %v1837_v19 }
  0x2b   :  { %288 = vmatpush.bf16.msra.mxu1 %v1840_v23 }
  0x2d   :  { %301 = vmatpush.bf16.msra.mxu2 %v1844_v32 }
  0x2e   :  { %314 = vmatpush.bf16.msra.mxu3 %v1846_v33  ;;  %276 = vmatpush.bf16.msra.mxu0 %v1849_v34 }
  0x2f   :  { %289 = vmatpush.bf16.msra.mxu1 %v1852_v37 }
  0x31   :  { %277 = vmatmul.bf16.vlgmr.msra.gmra.mxu0 %v1736_v46  ;;  %302 = vmatpush.bf16.msra.mxu2 %v1856_v43 }
  0x32   :  { %395 = vmatpush.bf16.msrb.mxu0 %v1768_v3  ;;  %290 = vmatmul.bf16.vlgmr.msra.gmra.mxu1 %v1736_v46 }
  0x33   :  { %408 = vmatpush.bf16.msrb.mxu1 %v1770_v7  ;;  %315 = vmatpush.bf16.msra.mxu3 %v1859_v44 }
  0x34   :  { %303 = vmatmul.bf16.vlgmr.msra.gmra.mxu2 %v1736_v46 }
  0x35   :  { %421 = vmatpush.bf16.msrb.mxu2 %v1778_v16 }
  0x36   :  { %396 = vmatpush.bf16.msrb.mxu0 %v1773_v11  ;;  %316 = vmatmul.bf16.vlgmr.msra.gmra.mxu3 %v1736_v46 }
  0x37   :  { %434 = vmatpush.bf16.msrb.mxu3 %v1780_v17  ;;  %409 = vmatpush.bf16.msrb.mxu1 %v1776_v15 }
  0x39   :  { %422 = vmatpush.bf16.msrb.mxu2 %v1784_v24 }
  0x3a   :  { %397 = vmatpush.bf16.msrb.mxu0 %v1787_v27 }
  0x3b   :  { %435 = vmatpush.bf16.msrb.mxu3 %v1789_v28  ;;  %410 = vmatpush.bf16.msrb.mxu1 %v1792_v31 }
  0x3d   :  { %423 = vmatpush.bf16.msrb.mxu2 %v1796_v38 }
  0x3e   :  { %398 = vmatpush.bf16.msrb.mxu0 %v1801_v41 }
  0x3f   :  { %436 = vmatpush.bf16.msrb.mxu3 %v1798_v39  ;;  %411 = vmatpush.bf16.msrb.mxu1 %v1804_v45 }
  0x41   :  { %424 = vmatpush.bf16.msrb.mxu2 %v1808_v50 }
  0x42   :  { %399 = vmatpush.bf16.msrb.mxu0 %v1813_v53 }
  0x43   :  { %437 = vmatpush.bf16.msrb.mxu3 %v1810_v51  ;;  %412 = vmatpush.bf16.msrb.mxu1 %v1816_v57 }
  0x45   :  { %425 = vmatpush.bf16.msrb.mxu2 %v1820_v62 }
  0x46   :  { %400 = vmatpush.bf16.msrb.mxu0 %v1825_v1 }
  0x47   :  { %438 = vmatpush.bf16.msrb.mxu3 %v1822_v63  ;;  %413 = vmatpush.bf16.msrb.mxu1 %v1828_v6 }
  0x49   :  { %426 = vmatpush.bf16.msrb.mxu2 %v1832_v13 }
  0x4a   :  { %401 = vmatpush.bf16.msrb.mxu0 %v1837_v19 }
  0x4b   :  { %439 = vmatpush.bf16.msrb.mxu3 %v1834_v14  ;;  %414 = vmatpush.bf16.msrb.mxu1 %v1840_v23 }
  0x4d   :  { %427 = vmatpush.bf16.msrb.mxu2 %v1844_v32 }
  0x4e   :  { %402 = vmatpush.bf16.msrb.mxu0 %v1849_v34 }
  0x4f   :  { %440 = vmatpush.bf16.msrb.mxu3 %v1846_v33  ;;  %415 = vmatpush.bf16.msrb.mxu1 %v1852_v37 }
  0x51   :  { %428 = vmatpush.bf16.msrb.mxu2 %v1856_v43 }
  0x52   :  { %519 = vmatpush.bf16.msra.mxu0 %v1768_v3 }
  0x53   :  { %532 = vmatpush.bf16.msra.mxu1 %v1770_v7  ;;  %441 = vmatpush.bf16.msrb.mxu3 %v1859_v44 }
  0x55   :  { %545 = vmatpush.bf16.msra.mxu2 %v1778_v16 }
  0x56   :  { %520 = vmatpush.bf16.msra.mxu0 %v1773_v11 }
  0x57   :  { %558 = vmatpush.bf16.msra.mxu3 %v1780_v17  ;;  %533 = vmatpush.bf16.msra.mxu1 %v1776_v15 }
  0x59   :  { %546 = vmatpush.bf16.msra.mxu2 %v1784_v24 }
  0x5a   :  { %521 = vmatpush.bf16.msra.mxu0 %v1787_v27 }
  0x5b   :  { %559 = vmatpush.bf16.msra.mxu3 %v1789_v28  ;;  %534 = vmatpush.bf16.msra.mxu1 %v1792_v31 }
  0x5d   :  { %547 = vmatpush.bf16.msra.mxu2 %v1796_v38 }
  0x5e   :  { %522 = vmatpush.bf16.msra.mxu0 %v1801_v41 }
  0x5f   :  { %560 = vmatpush.bf16.msra.mxu3 %v1798_v39  ;;  %535 = vmatpush.bf16.msra.mxu1 %v1804_v45 }
  0x61   :  { %548 = vmatpush.bf16.msra.mxu2 %v1808_v50 }
  0x62   :  { %523 = vmatpush.bf16.msra.mxu0 %v1813_v53 }
  0x63   :  { %561 = vmatpush.bf16.msra.mxu3 %v1810_v51  ;;  %536 = vmatpush.bf16.msra.mxu1 %v1816_v57 }
  0x65   :  { %549 = vmatpush.bf16.msra.mxu2 %v1820_v62 }
  0x66   :  { %524 = vmatpush.bf16.msra.mxu0 %v1825_v1 }
  0x67   :  { %562 = vmatpush.bf16.msra.mxu3 %v1822_v63  ;;  %537 = vmatpush.bf16.msra.mxu1 %v1828_v6 }
  0x69   :  { %550 = vmatpush.bf16.msra.mxu2 %v1832_v13 }
  0x6a   :  { %525 = vmatpush.bf16.msra.mxu0 %v1837_v19 }
  0x6b   :  { %563 = vmatpush.bf16.msra.mxu3 %v1834_v14  ;;  %538 = vmatpush.bf16.msra.mxu1 %v1840_v23 }
  0x6d   :  { %551 = vmatpush.bf16.msra.mxu2 %v1844_v32 }
  0x6e   :  { %526 = vmatpush.bf16.msra.mxu0 %v1849_v34 }
  0x6f   :  { %564 = vmatpush.bf16.msra.mxu3 %v1846_v33  ;;  %539 = vmatpush.bf16.msra.mxu1 %v1852_v37 }
  0x71   :  { %552 = vmatpush.bf16.msra.mxu2 %v1856_v43 }
  0x73   :  { %565 = vmatpush.bf16.msra.mxu3 %v1859_v44 }
  0xae   :  { %v278_v52 = vpop.f32.mrf.mxu0 }
  0xaf   :  { %v321_v54 = vadd.f32 %v278_v52, %v103_v48  ;;  %v291_v55 = vpop.f32.mrf.mxu1 }
  0xb0   :  { %v322_v56 = vadd.f32 %v291_v55, %v104_v49 }
  0xb2   :  { %v325_v59 = vpack.c.bf16 %v322_v56, %v321_v54 }
  0xb4   :  { %v327_v60 = vxor.u32 2147516416, %v325_v59 }
  0xb6   :  { %v329_v2 = vunpack.c.l.bf16 %v327_v60  ;;  %v330_v4 = vunpack.c.h.bf16 %v327_v60  ;;  %v280_v5 = vpop.f32.mrf.mxu0 }
  0xb7   :  { %v293_v8 = vpop.f32.mrf.mxu1  ;;  %v304_v9 = vpop.f32.mrf.mxu2 }
  0xb8   :  { %v332_v10 = vmul.f32 1.442695, %v329_v2  ;;  %v334_v12 = vmul.f32 1.442695, %v330_v4  ;;  %v323_v18 = vadd.f32 %v304_v9, %v105_v61  ;;  %v1737_v2 = vmov 1065369472  }
  0xb9   :  { %v317_v20 = vpop.f32.mrf.mxu3  ;;  %v1928_v4 = vunpack.c.h.bf16 %v1737_v2  ;;  %v1930_v8 = vunpack.c.l.bf16 %v1737_v2  ;;  %v387_v2 = vld [vmem:[#allocation4 + $0x10] sm:$0xff] }
  0xba   :  { %v324_v21 = vadd.f32 %v317_v20, %v106_v0  ;;  %1483 = vpow2.f32 %v332_v10 }
  0xbb   :  { %1485 = vpow2.f32 %v334_v12 }
  0xbc   :  { %v326_v22 = vpack.c.bf16 %v324_v21, %v323_v18 }
  0xbe   :  { %v328_v25 = vxor.u32 2147516416, %v326_v22  ;;  %v368_v46 = vrot.slane %v326_v22, 4 }
  0xbf   :  { %v306_v29 = vpop.f32.mrf.mxu2 }
  0xc0   :  { %v331_v26 = vunpack.c.l.bf16 %v328_v25  ;;  %v1484_v30 = vpop.eup %1483  ;;  %v370_v54 = vunpack.c.l.bf16 %v368_v46 }
  0xc1   :  { %v319_v35 = vpop.f32.mrf.mxu3  ;;  %v1486_v36 = vpop.eup %1485 }
  0xc2   :  { %v336_v40 = vmul.f32 1.442695, %v331_v26  ;;  %v338_v42 = vpack.c.bf16 %v1486_v36, %v1484_v30 }
  0xc4   :  { %1487 = vpow2.f32 %v336_v40  ;;  %v340_v47 = vunpack.c.l.bf16 %v338_v42  ;;  %v341_v48 = vunpack.c.h.bf16 %v338_v42 }
  0xc5   :  { %1489 = vtanh.f32 %v370_v54 }
  0xc6   :  { %v343_v49 = vadd.f32 1.0, %v340_v47  ;;  %v344_v52 = vadd.f32 1.0, %v341_v48 }
  0xc8   :  { %v346_v55 = vpack.c.bf16 %v344_v52, %v343_v49 }
  0xca   :  { %v1488_v56 = vpop.eup %1487  ;;  %v350_v58 = vunpack.c.h.bf16 %v346_v55  ;;  %v351_v59 = vunpack.c.l.bf16 %v346_v55 }
  0xcb   :  { %v339_v60 = vpack.c.bf16 %v1488_v56, %v1488_v56  ;;  %v1490_v9 = vpop.eup %1489 }
  0xcc   :  { %1491 = vrcp.f32 %v350_v58  ;;  %v372_v25 = vpack.c.bf16 %v1490_v9, %v1490_v9  ;;  %v390_v9 = vunpack.c.h.bf16 %v387_v2 }
  0xcd   :  { %v342_v61 = vunpack.c.l.bf16 %v339_v60  ;;  %1493 = vrcp.f32 %v351_v59 }
  0xce   :  { %v373_v35 = vunpack.c.l.bf16 %v372_v25 }
  0xcf   :  { %v345_v0 = vadd.f32 1.0, %v342_v61 }
  0xd1   :  { %v347_v5 = vpack.c.bf16 %v345_v0, %v345_v0 }
  0xd2   :  { %v1492_v10 = vpop.eup %1491 }
  0xd3   :  { %v1494_v12 = vpop.eup %1493  ;;  %v353_v18 = vmul.f32 %v1492_v10, %v1928_v4  ;;  %v357_v20 = vunpack.c.h.bf16 %v347_v5  ;;  %v358_v22 = vunpack.c.l.bf16 %v347_v5  ;;  %v389_v5 = vunpack.c.l.bf16 %v387_v2 }
  0xd4   :  { %v355_v21 = vmul.f32 %v1494_v12, %v1930_v8 }
  0xd5   :  { %1495 = vrcp.f32 %v357_v20 }
  0xd6   :  { %v356_v26 = vpack.c.bf16 %v353_v18, %v355_v21  ;;  %1497 = vrcp.f32 %v358_v22  ;;  %v388_v21 = vld [vmem:[#allocation4 + $0x18] sm:$0xff] }
  0xd7   :  { %v391_v25 = vunpack.c.l.bf16 %v388_v21 }
  0xd8   :  { %v364_v29 = vunpack.c.l.bf16 %v356_v26  ;;  %v365_v30 = vunpack.c.h.bf16 %v356_v26  ;;  %v392_v26 = vunpack.c.h.bf16 %v388_v21 }
  0xda   :  { %v375_v36 = vmul.f32 0.0, %v365_v30  ;;  %v376_v40 = vmul.f32 %v373_v35, %v364_v29 }
  0xdb   :  { %v1496_v46 = vpop.eup %1495 }
  0xdc   :  { %v1934_v42 = vadd.f32 %v376_v40, %v375_v36  ;;  %v1498_v47 = vpop.eup %1497  ;;  %v360_v52 = vmul.f32 %v1496_v46, %v1928_v4 }
  0xdd   :  { %v362_v54 = vmul.f32 %v1498_v47, %v1930_v8 }
  0xde   :  { %v378_v48 = vpack.c.bf16 %v1934_v42, %v1934_v42 }
  0xdf   :  { %v363_v55 = vpack.c.bf16 %v360_v52, %v362_v54 }
  0xe0   :  { %v379_v49 = vunpack.c.l.bf16 %v378_v48 }
  0xe1   :  { %v366_v58 = vunpack.c.l.bf16 %v363_v55 }
  0xe2   :  { %1499 = vtanh.f32 %v379_v49 }
  0xe8   :  { %v1500_v56 = vpop.eup %1499 }
  0xe9   :  { %v381_v59 = vpack.c.bf16 %v1500_v56, %v1500_v56 }
  0xeb   :  { %v382_v60 = vunpack.c.l.bf16 %v381_v59 }
  0xed   :  { %v383_v61 = vmul.f32 %v382_v60, %v366_v58 }
  0xef   :  { %v394_v0 = vpack.c.bf16 %v383_v61, %v383_v61 }
  0xf1   :  { %403 = vmatmul.bf16.vlgmr.msrb.gmra.mxu0 %v394_v0  ;;  %416 = vmatmul.bf16.vlgmr.msrb.gmra.mxu1 %v394_v0 }
  0xf2   :  { %429 = vmatmul.bf16.vlgmr.msrb.gmra.mxu2 %v394_v0  ;;  %442 = vmatmul.bf16.vlgmr.msrb.gmra.mxu3 %v394_v0 }
  0xf3   :  { %643 = vmatpush.bf16.msrb.mxu0 %v1768_v3  ;;  %656 = vmatpush.bf16.msrb.mxu1 %v1770_v7 }
  0xf4   :  { %669 = vmatpush.bf16.msrb.mxu2 %v1778_v16  ;;  %682 = vmatpush.bf16.msrb.mxu3 %v1780_v17 }
  0xf7   :  { %644 = vmatpush.bf16.msrb.mxu0 %v1773_v11  ;;  %657 = vmatpush.bf16.msrb.mxu1 %v1776_v15 }
  0xf8   :  { %670 = vmatpush.bf16.msrb.mxu2 %v1784_v24  ;;  %683 = vmatpush.bf16.msrb.mxu3 %v1789_v28 }
  0xfb   :  { %645 = vmatpush.bf16.msrb.mxu0 %v1787_v27  ;;  %658 = vmatpush.bf16.msrb.mxu1 %v1792_v31 }
  0xfc   :  { %671 = vmatpush.bf16.msrb.mxu2 %v1796_v38  ;;  %684 = vmatpush.bf16.msrb.mxu3 %v1798_v39 }
  0xff   :  { %646 = vmatpush.bf16.msrb.mxu0 %v1801_v41  ;;  %659 = vmatpush.bf16.msrb.mxu1 %v1804_v45 }
 0x100   :  { %672 = vmatpush.bf16.msrb.mxu2 %v1808_v50  ;;  %685 = vmatpush.bf16.msrb.mxu3 %v1810_v51 }
 0x103   :  { %647 = vmatpush.bf16.msrb.mxu0 %v1813_v53  ;;  %660 = vmatpush.bf16.msrb.mxu1 %v1816_v57 }
 0x104   :  { %673 = vmatpush.bf16.msrb.mxu2 %v1820_v62  ;;  %686 = vmatpush.bf16.msrb.mxu3 %v1822_v63 }
 0x107   :  { %648 = vmatpush.bf16.msrb.mxu0 %v1825_v1  ;;  %661 = vmatpush.bf16.msrb.mxu1 %v1828_v6 }
 0x108   :  { %674 = vmatpush.bf16.msrb.mxu2 %v1832_v13  ;;  %687 = vmatpush.bf16.msrb.mxu3 %v1834_v14 }
 0x10b   :  { %649 = vmatpush.bf16.msrb.mxu0 %v1837_v19  ;;  %662 = vmatpush.bf16.msrb.mxu1 %v1840_v23 }
 0x10c   :  { %675 = vmatpush.bf16.msrb.mxu2 %v1844_v32  ;;  %688 = vmatpush.bf16.msrb.mxu3 %v1846_v33 }
 0x10f   :  { %650 = vmatpush.bf16.msrb.mxu0 %v1849_v34  ;;  %663 = vmatpush.bf16.msrb.mxu1 %v1852_v37 }
 0x110   :  { %676 = vmatpush.bf16.msrb.mxu2 %v1856_v43  ;;  %689 = vmatpush.bf16.msrb.mxu3 %v1859_v44 }
 0x16e   :  { %v404_v10 = vpop.f32.mrf.mxu0  ;;  %v417_v12 = vpop.f32.mrf.mxu1 }
 0x16f   :  { %v447_v18 = vadd.f32 %v404_v10, %v389_v5  ;;  %v448_v20 = vadd.f32 %v417_v12, %v390_v9 }
 0x171   :  { %v451_v22 = vpack.c.bf16 %v448_v20, %v447_v18 }
 0x173   :  { %v453_v29 = vxor.u32 2147516416, %v451_v22 }
 0x175   :  { %v455_v30 = vunpack.c.l.bf16 %v453_v29  ;;  %v456_v35 = vunpack.c.h.bf16 %v453_v29  ;;  %v430_v36 = vpop.f32.mrf.mxu2  ;;  %v443_v40 = vpop.f32.mrf.mxu3 }
 0x176   :  { %v449_v46 = vadd.f32 %v430_v36, %v391_v25  ;;  %v450_v47 = vadd.f32 %v443_v40, %v392_v26  ;;  %v406_v48 = vpop.f32.mrf.mxu0  ;;  %v419_v49 = vpop.f32.mrf.mxu1 }
 0x177   :  { %v458_v52 = vmul.f32 1.442695, %v455_v30  ;;  %v460_v54 = vmul.f32 1.442695, %v456_v35 }
 0x178   :  { %v452_v55 = vpack.c.bf16 %v450_v47, %v449_v46 }
 0x179   :  { %1501 = vpow2.f32 %v458_v52 }
 0x17a   :  { %1503 = vpow2.f32 %v460_v54  ;;  %v454_v56 = vxor.u32 2147516416, %v452_v55  ;;  %v492_v9 = vrot.slane %v452_v55, 4 }
 0x17c   :  { %v457_v58 = vunpack.c.l.bf16 %v454_v56  ;;  %v494_v22 = vunpack.c.l.bf16 %v492_v9 }
 0x17d   :  { %v432_v59 = vpop.f32.mrf.mxu2  ;;  %v445_v60 = vpop.f32.mrf.mxu3 }
 0x17e   :  { %v462_v61 = vmul.f32 1.442695, %v457_v58 }
 0x17f   :  { %v1502_v0 = vpop.eup %1501 }
 0x180   :  { %v1504_v2 = vpop.eup %1503  ;;  %1505 = vpow2.f32 %v462_v61 }
 0x181   :  { %v464_v5 = vpack.c.bf16 %v1504_v2, %v1502_v0  ;;  %1507 = vtanh.f32 %v494_v22 }
 0x183   :  { %v466_v10 = vunpack.c.l.bf16 %v464_v5  ;;  %v467_v12 = vunpack.c.h.bf16 %v464_v5 }
 0x185   :  { %v469_v18 = vadd.f32 1.0, %v466_v10  ;;  %v470_v20 = vadd.f32 1.0, %v467_v12 }
 0x186   :  { %v1506_v21 = vpop.eup %1505 }
 0x187   :  { %v472_v25 = vpack.c.bf16 %v470_v20, %v469_v18  ;;  %v465_v26 = vpack.c.bf16 %v1506_v21, %v1506_v21  ;;  %v1508_v40 = vpop.eup %1507 }
 0x188   :  { %v496_v54 = vpack.c.bf16 %v1508_v40, %v1508_v40 }
 0x189   :  { %v474_v29 = vunpack.c.h.bf16 %v472_v25  ;;  %v475_v30 = vunpack.c.l.bf16 %v472_v25  ;;  %v468_v35 = vunpack.c.l.bf16 %v465_v26 }
 0x18a   :  { %v497_v61 = vunpack.c.l.bf16 %v496_v54  ;;  %v512_v54 = vld [vmem:[#allocation4 + $0x28] sm:$0xff] }
 0x18b   :  { %1509 = vrcp.f32 %v474_v29  ;;  %v471_v36 = vadd.f32 1.0, %v468_v35 }
 0x18c   :  { %1511 = vrcp.f32 %v475_v30 }
 0x18d   :  { %v473_v46 = vpack.c.bf16 %v471_v36, %v471_v36  ;;  %v511_v36 = vld [vmem:[#allocation4 + $0x20] sm:$0xff] }
 0x18e   :  { %v513_v40 = vunpack.c.l.bf16 %v511_v36 }
 0x18f   :  { %v481_v55 = vunpack.c.h.bf16 %v473_v46  ;;  %v482_v58 = vunpack.c.l.bf16 %v473_v46  ;;  %v514_v46 = vunpack.c.h.bf16 %v511_v36 }
 0x191   :  { %v1510_v47 = vpop.eup %1509  ;;  %1513 = vrcp.f32 %v481_v55 }
 0x192   :  { %v1512_v48 = vpop.eup %1511  ;;  %v477_v49 = vmul.f32 %v1510_v47, %v1928_v4  ;;  %1515 = vrcp.f32 %v482_v58  ;;  %v516_v58 = vunpack.c.h.bf16 %v512_v54 }
 0x193   :  { %v479_v52 = vmul.f32 %v1512_v48, %v1930_v8 }
 0x195   :  { %v480_v56 = vpack.c.bf16 %v477_v49, %v479_v52 }
 0x197   :  { %v488_v59 = vunpack.c.l.bf16 %v480_v56  ;;  %v489_v60 = vunpack.c.h.bf16 %v480_v56  ;;  %v1514_v10 = vpop.eup %1513  ;;  %v515_v56 = vunpack.c.l.bf16 %v512_v54 }
 0x198   :  { %v1516_v12 = vpop.eup %1515  ;;  %v484_v20 = vmul.f32 %v1514_v10, %v1928_v4 }
 0x199   :  { %v499_v0 = vmul.f32 %v489_v60, %v1934_v42  ;;  %v500_v2 = vmul.f32 %v497_v61, %v488_v59  ;;  %v486_v21 = vmul.f32 %v1516_v12, %v1930_v8 }
 0x19b   :  { %v1975_v5 = vadd.f32 %v500_v2, %v499_v0  ;;  %v487_v22 = vpack.c.bf16 %v484_v20, %v486_v21 }
 0x19d   :  { %v502_v9 = vpack.c.bf16 %v1975_v5, %v1975_v5  ;;  %v490_v29 = vunpack.c.l.bf16 %v487_v22 }
 0x19f   :  { %v503_v18 = vunpack.c.l.bf16 %v502_v9 }
 0x1a1   :  { %1517 = vtanh.f32 %v503_v18 }
 0x1a7   :  { %v1518_v25 = vpop.eup %1517 }
 0x1a8   :  { %v505_v26 = vpack.c.bf16 %v1518_v25, %v1518_v25 }
 0x1aa   :  { %v506_v30 = vunpack.c.l.bf16 %v505_v26 }
 0x1ac   :  { %v507_v42 = vmul.f32 %v506_v30, %v490_v29 }
 0x1ae   :  { %v518_v35 = vpack.c.bf16 %v507_v42, %v507_v42 }
 0x1b0   :  { %527 = vmatmul.bf16.vlgmr.msra.gmra.mxu0 %v518_v35  ;;  %540 = vmatmul.bf16.vlgmr.msra.gmra.mxu1 %v518_v35 }
 0x1b1   :  { %553 = vmatmul.bf16.vlgmr.msra.gmra.mxu2 %v518_v35  ;;  %566 = vmatmul.bf16.vlgmr.msra.gmra.mxu3 %v518_v35 }
 0x1b2   :  { %767 = vmatpush.bf16.msra.mxu0 %v1768_v3  ;;  %780 = vmatpush.bf16.msra.mxu1 %v1770_v7 }
 0x1b3   :  { %793 = vmatpush.bf16.msra.mxu2 %v1778_v16  ;;  %806 = vmatpush.bf16.msra.mxu3 %v1780_v17 }
 0x1b6   :  { %768 = vmatpush.bf16.msra.mxu0 %v1773_v11  ;;  %781 = vmatpush.bf16.msra.mxu1 %v1776_v15 }
 0x1b7   :  { %794 = vmatpush.bf16.msra.mxu2 %v1784_v24  ;;  %807 = vmatpush.bf16.msra.mxu3 %v1789_v28 }
 0x1ba   :  { %769 = vmatpush.bf16.msra.mxu0 %v1787_v27  ;;  %782 = vmatpush.bf16.msra.mxu1 %v1792_v31 }
 0x1bb   :  { %795 = vmatpush.bf16.msra.mxu2 %v1796_v38  ;;  %808 = vmatpush.bf16.msra.mxu3 %v1798_v39 }
 0x1be   :  { %770 = vmatpush.bf16.msra.mxu0 %v1801_v41  ;;  %783 = vmatpush.bf16.msra.mxu1 %v1804_v45 }
 0x1bf   :  { %796 = vmatpush.bf16.msra.mxu2 %v1808_v50  ;;  %809 = vmatpush.bf16.msra.mxu3 %v1810_v51 }
 0x1c2   :  { %771 = vmatpush.bf16.msra.mxu0 %v1813_v53  ;;  %784 = vmatpush.bf16.msra.mxu1 %v1816_v57 }
 0x1c3   :  { %797 = vmatpush.bf16.msra.mxu2 %v1820_v62  ;;  %810 = vmatpush.bf16.msra.mxu3 %v1822_v63 }
 0x1c6   :  { %772 = vmatpush.bf16.msra.mxu0 %v1825_v1  ;;  %785 = vmatpush.bf16.msra.mxu1 %v1828_v6 }
 0x1c7   :  { %798 = vmatpush.bf16.msra.mxu2 %v1832_v13  ;;  %811 = vmatpush.bf16.msra.mxu3 %v1834_v14 }
 0x1ca   :  { %773 = vmatpush.bf16.msra.mxu0 %v1837_v19  ;;  %786 = vmatpush.bf16.msra.mxu1 %v1840_v23 }
 0x1cb   :  { %799 = vmatpush.bf16.msra.mxu2 %v1844_v32  ;;  %812 = vmatpush.bf16.msra.mxu3 %v1846_v33 }
 0x1ce   :  { %774 = vmatpush.bf16.msra.mxu0 %v1849_v34  ;;  %787 = vmatpush.bf16.msra.mxu1 %v1852_v37 }
 0x1cf   :  { %800 = vmatpush.bf16.msra.mxu2 %v1856_v43  ;;  %813 = vmatpush.bf16.msra.mxu3 %v1859_v44 }
 0x22d   :  { %v528_v47 = vpop.f32.mrf.mxu0  ;;  %v541_v48 = vpop.f32.mrf.mxu1 }
 0x22e   :  { %v571_v49 = vadd.f32 %v528_v47, %v513_v40  ;;  %v572_v52 = vadd.f32 %v541_v48, %v514_v46 }
 0x230   :  { %v575_v55 = vpack.c.bf16 %v572_v52, %v571_v49 }
 0x232   :  { %v577_v59 = vxor.u32 2147516416, %v575_v55 }
 0x234   :  { %v579_v60 = vunpack.c.l.bf16 %v577_v59  ;;  %v580_v61 = vunpack.c.h.bf16 %v577_v59  ;;  %v554_v0 = vpop.f32.mrf.mxu2  ;;  %v567_v2 = vpop.f32.mrf.mxu3 }
 0x235   :  { %v573_v9 = vadd.f32 %v554_v0, %v515_v56  ;;  %v574_v10 = vadd.f32 %v567_v2, %v516_v58  ;;  %v530_v12 = vpop.f32.mrf.mxu0  ;;  %v543_v18 = vpop.f32.mrf.mxu1 }
 0x236   :  { %v582_v20 = vmul.f32 1.442695, %v579_v60  ;;  %v584_v21 = vmul.f32 1.442695, %v580_v61 }
 0x237   :  { %v576_v22 = vpack.c.bf16 %v574_v10, %v573_v9 }
 0x238   :  { %1519 = vpow2.f32 %v582_v20 }
 0x239   :  { %1521 = vpow2.f32 %v584_v21  ;;  %v578_v25 = vxor.u32 2147516416, %v576_v22  ;;  %v616_v46 = vrot.slane %v576_v22, 4 }
 0x23b   :  { %v581_v26 = vunpack.c.l.bf16 %v578_v25  ;;  %v618_v55 = vunpack.c.l.bf16 %v616_v46 }
 0x23c   :  { %v556_v29 = vpop.f32.mrf.mxu2  ;;  %v569_v30 = vpop.f32.mrf.mxu3 }
 0x23d   :  { %v586_v42 = vmul.f32 1.442695, %v581_v26 }
 0x23e   :  { %v1520_v35 = vpop.eup %1519 }
 0x23f   :  { %v1522_v36 = vpop.eup %1521  ;;  %1523 = vpow2.f32 %v586_v42 }
 0x240   :  { %v588_v40 = vpack.c.bf16 %v1522_v36, %v1520_v35  ;;  %1525 = vtanh.f32 %v618_v55 }
 0x242   :  { %v590_v47 = vunpack.c.l.bf16 %v588_v40  ;;  %v591_v48 = vunpack.c.h.bf16 %v588_v40 }
 0x244   :  { %v593_v49 = vadd.f32 1.0, %v590_v47  ;;  %v594_v52 = vadd.f32 1.0, %v591_v48 }
 0x245   :  { %v1524_v54 = vpop.eup %1523 }
 0x246   :  { %v596_v56 = vpack.c.bf16 %v594_v52, %v593_v49  ;;  %v589_v58 = vpack.c.bf16 %v1524_v54, %v1524_v54  ;;  %v1526_v2 = vpop.eup %1525 }
 0x247   :  { %v620_v21 = vpack.c.bf16 %v1526_v2, %v1526_v2 }
 0x248   :  { %v598_v59 = vunpack.c.h.bf16 %v596_v56  ;;  %v599_v60 = vunpack.c.l.bf16 %v596_v56  ;;  %v592_v61 = vunpack.c.l.bf16 %v589_v58 }
 0x249   :  { %v621_v42 = vunpack.c.l.bf16 %v620_v21  ;;  %v636_v21 = vld [vmem:[#allocation4 + $0x38] sm:$0xff] }
 0x24a   :  { %1527 = vrcp.f32 %v598_v59  ;;  %v595_v0 = vadd.f32 1.0, %v592_v61 }
 0x24b   :  { %1529 = vrcp.f32 %v599_v60 }
 0x24c   :  { %v597_v9 = vpack.c.bf16 %v595_v0, %v595_v0  ;;  %v635_v0 = vld [vmem:[#allocation4 + $0x30] sm:$0xff] }
 0x24d   :  { %v637_v2 = vunpack.c.l.bf16 %v635_v0 }
 0x24e   :  { %v605_v22 = vunpack.c.h.bf16 %v597_v9  ;;  %v606_v26 = vunpack.c.l.bf16 %v597_v9  ;;  %v638_v9 = vunpack.c.h.bf16 %v635_v0 }
 0x250   :  { %v1528_v10 = vpop.eup %1527  ;;  %1531 = vrcp.f32 %v605_v22 }
 0x251   :  { %v1530_v12 = vpop.eup %1529  ;;  %v601_v18 = vmul.f32 %v1528_v10, %v1928_v4  ;;  %1533 = vrcp.f32 %v606_v26  ;;  %v640_v26 = vunpack.c.h.bf16 %v636_v21 }
 0x252   :  { %v603_v20 = vmul.f32 %v1530_v12, %v1930_v8 }
 0x254   :  { %v604_v25 = vpack.c.bf16 %v601_v18, %v603_v20 }
 0x256   :  { %v612_v29 = vunpack.c.l.bf16 %v604_v25  ;;  %v613_v30 = vunpack.c.h.bf16 %v604_v25  ;;  %v1532_v47 = vpop.eup %1531  ;;  %v639_v25 = vunpack.c.l.bf16 %v636_v21 }
 0x257   :  { %v1534_v48 = vpop.eup %1533  ;;  %v608_v52 = vmul.f32 %v1532_v47, %v1928_v4 }
 0x258   :  { %v623_v35 = vmul.f32 %v613_v30, %v1975_v5  ;;  %v624_v36 = vmul.f32 %v621_v42, %v612_v29  ;;  %v610_v54 = vmul.f32 %v1534_v48, %v1930_v8 }
 0x25a   :  { %v2016_v40 = vadd.f32 %v624_v36, %v623_v35  ;;  %v611_v55 = vpack.c.bf16 %v608_v52, %v610_v54 }
 0x25c   :  { %v626_v46 = vpack.c.bf16 %v2016_v40, %v2016_v40  ;;  %v614_v59 = vunpack.c.l.bf16 %v611_v55 }
 0x25e   :  { %v627_v49 = vunpack.c.l.bf16 %v626_v46 }
 0x260   :  { %1535 = vtanh.f32 %v627_v49 }
 0x266   :  { %v1536_v56 = vpop.eup %1535 }
 0x267   :  { %v629_v58 = vpack.c.bf16 %v1536_v56, %v1536_v56 }
 0x269   :  { %v630_v60 = vunpack.c.l.bf16 %v629_v58 }
 0x26b   :  { %v631_v5 = vmul.f32 %v630_v60, %v614_v59 }
 0x26d   :  { %v642_v61 = vpack.c.bf16 %v631_v5, %v631_v5 }
 0x26f   :  { %651 = vmatmul.bf16.vlgmr.msrb.gmra.mxu0 %v642_v61  ;;  %664 = vmatmul.bf16.vlgmr.msrb.gmra.mxu1 %v642_v61 }
 0x270   :  { %677 = vmatmul.bf16.vlgmr.msrb.gmra.mxu2 %v642_v61  ;;  %690 = vmatmul.bf16.vlgmr.msrb.gmra.mxu3 %v642_v61 }
 0x271   :  { %891 = vmatpush.bf16.msrb.mxu0 %v1768_v3  ;;  %904 = vmatpush.bf16.msrb.mxu1 %v1770_v7 }
 0x272   :  { %917 = vmatpush.bf16.msrb.mxu2 %v1778_v16  ;;  %930 = vmatpush.bf16.msrb.mxu3 %v1780_v17 }
 0x275   :  { %892 = vmatpush.bf16.msrb.mxu0 %v1773_v11  ;;  %905 = vmatpush.bf16.msrb.mxu1 %v1776_v15 }
 0x276   :  { %918 = vmatpush.bf16.msrb.mxu2 %v1784_v24  ;;  %931 = vmatpush.bf16.msrb.mxu3 %v1789_v28 }
 0x279   :  { %893 = vmatpush.bf16.msrb.mxu0 %v1787_v27  ;;  %906 = vmatpush.bf16.msrb.mxu1 %v1792_v31 }
 0x27a   :  { %919 = vmatpush.bf16.msrb.mxu2 %v1796_v38  ;;  %932 = vmatpush.bf16.msrb.mxu3 %v1798_v39 }
 0x27d   :  { %894 = vmatpush.bf16.msrb.mxu0 %v1801_v41  ;;  %907 = vmatpush.bf16.msrb.mxu1 %v1804_v45 }
 0x27e   :  { %920 = vmatpush.bf16.msrb.mxu2 %v1808_v50  ;;  %933 = vmatpush.bf16.msrb.mxu3 %v1810_v51 }
 0x281   :  { %895 = vmatpush.bf16.msrb.mxu0 %v1813_v53  ;;  %908 = vmatpush.bf16.msrb.mxu1 %v1816_v57 }
 0x282   :  { %921 = vmatpush.bf16.msrb.mxu2 %v1820_v62  ;;  %934 = vmatpush.bf16.msrb.mxu3 %v1822_v63 }
 0x285   :  { %896 = vmatpush.bf16.msrb.mxu0 %v1825_v1  ;;  %909 = vmatpush.bf16.msrb.mxu1 %v1828_v6 }
 0x286   :  { %922 = vmatpush.bf16.msrb.mxu2 %v1832_v13  ;;  %935 = vmatpush.bf16.msrb.mxu3 %v1834_v14 }
 0x289   :  { %897 = vmatpush.bf16.msrb.mxu0 %v1837_v19  ;;  %910 = vmatpush.bf16.msrb.mxu1 %v1840_v23 }
 0x28a   :  { %923 = vmatpush.bf16.msrb.mxu2 %v1844_v32  ;;  %936 = vmatpush.bf16.msrb.mxu3 %v1846_v33 }
 0x28d   :  { %898 = vmatpush.bf16.msrb.mxu0 %v1849_v34  ;;  %911 = vmatpush.bf16.msrb.mxu1 %v1852_v37 }
 0x28e   :  { %924 = vmatpush.bf16.msrb.mxu2 %v1856_v43  ;;  %937 = vmatpush.bf16.msrb.mxu3 %v1859_v44 }
 0x2ec   :  { %v652_v10 = vpop.f32.mrf.mxu0  ;;  %v665_v12 = vpop.f32.mrf.mxu1 }
 0x2ed   :  { %v695_v18 = vadd.f32 %v652_v10, %v637_v2  ;;  %v696_v20 = vadd.f32 %v665_v12, %v638_v9 }
 0x2ef   :  { %v699_v22 = vpack.c.bf16 %v696_v20, %v695_v18 }
 0x2f1   :  { %v701_v29 = vxor.u32 2147516416, %v699_v22 }
 0x2f3   :  { %v703_v30 = vunpack.c.l.bf16 %v701_v29  ;;  %v704_v42 = vunpack.c.h.bf16 %v701_v29  ;;  %v678_v35 = vpop.f32.mrf.mxu2  ;;  %v691_v36 = vpop.f32.mrf.mxu3 }
 0x2f4   :  { %v697_v46 = vadd.f32 %v678_v35, %v639_v25  ;;  %v698_v47 = vadd.f32 %v691_v36, %v640_v26  ;;  %v654_v48 = vpop.f32.mrf.mxu0  ;;  %v667_v49 = vpop.f32.mrf.mxu1 }
 0x2f5   :  { %v706_v52 = vmul.f32 1.442695, %v703_v30  ;;  %v708_v54 = vmul.f32 1.442695, %v704_v42 }
 0x2f6   :  { %v700_v55 = vpack.c.bf16 %v698_v47, %v697_v46 }
 0x2f7   :  { %1537 = vpow2.f32 %v706_v52 }
 0x2f8   :  { %1539 = vpow2.f32 %v708_v54  ;;  %v702_v56 = vxor.u32 2147516416, %v700_v55  ;;  %v740_v9 = vrot.slane %v700_v55, 4 }
 0x2fa   :  { %v705_v58 = vunpack.c.l.bf16 %v702_v56  ;;  %v742_v22 = vunpack.c.l.bf16 %v740_v9 }
 0x2fb   :  { %v680_v59 = vpop.f32.mrf.mxu2  ;;  %v693_v60 = vpop.f32.mrf.mxu3 }
 0x2fc   :  { %v710_v5 = vmul.f32 1.442695, %v705_v58 }
 0x2fd   :  { %v1538_v61 = vpop.eup %1537 }
 0x2fe   :  { %v1540_v0 = vpop.eup %1539  ;;  %1541 = vpow2.f32 %v710_v5 }
 0x2ff   :  { %v712_v2 = vpack.c.bf16 %v1540_v0, %v1538_v61  ;;  %1543 = vtanh.f32 %v742_v22 }
 0x301   :  { %v714_v10 = vunpack.c.l.bf16 %v712_v2  ;;  %v715_v12 = vunpack.c.h.bf16 %v712_v2 }
 0x303   :  { %v717_v18 = vadd.f32 1.0, %v714_v10  ;;  %v718_v20 = vadd.f32 1.0, %v715_v12 }
 0x304   :  { %v1542_v21 = vpop.eup %1541 }
 0x305   :  { %v720_v25 = vpack.c.bf16 %v718_v20, %v717_v18  ;;  %v713_v26 = vpack.c.bf16 %v1542_v21, %v1542_v21  ;;  %v1544_v36 = vpop.eup %1543 }
 0x306   :  { %v744_v54 = vpack.c.bf16 %v1544_v36, %v1544_v36 }
 0x307   :  { %v722_v29 = vunpack.c.h.bf16 %v720_v25  ;;  %v723_v30 = vunpack.c.l.bf16 %v720_v25  ;;  %v716_v42 = vunpack.c.l.bf16 %v713_v26 }
 0x308   :  { %v745_v5 = vunpack.c.l.bf16 %v744_v54  ;;  %v760_v54 = vld [vmem:[#allocation4 + $0x48] sm:$0xff] }
 0x309   :  { %1545 = vrcp.f32 %v722_v29  ;;  %v719_v35 = vadd.f32 1.0, %v716_v42 }
 0x30a   :  { %1547 = vrcp.f32 %v723_v30 }
 0x30b   :  { %v721_v46 = vpack.c.bf16 %v719_v35, %v719_v35  ;;  %v759_v35 = vld [vmem:[#allocation4 + $0x40] sm:$0xff] }
 0x30c   :  { %v761_v36 = vunpack.c.l.bf16 %v759_v35 }
 0x30d   :  { %v729_v55 = vunpack.c.h.bf16 %v721_v46  ;;  %v730_v58 = vunpack.c.l.bf16 %v721_v46  ;;  %v762_v46 = vunpack.c.h.bf16 %v759_v35 }
 0x30f   :  { %v1546_v47 = vpop.eup %1545  ;;  %1549 = vrcp.f32 %v729_v55 }
 0x310   :  { %v1548_v48 = vpop.eup %1547  ;;  %v725_v49 = vmul.f32 %v1546_v47, %v1928_v4  ;;  %1551 = vrcp.f32 %v730_v58  ;;  %v764_v58 = vunpack.c.h.bf16 %v760_v54 }
 0x311   :  { %v727_v52 = vmul.f32 %v1548_v48, %v1930_v8 }
 0x313   :  { %v728_v56 = vpack.c.bf16 %v725_v49, %v727_v52 }
 0x315   :  { %v736_v59 = vunpack.c.l.bf16 %v728_v56  ;;  %v737_v60 = vunpack.c.h.bf16 %v728_v56  ;;  %v1550_v10 = vpop.eup %1549  ;;  %v763_v56 = vunpack.c.l.bf16 %v760_v54 }
 0x316   :  { %v1552_v12 = vpop.eup %1551  ;;  %v732_v20 = vmul.f32 %v1550_v10, %v1928_v4 }
 0x317   :  { %v747_v61 = vmul.f32 %v737_v60, %v2016_v40  ;;  %v748_v0 = vmul.f32 %v745_v5, %v736_v59  ;;  %v734_v21 = vmul.f32 %v1552_v12, %v1930_v8 }
 0x319   :  { %v2057_v2 = vadd.f32 %v748_v0, %v747_v61  ;;  %v735_v22 = vpack.c.bf16 %v732_v20, %v734_v21 }
 0x31b   :  { %v750_v9 = vpack.c.bf16 %v2057_v2, %v2057_v2  ;;  %v738_v29 = vunpack.c.l.bf16 %v735_v22 }
 0x31d   :  { %v751_v18 = vunpack.c.l.bf16 %v750_v9 }
 0x31f   :  { %1553 = vtanh.f32 %v751_v18 }
 0x325   :  { %v1554_v25 = vpop.eup %1553 }
 0x326   :  { %v753_v26 = vpack.c.bf16 %v1554_v25, %v1554_v25 }
 0x328   :  { %v754_v30 = vunpack.c.l.bf16 %v753_v26 }
 0x32a   :  { %v755_v40 = vmul.f32 %v754_v30, %v738_v29 }
 0x32c   :  { %v766_v42 = vpack.c.bf16 %v755_v40, %v755_v40 }
 0x32e   :  { %775 = vmatmul.bf16.vlgmr.msra.gmra.mxu0 %v766_v42  ;;  %788 = vmatmul.bf16.vlgmr.msra.gmra.mxu1 %v766_v42 }
 0x32f   :  { %801 = vmatmul.bf16.vlgmr.msra.gmra.mxu2 %v766_v42  ;;  %814 = vmatmul.bf16.vlgmr.msra.gmra.mxu3 %v766_v42 }
 0x330   :  { %1015 = vmatpush.bf16.msra.mxu0 %v1768_v3  ;;  %1028 = vmatpush.bf16.msra.mxu1 %v1770_v7 }
 0x331   :  { %1041 = vmatpush.bf16.msra.mxu2 %v1778_v16  ;;  %1054 = vmatpush.bf16.msra.mxu3 %v1780_v17 }
 0x334   :  { %1016 = vmatpush.bf16.msra.mxu0 %v1773_v11  ;;  %1029 = vmatpush.bf16.msra.mxu1 %v1776_v15 }
 0x335   :  { %1042 = vmatpush.bf16.msra.mxu2 %v1784_v24  ;;  %1055 = vmatpush.bf16.msra.mxu3 %v1789_v28 }
 0x338   :  { %1017 = vmatpush.bf16.msra.mxu0 %v1787_v27  ;;  %1030 = vmatpush.bf16.msra.mxu1 %v1792_v31 }
 0x339   :  { %1043 = vmatpush.bf16.msra.mxu2 %v1796_v38  ;;  %1056 = vmatpush.bf16.msra.mxu3 %v1798_v39 }
 0x33c   :  { %1018 = vmatpush.bf16.msra.mxu0 %v1801_v41  ;;  %1031 = vmatpush.bf16.msra.mxu1 %v1804_v45 }
 0x33d   :  { %1044 = vmatpush.bf16.msra.mxu2 %v1808_v50  ;;  %1057 = vmatpush.bf16.msra.mxu3 %v1810_v51 }
 0x340   :  { %1019 = vmatpush.bf16.msra.mxu0 %v1813_v53  ;;  %1032 = vmatpush.bf16.msra.mxu1 %v1816_v57 }
 0x341   :  { %1045 = vmatpush.bf16.msra.mxu2 %v1820_v62  ;;  %1058 = vmatpush.bf16.msra.mxu3 %v1822_v63 }
 0x344   :  { %1020 = vmatpush.bf16.msra.mxu0 %v1825_v1  ;;  %1033 = vmatpush.bf16.msra.mxu1 %v1828_v6 }
 0x345   :  { %1046 = vmatpush.bf16.msra.mxu2 %v1832_v13  ;;  %1059 = vmatpush.bf16.msra.mxu3 %v1834_v14 }
 0x348   :  { %1021 = vmatpush.bf16.msra.mxu0 %v1837_v19  ;;  %1034 = vmatpush.bf16.msra.mxu1 %v1840_v23 }
 0x349   :  { %1047 = vmatpush.bf16.msra.mxu2 %v1844_v32  ;;  %1060 = vmatpush.bf16.msra.mxu3 %v1846_v33 }
 0x34c   :  { %1022 = vmatpush.bf16.msra.mxu0 %v1849_v34  ;;  %1035 = vmatpush.bf16.msra.mxu1 %v1852_v37 }
 0x34d   :  { %1048 = vmatpush.bf16.msra.mxu2 %v1856_v43  ;;  %1061 = vmatpush.bf16.msra.mxu3 %v1859_v44 }
 0x3ab   :  { %v776_v47 = vpop.f32.mrf.mxu0  ;;  %v789_v48 = vpop.f32.mrf.mxu1 }
 0x3ac   :  { %v819_v49 = vadd.f32 %v776_v47, %v761_v36  ;;  %v820_v52 = vadd.f32 %v789_v48, %v762_v46 }
 0x3ae   :  { %v823_v55 = vpack.c.bf16 %v820_v52, %v819_v49 }
 0x3b0   :  { %v825_v59 = vxor.u32 2147516416, %v823_v55 }
 0x3b2   :  { %v827_v60 = vunpack.c.l.bf16 %v825_v59  ;;  %v828_v5 = vunpack.c.h.bf16 %v825_v59  ;;  %v802_v61 = vpop.f32.mrf.mxu2  ;;  %v815_v0 = vpop.f32.mrf.mxu3 }
 0x3b3   :  { %v821_v9 = vadd.f32 %v802_v61, %v763_v56  ;;  %v822_v10 = vadd.f32 %v815_v0, %v764_v58  ;;  %v778_v12 = vpop.f32.mrf.mxu0  ;;  %v791_v18 = vpop.f32.mrf.mxu1 }
 0x3b4   :  { %v830_v20 = vmul.f32 1.442695, %v827_v60  ;;  %v832_v21 = vmul.f32 1.442695, %v828_v5 }
 0x3b5   :  { %v824_v22 = vpack.c.bf16 %v822_v10, %v821_v9 }
 0x3b6   :  { %1555 = vpow2.f32 %v830_v20 }
 0x3b7   :  { %1557 = vpow2.f32 %v832_v21  ;;  %v826_v25 = vxor.u32 2147516416, %v824_v22  ;;  %v864_v46 = vrot.slane %v824_v22, 4 }
 0x3b9   :  { %v829_v26 = vunpack.c.l.bf16 %v826_v25  ;;  %v866_v55 = vunpack.c.l.bf16 %v864_v46 }
 0x3ba   :  { %v804_v29 = vpop.f32.mrf.mxu2  ;;  %v817_v30 = vpop.f32.mrf.mxu3 }
 0x3bb   :  { %v834_v40 = vmul.f32 1.442695, %v829_v26 }
 0x3bc   :  { %v1556_v42 = vpop.eup %1555 }
 0x3bd   :  { %v1558_v35 = vpop.eup %1557  ;;  %1559 = vpow2.f32 %v834_v40 }
 0x3be   :  { %v836_v36 = vpack.c.bf16 %v1558_v35, %v1556_v42  ;;  %1561 = vtanh.f32 %v866_v55 }
 0x3c0   :  { %v838_v47 = vunpack.c.l.bf16 %v836_v36  ;;  %v839_v48 = vunpack.c.h.bf16 %v836_v36 }
 0x3c2   :  { %v841_v49 = vadd.f32 1.0, %v838_v47  ;;  %v842_v52 = vadd.f32 1.0, %v839_v48 }
 0x3c3   :  { %v1560_v54 = vpop.eup %1559 }
 0x3c4   :  { %v844_v56 = vpack.c.bf16 %v842_v52, %v841_v49  ;;  %v837_v58 = vpack.c.bf16 %v1560_v54, %v1560_v54  ;;  %v1562_v0 = vpop.eup %1561 }
 0x3c5   :  { %v868_v21 = vpack.c.bf16 %v1562_v0, %v1562_v0 }
 0x3c6   :  { %v846_v59 = vunpack.c.h.bf16 %v844_v56  ;;  %v847_v60 = vunpack.c.l.bf16 %v844_v56  ;;  %v840_v5 = vunpack.c.l.bf16 %v837_v58 }
 0x3c7   :  { %v869_v40 = vunpack.c.l.bf16 %v868_v21 }
 0x3c8   :  { %1563 = vrcp.f32 %v846_v59  ;;  %v843_v61 = vadd.f32 1.0, %v840_v5 }
 0x3c9   :  { %1565 = vrcp.f32 %v847_v60 }
 0x3ca   :  { %v845_v9 = vpack.c.bf16 %v843_v61, %v843_v61 }
 0x3cc   :  { %v853_v22 = vunpack.c.h.bf16 %v845_v9  ;;  %v854_v26 = vunpack.c.l.bf16 %v845_v9 }
 0x3ce   :  { %v1564_v10 = vpop.eup %1563  ;;  %1567 = vrcp.f32 %v853_v22 }
 0x3cf   :  { %v1566_v12 = vpop.eup %1565  ;;  %v849_v18 = vmul.f32 %v1564_v10, %v1928_v4  ;;  %1569 = vrcp.f32 %v854_v26 }
 0x3d0   :  { %v851_v20 = vmul.f32 %v1566_v12, %v1930_v8 }
 0x3d2   :  { %v852_v25 = vpack.c.bf16 %v849_v18, %v851_v20 }
 0x3d4   :  { %v860_v29 = vunpack.c.l.bf16 %v852_v25  ;;  %v861_v30 = vunpack.c.h.bf16 %v852_v25  ;;  %v1568_v47 = vpop.eup %1567 }
 0x3d5   :  { %v1570_v48 = vpop.eup %1569  ;;  %v856_v52 = vmul.f32 %v1568_v47, %v1928_v4 }
 0x3d6   :  { %v871_v42 = vmul.f32 %v861_v30, %v2057_v2  ;;  %v872_v35 = vmul.f32 %v869_v40, %v860_v29  ;;  %v858_v54 = vmul.f32 %v1570_v48, %v1930_v8 }
 0x3d8   :  { %v2098_v36 = vadd.f32 %v872_v35, %v871_v42  ;;  %v859_v55 = vpack.c.bf16 %v856_v52, %v858_v54 }
 0x3da   :  { %v874_v46 = vpack.c.bf16 %v2098_v36, %v2098_v36  ;;  %v862_v59 = vunpack.c.l.bf16 %v859_v55 }
 0x3dc   :  { %v875_v49 = vunpack.c.l.bf16 %v874_v46 }
 0x3de   :  { %1571 = vtanh.f32 %v875_v49 }
 0x3e4   :  { %v1572_v56 = vpop.eup %1571 }
 0x3e5   :  { %v877_v58 = vpack.c.bf16 %v1572_v56, %v1572_v56 }
 0x3e7   :  { %v878_v60 = vunpack.c.l.bf16 %v877_v58 }
 0x3e9   :  { %v879_v2 = vmul.f32 %v878_v60, %v862_v59 }
 0x3eb   :  { %v890_v5 = vpack.c.bf16 %v879_v2, %v879_v2 }
 0x3ed   :  { %899 = vmatmul.bf16.vlgmr.msrb.gmra.mxu0 %v890_v5  ;;  %912 = vmatmul.bf16.vlgmr.msrb.gmra.mxu1 %v890_v5 }
 0x3ee   :  { %925 = vmatmul.bf16.vlgmr.msrb.gmra.mxu2 %v890_v5  ;;  %938 = vmatmul.bf16.vlgmr.msrb.gmra.mxu3 %v890_v5 }
 0x3ef   :  { %1139 = vmatpush.bf16.msrb.mxu0 %v1768_v3  ;;  %1152 = vmatpush.bf16.msrb.mxu1 %v1770_v7  ;;  %v883_v3 = vld [vmem:[#allocation4 + $0x50] sm:$0xff] }
 0x3f0   :  { %1165 = vmatpush.bf16.msrb.mxu2 %v1778_v16  ;;  %1178 = vmatpush.bf16.msrb.mxu3 %v1780_v17  ;;  %v885_v7 = vunpack.c.l.bf16 %v883_v3 }
 0x3f3   :  { %1140 = vmatpush.bf16.msrb.mxu0 %v1773_v11  ;;  %1153 = vmatpush.bf16.msrb.mxu1 %v1776_v15  ;;  %v886_v11 = vunpack.c.h.bf16 %v883_v3 }
 0x3f4   :  { %1166 = vmatpush.bf16.msrb.mxu2 %v1784_v24  ;;  %1179 = vmatpush.bf16.msrb.mxu3 %v1789_v28 }
 0x3f7   :  { %1141 = vmatpush.bf16.msrb.mxu0 %v1787_v27  ;;  %1154 = vmatpush.bf16.msrb.mxu1 %v1792_v31  ;;  %v884_v27 = vld [vmem:[#allocation4 + $0x58] sm:$0xff] }
 0x3f8   :  { %1167 = vmatpush.bf16.msrb.mxu2 %v1796_v38  ;;  %1180 = vmatpush.bf16.msrb.mxu3 %v1798_v39  ;;  %v887_v31 = vunpack.c.l.bf16 %v884_v27  ;;  %v888_v38 = vunpack.c.h.bf16 %v884_v27 }
 0x3fb   :  { %1142 = vmatpush.bf16.msrb.mxu0 %v1801_v41  ;;  %1155 = vmatpush.bf16.msrb.mxu1 %v1804_v45 }
 0x3fc   :  { %1168 = vmatpush.bf16.msrb.mxu2 %v1808_v50  ;;  %1181 = vmatpush.bf16.msrb.mxu3 %v1810_v51 }
 0x3ff   :  { %1143 = vmatpush.bf16.msrb.mxu0 %v1813_v53  ;;  %1156 = vmatpush.bf16.msrb.mxu1 %v1816_v57 }
 0x400   :  { %1169 = vmatpush.bf16.msrb.mxu2 %v1820_v62  ;;  %1182 = vmatpush.bf16.msrb.mxu3 %v1822_v63 }
 0x403   :  { %1144 = vmatpush.bf16.msrb.mxu0 %v1825_v1  ;;  %1157 = vmatpush.bf16.msrb.mxu1 %v1828_v6 }
 0x404   :  { %1170 = vmatpush.bf16.msrb.mxu2 %v1832_v13  ;;  %1183 = vmatpush.bf16.msrb.mxu3 %v1834_v14 }
 0x407   :  { %1145 = vmatpush.bf16.msrb.mxu0 %v1837_v19  ;;  %1158 = vmatpush.bf16.msrb.mxu1 %v1840_v23 }
 0x408   :  { %1171 = vmatpush.bf16.msrb.mxu2 %v1844_v32  ;;  %1184 = vmatpush.bf16.msrb.mxu3 %v1846_v33 }
 0x40b   :  { %1146 = vmatpush.bf16.msrb.mxu0 %v1849_v34  ;;  %1159 = vmatpush.bf16.msrb.mxu1 %v1852_v37 }
 0x40c   :  { %1172 = vmatpush.bf16.msrb.mxu2 %v1856_v43  ;;  %1185 = vmatpush.bf16.msrb.mxu3 %v1859_v44 }
 0x46a   :  { %v900_v15 = vpop.f32.mrf.mxu0  ;;  %v913_v16 = vpop.f32.mrf.mxu1 }
 0x46b   :  { %v943_v17 = vadd.f32 %v900_v15, %v885_v7  ;;  %v944_v24 = vadd.f32 %v913_v16, %v886_v11 }
 0x46d   :  { %v947_v28 = vpack.c.bf16 %v944_v24, %v943_v17 }
 0x46f   :  { %v949_v39 = vxor.u32 2147516416, %v947_v28 }
 0x471   :  { %v951_v41 = vunpack.c.l.bf16 %v949_v39  ;;  %v952_v45 = vunpack.c.h.bf16 %v949_v39  ;;  %v926_v50 = vpop.f32.mrf.mxu2  ;;  %v939_v51 = vpop.f32.mrf.mxu3  ;;  %v1007_v39 = vld [vmem:[#allocation4 + $0x60] sm:$0xff] }
 0x472   :  { %v945_v53 = vadd.f32 %v926_v50, %v887_v31  ;;  %v946_v57 = vadd.f32 %v939_v51, %v888_v38  ;;  %v902_v62 = vpop.f32.mrf.mxu0  ;;  %v915_v63 = vpop.f32.mrf.mxu1 }
 0x473   :  { %v954_v1 = vmul.f32 1.442695, %v951_v41  ;;  %v956_v6 = vmul.f32 1.442695, %v952_v45  ;;  %v1009_v41 = vunpack.c.l.bf16 %v1007_v39  ;;  %v1010_v45 = vunpack.c.h.bf16 %v1007_v39  ;;  %v1008_v62 = vld [vmem:[#allocation4 + $0x68] sm:$0xff] }
 0x474   :  { %v948_v13 = vpack.c.bf16 %v946_v57, %v945_v53 }
 0x475   :  { %1573 = vpow2.f32 %v954_v1  ;;  %v1011_v1 = vunpack.c.l.bf16 %v1008_v62 }
 0x476   :  { %1575 = vpow2.f32 %v956_v6  ;;  %v950_v14 = vxor.u32 2147516416, %v948_v13  ;;  %v988_v44 = vrot.slane %v948_v13, 4  ;;  %v1012_v6 = vunpack.c.h.bf16 %v1008_v62 }
 0x478   :  { %v953_v19 = vunpack.c.l.bf16 %v950_v14  ;;  %v990_v18 = vunpack.c.l.bf16 %v988_v44 }
 0x479   :  { %v928_v23 = vpop.f32.mrf.mxu2  ;;  %v941_v32 = vpop.f32.mrf.mxu3 }
 0x47a   :  { %v958_v33 = vmul.f32 1.442695, %v953_v19 }
 0x47b   :  { %v1574_v34 = vpop.eup %1573 }
 0x47c   :  { %v1576_v37 = vpop.eup %1575  ;;  %1577 = vpow2.f32 %v958_v33 }
 0x47d   :  { %v960_v43 = vpack.c.bf16 %v1576_v37, %v1574_v34  ;;  %1579 = vtanh.f32 %v990_v18 }
 0x47f   :  { %v962_v61 = vunpack.c.l.bf16 %v960_v43  ;;  %v963_v0 = vunpack.c.h.bf16 %v960_v43 }
 0x481   :  { %v965_v9 = vadd.f32 1.0, %v962_v61  ;;  %v966_v10 = vadd.f32 1.0, %v963_v0 }
 0x482   :  { %v1578_v12 = vpop.eup %1577 }
 0x483   :  { %v968_v20 = vpack.c.bf16 %v966_v10, %v965_v9  ;;  %v961_v21 = vpack.c.bf16 %v1578_v12, %v1578_v12  ;;  %v1580_v30 = vpop.eup %1579 }
 0x484   :  { %v992_v48 = vpack.c.bf16 %v1580_v30, %v1580_v30 }
 0x485   :  { %v970_v22 = vunpack.c.h.bf16 %v968_v20  ;;  %v971_v25 = vunpack.c.l.bf16 %v968_v20  ;;  %v964_v26 = vunpack.c.l.bf16 %v961_v21 }
 0x486   :  { %v993_v58 = vunpack.c.l.bf16 %v992_v48 }
 0x487   :  { %1581 = vrcp.f32 %v970_v22  ;;  %v967_v29 = vadd.f32 1.0, %v964_v26 }
 0x488   :  { %1583 = vrcp.f32 %v971_v25 }
 0x489   :  { %v969_v40 = vpack.c.bf16 %v967_v29, %v967_v29 }
 0x48b   :  { %v977_v49 = vunpack.c.h.bf16 %v969_v40  ;;  %v978_v54 = vunpack.c.l.bf16 %v969_v40 }
 0x48d   :  { %v1582_v42 = vpop.eup %1581  ;;  %1585 = vrcp.f32 %v977_v49 }
 0x48e   :  { %v1584_v35 = vpop.eup %1583  ;;  %v973_v46 = vmul.f32 %v1582_v42, %v1928_v4  ;;  %1587 = vrcp.f32 %v978_v54 }
 0x48f   :  { %v975_v47 = vmul.f32 %v1584_v35, %v1930_v8 }
 0x491   :  { %v976_v52 = vpack.c.bf16 %v973_v46, %v975_v47 }
 0x493   :  { %v984_v55 = vunpack.c.l.bf16 %v976_v52  ;;  %v985_v56 = vunpack.c.h.bf16 %v976_v52  ;;  %v1586_v3 = vpop.eup %1585 }
 0x494   :  { %v1588_v7 = vpop.eup %1587  ;;  %v980_v15 = vmul.f32 %v1586_v3, %v1928_v4 }
 0x495   :  { %v995_v59 = vmul.f32 %v985_v56, %v2098_v36  ;;  %v996_v60 = vmul.f32 %v993_v58, %v984_v55  ;;  %v982_v16 = vmul.f32 %v1588_v7, %v1930_v8 }
 0x497   :  { %v2139_v2 = vadd.f32 %v996_v60, %v995_v59  ;;  %v983_v17 = vpack.c.bf16 %v980_v15, %v982_v16 }
 0x499   :  { %v998_v5 = vpack.c.bf16 %v2139_v2, %v2139_v2  ;;  %v986_v28 = vunpack.c.l.bf16 %v983_v17 }
 0x49b   :  { %v999_v11 = vunpack.c.l.bf16 %v998_v5 }
 0x49d   :  { %1589 = vtanh.f32 %v999_v11 }
 0x4a3   :  { %v1590_v24 = vpop.eup %1589 }
 0x4a4   :  { %v1001_v27 = vpack.c.bf16 %v1590_v24, %v1590_v24 }
 0x4a6   :  { %v1002_v31 = vunpack.c.l.bf16 %v1001_v27 }
 0x4a8   :  { %v1003_v36 = vmul.f32 %v1002_v31, %v986_v28 }
 0x4aa   :  { %v1014_v38 = vpack.c.bf16 %v1003_v36, %v1003_v36 }
 0x4ac   :  { %1023 = vmatmul.bf16.vlgmr.msra.gmra.mxu0 %v1014_v38  ;;  %1036 = vmatmul.bf16.vlgmr.msra.gmra.mxu1 %v1014_v38 }
 0x4ad   :  { %1049 = vmatmul.bf16.vlgmr.msra.gmra.mxu2 %v1014_v38  ;;  %1062 = vmatmul.bf16.vlgmr.msra.gmra.mxu3 %v1014_v38 }
 0x529   :  { %v1024_v50 = vpop.f32.mrf.mxu0  ;;  %v1037_v51 = vpop.f32.mrf.mxu1 }
 0x52a   :  { %v1067_v53 = vadd.f32 %v1024_v50, %v1009_v41  ;;  %v1068_v57 = vadd.f32 %v1037_v51, %v1010_v45 }
 0x52c   :  { %v1071_v63 = vpack.c.bf16 %v1068_v57, %v1067_v53 }
 0x52e   :  { %v1073_v13 = vxor.u32 2147516416, %v1071_v63 }
 0x530   :  { %v1075_v14 = vunpack.c.l.bf16 %v1073_v13  ;;  %v1076_v19 = vunpack.c.h.bf16 %v1073_v13  ;;  %v1050_v23 = vpop.f32.mrf.mxu2  ;;  %v1063_v32 = vpop.f32.mrf.mxu3  ;;  %v1131_v13 = vld [vmem:[#allocation4 + $0x70] sm:$0xff] }
 0x531   :  { %v1069_v33 = vadd.f32 %v1050_v23, %v1011_v1  ;;  %v1070_v34 = vadd.f32 %v1063_v32, %v1012_v6  ;;  %v1026_v37 = vpop.f32.mrf.mxu0  ;;  %v1039_v43 = vpop.f32.mrf.mxu1 }
 0x532   :  { %v1078_v44 = vmul.f32 1.442695, %v1075_v14  ;;  %v1080_v61 = vmul.f32 1.442695, %v1076_v19  ;;  %v1133_v14 = vunpack.c.l.bf16 %v1131_v13  ;;  %v1134_v19 = vunpack.c.h.bf16 %v1131_v13  ;;  %v1132_v43 = vld [vmem:[#allocation4 + $0x78] sm:$0xff] }
 0x533   :  { %v1072_v0 = vpack.c.bf16 %v1070_v34, %v1069_v33  ;;  %v1273_v33 = vld [vmem:[#allocation9 + $0x78] sm:$0xff] }
 0x534   :  { %1591 = vpow2.f32 %v1078_v44  ;;  %1274 = vmatpush.msra.mxu0 %v1273_v33  ;;  %v1272_v44 = vld [vmem:[#allocation9 + $0x70] sm:$0xff] }
 0x535   :  { %1593 = vpow2.f32 %v1080_v61  ;;  %v1074_v9 = vxor.u32 2147516416, %v1072_v0  ;;  %v1112_v26 = vrot.slane %v1072_v0, 4  ;;  %v1135_v0 = vunpack.c.l.bf16 %v1132_v43 }
 0x536   :  { %1275 = vmatpush.msra.mxu0 %v1272_v44 }
 0x537   :  { %v1077_v10 = vunpack.c.l.bf16 %v1074_v9  ;;  %v1114_v46 = vunpack.c.l.bf16 %v1112_v26  ;;  %v1136_v9 = vunpack.c.h.bf16 %v1132_v43 }
 0x538   :  { %v1052_v12 = vpop.f32.mrf.mxu2  ;;  %v1065_v18 = vpop.f32.mrf.mxu3 }
 0x539   :  { %v1082_v20 = vmul.f32 1.442695, %v1077_v10  ;;  %v1271_v10 = vld [vmem:[#allocation9 + $0x68] sm:$0xff]  ;;  %v1270_v18 = vld [vmem:[#allocation9 + $0x60] sm:$0xff] }
 0x53a   :  { %v1592_v21 = vpop.eup %1591  ;;  %1276 = vmatpush.msra.mxu0 %v1271_v10 }
 0x53b   :  { %v1594_v22 = vpop.eup %1593  ;;  %1595 = vpow2.f32 %v1082_v20 }
 0x53c   :  { %v1084_v25 = vpack.c.bf16 %v1594_v22, %v1592_v21  ;;  %1597 = vtanh.f32 %v1114_v46  ;;  %1277 = vmatpush.msra.mxu0 %v1270_v18 }
 0x53e   :  { %v1086_v29 = vunpack.c.l.bf16 %v1084_v25  ;;  %v1087_v30 = vunpack.c.h.bf16 %v1084_v25 }
 0x540   :  { %v1089_v40 = vadd.f32 1.0, %v1086_v29  ;;  %v1090_v42 = vadd.f32 1.0, %v1087_v30 }
 0x541   :  { %v1596_v35 = vpop.eup %1595 }
 0x542   :  { %v1092_v47 = vpack.c.bf16 %v1090_v42, %v1089_v40  ;;  %v1085_v48 = vpack.c.bf16 %v1596_v35, %v1596_v35  ;;  %v1598_v56 = vpop.eup %1597  ;;  %v1269_v42 = vld [vmem:[#allocation9 + $0x58] sm:$0xff] }
 0x543   :  { %v1116_v7 = vpack.c.bf16 %v1598_v56, %v1598_v56  ;;  %1278 = vmatpush.msra.mxu0 %v1269_v42 }
 0x544   :  { %v1094_v49 = vunpack.c.h.bf16 %v1092_v47  ;;  %v1095_v52 = vunpack.c.l.bf16 %v1092_v47  ;;  %v1088_v54 = vunpack.c.l.bf16 %v1085_v48  ;;  %v1268_v48 = vld [vmem:[#allocation9 + $0x50] sm:$0xff] }
 0x545   :  { %v1117_v27 = vunpack.c.l.bf16 %v1116_v7  ;;  %1279 = vmatpush.msra.mxu0 %v1268_v48 }
 0x546   :  { %1599 = vrcp.f32 %v1094_v49  ;;  %v1091_v55 = vadd.f32 1.0, %v1088_v54 }
 0x547   :  { %1601 = vrcp.f32 %v1095_v52  ;;  %v1267_v52 = vld [vmem:[#allocation9 + $0x48] sm:$0xff] }
 0x548   :  { %v1093_v58 = vpack.c.bf16 %v1091_v55, %v1091_v55  ;;  %1280 = vmatpush.msra.mxu0 %v1267_v52  ;;  %v1266_v55 = vld [vmem:[#allocation9 + $0x40] sm:$0xff] }
 0x54a   :  { %v1101_v11 = vunpack.c.h.bf16 %v1093_v58  ;;  %v1102_v16 = vunpack.c.l.bf16 %v1093_v58  ;;  %1281 = vmatpush.msra.mxu0 %v1266_v55 }
 0x54c   :  { %v1600_v59 = vpop.eup %1599  ;;  %1603 = vrcp.f32 %v1101_v11  ;;  %v1263_v11 = vld [vmem:[#allocation9 + $0x28] sm:$0xff] }
 0x54d   :  { %v1602_v60 = vpop.eup %1601  ;;  %v1097_v5 = vmul.f32 %v1600_v59, %v1928_v4  ;;  %1605 = vrcp.f32 %v1102_v16  ;;  %v1265_v59 = vld [vmem:[#allocation9 + $0x38] sm:$0xff] }
 0x54e   :  { %v1099_v3 = vmul.f32 %v1602_v60, %v1930_v8  ;;  %1282 = vmatpush.msra.mxu0 %v1265_v59 }
 0x550   :  { %v1100_v15 = vpack.c.bf16 %v1097_v5, %v1099_v3  ;;  %v1264_v5 = vld [vmem:[#allocation9 + $0x30] sm:$0xff] }
 0x551   :  { %1283 = vmatpush.msra.mxu0 %v1264_v5 }
 0x552   :  { %v1108_v17 = vunpack.c.l.bf16 %v1100_v15  ;;  %v1109_v24 = vunpack.c.h.bf16 %v1100_v15  ;;  %v1604_v39 = vpop.eup %1603 }
 0x553   :  { %v1606_v41 = vpop.eup %1605  ;;  %v1104_v50 = vmul.f32 %v1604_v39, %v1928_v4  ;;  %1284 = vmatpush.msra.mxu0 %v1263_v11 }
 0x554   :  { %v1119_v28 = vmul.f32 %v1109_v24, %v2139_v2  ;;  %v1120_v31 = vmul.f32 %v1117_v27, %v1108_v17  ;;  %v1106_v51 = vmul.f32 %v1606_v41, %v1930_v8  ;;  %v1262_v17 = vld [vmem:[#allocation9 + $0x20] sm:$0xff] }
 0x555   :  { %1285 = vmatpush.msra.mxu0 %v1262_v17 }
 0x556   :  { %v2148_v36 = vadd.f32 %v1120_v31, %v1119_v28  ;;  %v1107_v53 = vpack.c.bf16 %v1104_v50, %v1106_v51  ;;  %v1261_v28 = vld [vmem:[#allocation9 + $0x18] sm:$0xff] }
 0x557   :  { %1286 = vmatpush.msra.mxu0 %v1261_v28 }
 0x558   :  { %v1122_v38 = vpack.c.bf16 %v2148_v36, %v2148_v36  ;;  %v1110_v63 = vunpack.c.l.bf16 %v1107_v53  ;;  %v1259_v53 = vld [vmem:[#allocation9 + $0x8] sm:$0xff] }
 0x55a   :  { %v1123_v45 = vunpack.c.l.bf16 %v1122_v38 }
 0x55c   :  { %1607 = vtanh.f32 %v1123_v45  ;;  %v1260_v45 = vld [vmem:[#allocation9 + $0x10] sm:$0xff] }
 0x55d   :  { %1287 = vmatpush.msra.mxu0 %v1260_v45 }
 0x55f   :  { %1288 = vmatpush.msra.mxu0 %v1259_v53 }
 0x562   :  { %v1608_v57 = vpop.eup %1607 }
 0x563   :  { %v1125_v62 = vpack.c.bf16 %v1608_v57, %v1608_v57 }
 0x565   :  { %v1126_v1 = vunpack.c.l.bf16 %v1125_v62 }
 0x567   :  { %v1127_v2 = vmul.f32 %v1126_v1, %v1110_v63  ;;  %v1258_v1 = vld [vmem:[#allocation9] sm:$0xff] }
 0x568   :  { %1289 = vmatpush.msra.mxu0 %v1258_v1 }
 0x569   :  { %v1138_v6 = vpack.c.bf16 %v1127_v2, %v1127_v2 }
 0x56b   :  { %1147 = vmatmul.bf16.vlgmr.msrb.gmra.mxu0 %v1138_v6  ;;  %1160 = vmatmul.bf16.vlgmr.msrb.gmra.mxu1 %v1138_v6 }
 0x56c   :  { %1173 = vmatmul.bf16.vlgmr.msrb.gmra.mxu2 %v1138_v6  ;;  %1186 = vmatmul.bf16.vlgmr.msrb.gmra.mxu3 %v1138_v6 }
 0x5e8   :  { %v1148_v23 = vpop.f32.mrf.mxu0  ;;  %v1161_v32 = vpop.f32.mrf.mxu1 }
 0x5e9   :  { %v1191_v34 = vadd.f32 %v1148_v23, %v1133_v14  ;;  %v1192_v37 = vadd.f32 %v1161_v32, %v1134_v19 }
 0x5eb   :  { %v1195_v61 = vpack.c.bf16 %v1192_v37, %v1191_v34 }
 0x5ed   :  { %v1197_v12 = vxor.u32 2147516416, %v1195_v61 }
 0x5ef   :  { %v1199_v20 = vunpack.c.l.bf16 %v1197_v12  ;;  %v1200_v21 = vunpack.c.h.bf16 %v1197_v12  ;;  %v1174_v22 = vpop.f32.mrf.mxu2  ;;  %v1187_v25 = vpop.f32.mrf.mxu3 }
 0x5f0   :  { %v1193_v26 = vadd.f32 %v1174_v22, %v1135_v0  ;;  %v1194_v29 = vadd.f32 %v1187_v25, %v1136_v9  ;;  %v1150_v30 = vpop.f32.mrf.mxu0  ;;  %v1163_v40 = vpop.f32.mrf.mxu1 }
 0x5f1   :  { %v1202_v35 = vmul.f32 1.442695, %v1199_v20  ;;  %v1204_v46 = vmul.f32 1.442695, %v1200_v21 }
 0x5f2   :  { %v1196_v47 = vpack.c.bf16 %v1194_v29, %v1193_v26 }
 0x5f3   :  { %1609 = vpow2.f32 %v1202_v35 }
 0x5f4   :  { %1611 = vpow2.f32 %v1204_v46  ;;  %v1198_v49 = vxor.u32 2147516416, %v1196_v47  ;;  %v1236_v16 = vrot.slane %v1196_v47, 4 }
 0x5f6   :  { %v1201_v54 = vunpack.c.l.bf16 %v1198_v49  ;;  %v1238_v41 = vunpack.c.l.bf16 %v1236_v16 }
 0x5f7   :  { %v1176_v56 = vpop.f32.mrf.mxu2  ;;  %v1189_v58 = vpop.f32.mrf.mxu3 }
 0x5f8   :  { %v1206_v60 = vmul.f32 1.442695, %v1201_v54 }
 0x5f9   :  { %v1610_v3 = vpop.eup %1609 }
 0x5fa   :  { %v1612_v7 = vpop.eup %1611  ;;  %1613 = vpow2.f32 %v1206_v60 }
 0x5fb   :  { %v1208_v15 = vpack.c.bf16 %v1612_v7, %v1610_v3  ;;  %1615 = vtanh.f32 %v1238_v41 }
 0x5fd   :  { %v1210_v24 = vunpack.c.l.bf16 %v1208_v15  ;;  %v1211_v27 = vunpack.c.h.bf16 %v1208_v15 }
 0x5ff   :  { %v1213_v31 = vadd.f32 1.0, %v1210_v24  ;;  %v1214_v38 = vadd.f32 1.0, %v1211_v27 }
 0x600   :  { %v1614_v39 = vpop.eup %1613 }
 0x601   :  { %v1216_v50 = vpack.c.bf16 %v1214_v38, %v1213_v31  ;;  %v1209_v51 = vpack.c.bf16 %v1614_v39, %v1614_v39  ;;  %v1616_v6 = vpop.eup %1615 }
 0x602   :  { %v1240_v33 = vpack.c.bf16 %v1616_v6, %v1616_v6 }
 0x603   :  { %v1218_v57 = vunpack.c.h.bf16 %v1216_v50  ;;  %v1219_v62 = vunpack.c.l.bf16 %v1216_v50  ;;  %v1212_v63 = vunpack.c.l.bf16 %v1209_v51 }
 0x604   :  { %v1241_v0 = vunpack.c.l.bf16 %v1240_v33 }
 0x605   :  { %1617 = vrcp.f32 %v1218_v57  ;;  %v1215_v2 = vadd.f32 1.0, %v1212_v63 }
 0x606   :  { %1619 = vrcp.f32 %v1219_v62 }
 0x607   :  { %v1217_v13 = vpack.c.bf16 %v1215_v2, %v1215_v2 }
 0x609   :  { %v1225_v34 = vunpack.c.h.bf16 %v1217_v13  ;;  %v1226_v43 = vunpack.c.l.bf16 %v1217_v13 }
 0x60b   :  { %v1618_v14 = vpop.eup %1617  ;;  %1621 = vrcp.f32 %v1225_v34 }
 0x60c   :  { %v1620_v19 = vpop.eup %1619  ;;  %v1221_v23 = vmul.f32 %v1618_v14, %v1928_v4  ;;  %1623 = vrcp.f32 %v1226_v43 }
 0x60d   :  { %v1223_v32 = vmul.f32 %v1620_v19, %v1930_v8 }
 0x60f   :  { %v1224_v37 = vpack.c.bf16 %v1221_v23, %v1223_v32 }
 0x611   :  { %v1232_v44 = vunpack.c.l.bf16 %v1224_v37  ;;  %v1233_v61 = vunpack.c.h.bf16 %v1224_v37  ;;  %v1622_v20 = vpop.eup %1621 }
 0x612   :  { %v1624_v21 = vpop.eup %1623  ;;  %v1228_v25 = vmul.f32 %v1622_v20, %v1928_v4 }
 0x613   :  { %v1243_v9 = vmul.f32 %v1233_v61, %v2148_v36  ;;  %v1244_v10 = vmul.f32 %v1241_v0, %v1232_v44  ;;  %v1230_v26 = vmul.f32 %v1624_v21, %v1930_v8 }
 0x615   :  { %v1245_v12 = vadd.f32 %v1244_v10, %v1243_v9  ;;  %v1231_v29 = vpack.c.bf16 %v1228_v25, %v1230_v26 }
 0x617   :  { %v1246_v18 = vpack.c.bf16 %v1245_v12, %v1245_v12  ;;  %v1234_v42 = vunpack.c.l.bf16 %v1231_v29 }
 0x619   :  { %v1247_v22 = vunpack.c.l.bf16 %v1246_v18 }
 0x61b   :  { %1625 = vtanh.f32 %v1247_v22 }
 0x621   :  { %v1626_v30 = vpop.eup %1625 }
 0x622   :  { %v1249_v40 = vpack.c.bf16 %v1626_v30, %v1626_v30 }
 0x624   :  { %v1250_v35 = vunpack.c.l.bf16 %v1249_v40 }
 0x626   :  { %v1251_v46 = vmul.f32 %v1250_v35, %v1234_v42 }
 0x628   :  { %1290 = vmatmul.f32.vlgmr.msra.gmra.mxu0 %v1251_v46 }
 0x6a5   :  { %v1291_v36 = vpop.f32.mrf.mxu0 }
 0x6a6   :  { %1294 = vst [vmem:[#allocation10] sm:$0xff] %v1291_v36 }
 0x6a7   :  { %1305 = dma.vmem_to_hbm [thread:$0]  %s1301_s2, 128, %s1303_s5, [#allocation6]  }
 0x6a8   :  { %1727 = dma.done.wait [#allocation6], 128  }
 0x6a9   :  { %1728 = vsyncadd [#allocation6], 4294967168 }
 0x6aa   :  { %1310 = vsyncpa [#allocation5], 1 }
 0x6ab   :  { %1311 = vsyncpa [#allocation8], 1 }
 0x6ac   :  { %1312 = vsyncpa [#allocation6], 1 }

</bundles_post_ra>
